<compile_context>
chip_gen: v6e
topology: v6e:2x2x1
jax: 0.10.0
libtpu: 0.0.40
codegen_flags: <defaults>
</compile_context>

<pallas_src>
import functools

import jax
import jax.numpy as jnp
from jax.experimental import pallas as pl
from jax.experimental.pallas import tpu as pltpu


def _fused_block_kernel(x_hbm, w1_ref, s1_ref, b1_ref, w2_ref, s2_ref, b2_ref,
                        out_ref, xbuf, h1pad, pbuf, sem,
                        *, TH, W, Wp, Cp, compute_dtype):
    n = pl.program_id(0)
    t = pl.program_id(1)
    N = pl.num_programs(0)
    nT = pl.num_programs(1)
    rows1 = TH + 2                     # h1 rows computed per tile (1 halo row each side)
    step = n * nT + t                  # global sequential step index
    slot = step % 2
    nslot = 1 - slot

    def tile_copy(img, tile, s):
        # rows [tile*TH, tile*TH + TH + 4) of the padded input of image `img`
        return pltpu.make_async_copy(
            x_hbm.at[img, pl.ds(tile * TH, TH + 4)], xbuf.at[s], sem.at[s])

    # Only the very first grid step issues its own (un-overlapped) DMA.
    @pl.when(step == 0)
    def _():
        tile_copy(n, t, slot).start()

    # Prefetch the next (image, tile) pair -- crosses image boundaries.
    last_tile = t == nT - 1
    @pl.when(jnp.logical_not(jnp.logical_and(last_tile, n == N - 1)))
    def _():
        n_next = jnp.where(last_tile, n + 1, n)
        t_next = jnp.where(last_tile, 0, t + 1)
        tile_copy(n_next, t_next, nslot).start()

    # Wait for the current tile.
    tile_copy(n, t, slot).wait()
    cur = xbuf.at[slot]                                   # (TH+4, Wp, Cp) compute_dtype

    # ---- stage 1: conv1 as ONE im2col matmul (K = 9*Cp) + BN1 + ReLU over TH+2 rows ----
    # Build the patch matrix by storing each tap at a 128-aligned lane offset.
    for k in range(9):
        ky, kx = k // 3, k % 3
        pbuf[:, k * Cp:(k + 1) * Cp] = (
            cur[ky:ky + rows1, kx:kx + W, :].reshape(rows1 * W, Cp))
    a1 = jnp.dot(pbuf[...], w1_ref[...], preferred_element_type=jnp.float32)
    h1 = jnp.maximum(a1 * s1_ref[...] + b1_ref[...], 0.0)   # f32 epilogue

    # Stash h1 (with zero W-halo columns) in VMEM; zero H-halo rows at image edges.
    h1pad[:, 1:1 + W, :] = h1.reshape(rows1, W, Cp).astype(compute_dtype)
    zcol = jnp.zeros((rows1, 1, Cp), compute_dtype)
    h1pad[:, 0:1, :] = zcol
    h1pad[:, W + 1:W + 2, :] = zcol

    @pl.when(t == 0)
    def _():
        h1pad[0:1, :, :] = jnp.zeros((1, Wp, Cp), compute_dtype)

    @pl.when(t == nT - 1)
    def _():
        h1pad[rows1 - 1:rows1, :, :] = jnp.zeros((1, Wp, Cp), compute_dtype)

    # ---- stage 2: conv2 (im2col) + BN2 + residual add + ReLU over TH rows ----
    for k in range(9):
        ky, kx = k // 3, k % 3
        pbuf[0:TH * W, k * Cp:(k + 1) * Cp] = (
            h1pad[ky:ky + TH, kx:kx + W, :].reshape(TH * W, Cp))
    a2 = jnp.dot(pbuf[0:TH * W, :], w2_ref[...], preferred_element_type=jnp.float32)
    o = a2 * s2_ref[...] + b2_ref[...]
    res = cur[2:2 + TH, 1:1 + W, :].reshape(TH * W, Cp).astype(jnp.float32)
    o = jnp.maximum(o + res, 0.0)                          # f32 add/ReLU
    out_ref[...] = o.reshape(out_ref.shape).astype(out_ref.dtype)


def _fold_bn(gamma, beta, mean, var, eps=1e-5):
    scale = gamma / jnp.sqrt(var + eps)
    bias = beta - mean * scale
    return scale, bias


def _choose_row_tile(H, W, target=64):
    if H <= target:
        return H                       # whole image per tile for small feature maps
    for th in range(target, 0, -1):
        if H % th == 0 and (th * W) % 8 == 0:
            return th
    return H


def basic_block_forward(x_nchw, params, *, compute_dtype=jnp.bfloat16, row_tile=None,
                        return_nhwc_padded=False):
    """x_nchw: (N, C, H, W) float32 (PyTorch convention).

    Returns (N, C, H, W) in x's dtype by default; with return_nhwc_padded=True returns
    the kernel's native (N, H, W, Cp) compute_dtype output for chaining blocks.
    """
    N, C, H, W = x_nchw.shape
    planes = params["w1_oihw"].shape[0]
    assert planes == C, "downsample=None BasicBlock requires inplanes == planes"

    LANE = 128
    Cp = ((C + LANE - 1) // LANE) * LANE                 # lane-dense channel padding

    TH = _choose_row_tile(H, W) if row_tile is None else row_tile
    assert H % TH == 0 and (TH == H or (TH * W) % 8 == 0)
    nT = H // TH
    Wp = ((W + 2 + 7) // 8) * 8                          # sublane-aligned padded width

    # NCHW -> NHWC once at the boundary; single pad: 2 halo rows, 1 left halo col
    # (+ right pad up to Wp), channels -> Cp.  DMA'd in compute_dtype.
    x = jnp.transpose(x_nchw, (0, 2, 3, 1)).astype(compute_dtype)
    xpad = jnp.pad(x, ((0, 0), (2, 2), (1, Wp - W - 1), (0, Cp - C)))

    def prep_w(w_oihw):
        w = jnp.transpose(w_oihw, (2, 3, 1, 0))          # (3, 3, I, O)
        w = jnp.pad(w, ((0, 0), (0, 0), (0, Cp - w.shape[2]), (0, Cp - w.shape[3])))
        return w.reshape(9 * Cp, Cp).astype(compute_dtype)   # im2col weight, (ky,kx,ci) major

    w1 = prep_w(params["w1_oihw"])
    w2 = prep_w(params["w2_oihw"])

    def prep_bn(g, b, m, v):
        s, bb = _fold_bn(g, b, m, v)
        s = jnp.pad(s, (0, Cp - C))[None, :].astype(jnp.float32)
        bb = jnp.pad(bb, (0, Cp - C))[None, :].astype(jnp.float32)
        return s, bb

    s1, b1 = prep_bn(params["bn1_gamma"], params["bn1_beta"],
                     params["bn1_mean"], params["bn1_var"])
    s2, b2 = prep_bn(params["bn2_gamma"], params["bn2_beta"],
                     params["bn2_mean"], params["bn2_var"])

    kernel = functools.partial(_fused_block_kernel, TH=TH, W=W, Wp=Wp, Cp=Cp,
                               compute_dtype=compute_dtype)

    itemc = jnp.dtype(compute_dtype).itemsize
    flops = 4 * N * H * W * 9 * Cp * Cp                  # two convs, 2*M*K*N each
    bytes_acc = (xpad.size * itemc + N * H * W * Cp * itemc + 2 * 9 * Cp * Cp * itemc)

    # Explicit VMEM budget (scratch + double-buffered weights/out blocks) with margin.
    est = (2 * (TH + 4) * Wp * Cp * itemc                # x row-tile double buffer
           + (TH + 2) * Wp * Cp * itemc                  # padded h1 tile
           + (TH + 2) * W * 9 * Cp * itemc               # im2col staging
           + 2 * 2 * 9 * Cp * Cp * itemc                 # w1,w2 (double-buffered)
           + 2 * 4 * 8 * Cp * 4                          # scales/biases (padded, f32)
           + 2 * TH * W * Cp * itemc)                    # out block (double-buffered)
    vmem_limit = int(min(max(32 * 1024 * 1024, est * 5 // 4 + (2 << 20)),
                         100 * 1024 * 1024))

    out_flat = pl.pallas_call(
        kernel,
        out_shape=jax.ShapeDtypeStruct((N, H * W, Cp), compute_dtype),
        grid_spec=pltpu.PrefetchScalarGridSpec(
            num_scalar_prefetch=0,
            grid=(N, nT),
            in_specs=[
                pl.BlockSpec(memory_space=pl.ANY),                   # padded x stays in HBM
                pl.BlockSpec((9 * Cp, Cp), lambda n, t: (0, 0)),     # w1 (resident in VMEM)
                pl.BlockSpec((1, Cp), lambda n, t: (0, 0)),          # bn1 scale
                pl.BlockSpec((1, Cp), lambda n, t: (0, 0)),          # bn1 bias
                pl.BlockSpec((9 * Cp, Cp), lambda n, t: (0, 0)),     # w2 (resident in VMEM)
                pl.BlockSpec((1, Cp), lambda n, t: (0, 0)),          # bn2 scale
                pl.BlockSpec((1, Cp), lambda n, t: (0, 0)),          # bn2 bias
            ],
            out_specs=pl.BlockSpec((1, TH * W, Cp), lambda n, t: (n, t, 0)),
            scratch_shapes=[
                pltpu.VMEM((2, TH + 4, Wp, Cp), compute_dtype),      # x row-tile double buffer
                pltpu.VMEM((TH + 2, Wp, Cp), compute_dtype),         # padded h1 tile
                pltpu.VMEM(((TH + 2) * W, 9 * Cp), compute_dtype),   # im2col staging buffer
                pltpu.SemaphoreType.DMA((2,)),
            ]),
        compiler_params=pltpu.CompilerParams(
            # Both axes "arbitrary": cross-image prefetch requires sequential order.
            dimension_semantics=("arbitrary", "arbitrary"),
            vmem_limit_bytes=vmem_limit),
        cost_estimate=pl.CostEstimate(flops=flops, transcendentals=0,
                                      bytes_accessed=bytes_acc),
    )(xpad, w1, s1, b1, w2, s2, b2)

    out = out_flat.reshape(N, H, W, Cp)
    if return_nhwc_padded:
        return out                                        # chainable, no slice/transpose
    out = out[..., :C].astype(x_nchw.dtype)
    return jnp.transpose(out, (0, 3, 1, 2))              # back to NCHW


def basic_block_reference(x_nchw, params):
    """Pure-JAX reference (lax conv) for correctness checking."""
    def conv(x, w_oihw):
        return jax.lax.conv_general_dilated(
            x, w_oihw, window_strides=(1, 1), padding=((1, 1), (1, 1)),
            dimension_numbers=("NCHW", "OIHW", "NCHW"))

    def bn(x, g, b, m, v, eps=1e-5):
        g, b, m, v = (a[None, :, None, None] for a in (g, b, m, v))
        return (x - m) / jnp.sqrt(v + eps) * g + b

    out = conv(x_nchw, params["w1_oihw"])
    out = jax.nn.relu(bn(out, params["bn1_gamma"], params["bn1_beta"],
                         params["bn1_mean"], params["bn1_var"]))
    out = conv(out, params["w2_oihw"])
    out = bn(out, params["bn2_gamma"], params["bn2_beta"],
             params["bn2_mean"], params["bn2_var"])
    return jax.nn.relu(out + x_nchw)


if __name__ == "__main__":
    N, C, H, W = 2, 8, 16, 16   # inplanes == planes, stride=1, downsample=None
    planes = C

    key = jax.random.PRNGKey(0)
    ks = jax.random.split(key, 10)
    params = {
        "w1_oihw": 0.1 * jax.random.normal(ks[0], (planes, C, 3, 3), jnp.float32),
        "w2_oihw": 0.1 * jax.random.normal(ks[1], (planes, planes, 3, 3), jnp.float32),
        "bn1_gamma": 1.0 + 0.1 * jax.random.normal(ks[2], (planes,), jnp.float32),
        "bn1_beta": 0.1 * jax.random.normal(ks[3], (planes,), jnp.float32),
        "bn1_mean": 0.05 * jax.random.normal(ks[4], (planes,), jnp.float32),
        "bn1_var": jnp.abs(jax.random.normal(ks[5], (planes,), jnp.float32)) + 0.5,
        "bn2_gamma": 1.0 + 0.1 * jax.random.normal(ks[6], (planes,), jnp.float32),
        "bn2_beta": 0.1 * jax.random.normal(ks[7], (planes,), jnp.float32),
        "bn2_mean": 0.05 * jax.random.normal(ks[8], (planes,), jnp.float32),
        "bn2_var": jnp.ones((planes,), jnp.float32),
    }
    x = jax.random.normal(ks[9], (N, C, H, W), jnp.float32)

    ref = jax.block_until_ready(basic_block_reference(x, params))

    # f32 MXU path (tight check); row_tile=8 exercises multi-tile halos + cross-image prefetch.
    out_f32 = jax.block_until_ready(
        basic_block_forward(x, params, compute_dtype=jnp.float32, row_tile=8))
    assert out_f32.shape == (N, C, H, W)
    err = float(jnp.max(jnp.abs(out_f32 - ref)))
    assert jnp.allclose(out_f32, ref, rtol=1e-3, atol=1e-3), f"f32 path max err {err}"

    # bf16 fast path (bf16 DMA + MXU inputs, f32 accumulation/epilogue), default (whole-image)
    # row tile; loose tolerance since input/residual/h1/output are bf16-rounded.
    out_bf16 = jax.block_until_ready(
        basic_block_forward(x, params, compute_dtype=jnp.bfloat16))
    err_bf = float(jnp.max(jnp.abs(out_bf16.astype(jnp.float32) - ref)))
    assert jnp.allclose(out_bf16.astype(jnp.float32), ref, rtol=1e-1, atol=1e-1), \
        f"bf16 path max err {err_bf}"

    print("KERNEL_OK")
</pallas_src>

<mosaic_0001>
module attributes {stable_mosaic.version = 11 : i64} {
  func.func @_fused_block_kernel(%arg0: i32, %arg1: i32, %arg2: memref<2x20x24x128xf32, #tpu.memory_space<any>>, %arg3: memref<1152x128xf32, #tpu.memory_space<vmem>>, %arg4: memref<1x128xf32, #tpu.memory_space<vmem>>, %arg5: memref<1x128xf32, #tpu.memory_space<vmem>>, %arg6: memref<1152x128xf32, #tpu.memory_space<vmem>>, %arg7: memref<1x128xf32, #tpu.memory_space<vmem>>, %arg8: memref<1x128xf32, #tpu.memory_space<vmem>>, %arg9: memref<1x128x128xf32, #tpu.memory_space<vmem>>, %arg10: memref<2x12x24x128xf32, #tpu.memory_space<vmem>>, %arg11: memref<10x24x128xf32, #tpu.memory_space<vmem>>, %arg12: memref<160x1152xf32, #tpu.memory_space<vmem>>, %arg13: memref<2x!tpu.dma_semaphore, #tpu.memory_space<semaphore_mem>>) attributes {dimension_semantics = [#tpu.dimension_semantics<arbitrary>, #tpu.dimension_semantics<arbitrary>], iteration_bounds = array<i64: 2, 2>, scalar_prefetch = 0 : i64, scratch_operands = 4 : i64, tpu.core_type = #tpu.core_type<tc>, window_params = [{}, {pipeline_mode = #tpu.pipeline_mode<synchronous>, transform_indices = @transform_1, window_bounds = array<i64: 1152, 128>}, {pipeline_mode = #tpu.pipeline_mode<synchronous>, transform_indices = @transform_2, window_bounds = array<i64: 1, 128>}, {pipeline_mode = #tpu.pipeline_mode<synchronous>, transform_indices = @transform_3, window_bounds = array<i64: 1, 128>}, {pipeline_mode = #tpu.pipeline_mode<synchronous>, transform_indices = @transform_4, window_bounds = array<i64: 1152, 128>}, {pipeline_mode = #tpu.pipeline_mode<synchronous>, transform_indices = @transform_5, window_bounds = array<i64: 1, 128>}, {pipeline_mode = #tpu.pipeline_mode<synchronous>, transform_indices = @transform_6, window_bounds = array<i64: 1, 128>}, {transform_indices = @transform_7, window_bounds = array<i64: 1, 128, 128>}]} {
    %c2_i32 = arith.constant 2 : i32
    %0 = arith.muli %arg0, %c2_i32 : i32
    %1 = arith.addi %0, %arg1 : i32
    %c2_i32_0 = arith.constant 2 : i32
    %c0_i32 = arith.constant 0 : i32
    %2 = arith.cmpi eq, %c2_i32_0, %c0_i32 : i32
    %c1_i32 = arith.constant 1 : i32
    %3 = arith.select %2, %c1_i32, %c2_i32_0 : i32
    %4 = arith.remsi %1, %3 : i32
    %c0_i32_1 = arith.constant 0 : i32
    %5 = arith.cmpi ne, %4, %c0_i32_1 : i32
    %c0_i32_2 = arith.constant 0 : i32
    %6 = arith.cmpi slt, %4, %c0_i32_2 : i32
    %c0_i32_3 = arith.constant 0 : i32
    %7 = arith.cmpi slt, %3, %c0_i32_3 : i32
    %8 = arith.xori %6, %7 : i1
    %9 = arith.andi %8, %5 : i1
    %10 = arith.addi %4, %3 : i32
    %11 = arith.select %9, %10, %4 : i32
    %c1_i32_4 = arith.constant 1 : i32
    %12 = arith.subi %c1_i32_4, %11 : i32
    %c0_i32_5 = arith.constant 0 : i32
    %13 = arith.cmpi eq, %1, %c0_i32_5 : i32
    %14 = arith.extui %13 : i1 to i32
    %c0_i32_6 = arith.constant 0 : i32
    %15 = arith.cmpi ne, %14, %c0_i32_6 : i32
    scf.if %15 {
      %c8_i32_162 = arith.constant 8 : i32
      %141 = arith.muli %arg1, %c8_i32_162 : i32
      %c0_i32_163 = arith.constant 0 : i32
      %c0_i32_164 = arith.constant 0 : i32
      %142 = tpu.memref_slice %arg2[%arg0, %141, %c0_i32_163, %c0_i32_164] : memref<2x20x24x128xf32, #tpu.memory_space<any>> -> memref<1x12x24x128xf32, #tpu.memory_space<any>>
      %143 = tpu.memref_squeeze %142 : memref<1x12x24x128xf32, #tpu.memory_space<any>> -> memref<12x24x128xf32, #tpu.memory_space<any>>
      %c0_i32_165 = arith.constant 0 : i32
      %c0_i32_166 = arith.constant 0 : i32
      %c0_i32_167 = arith.constant 0 : i32
      %144 = tpu.memref_slice %arg10[%11, %c0_i32_165, %c0_i32_166, %c0_i32_167] : memref<2x12x24x128xf32, #tpu.memory_space<vmem>> -> memref<1x12x24x128xf32, #tpu.memory_space<vmem>>
      %145 = tpu.memref_squeeze %144 : memref<1x12x24x128xf32, #tpu.memory_space<vmem>> -> memref<12x24x128xf32, #tpu.memory_space<vmem>>
      %146 = tpu.memref_slice %arg13[%11] : memref<2x!tpu.dma_semaphore, #tpu.memory_space<semaphore_mem>> -> memref<1x!tpu.dma_semaphore, #tpu.memory_space<semaphore_mem>>
      %147 = tpu.memref_squeeze %146 : memref<1x!tpu.dma_semaphore, #tpu.memory_space<semaphore_mem>> -> memref<!tpu.dma_semaphore, #tpu.memory_space<semaphore_mem>>
      tpu.enqueue_dma source(%143 : memref<12x24x128xf32, #tpu.memory_space<any>>) target(%145 : memref<12x24x128xf32, #tpu.memory_space<vmem>>) target_semaphore(%147 : memref<!tpu.dma_semaphore, #tpu.memory_space<semaphore_mem>>)
    } else {
    }
    %c1_i32_7 = arith.constant 1 : i32
    %16 = arith.cmpi eq, %arg1, %c1_i32_7 : i32
    %c1_i32_8 = arith.constant 1 : i32
    %17 = arith.cmpi eq, %arg0, %c1_i32_8 : i32
    %18 = arith.andi %16, %17 : i1
    %true = arith.constant true
    %19 = arith.xori %18, %true : i1
    %20 = arith.extui %19 : i1 to i32
    %c0_i32_9 = arith.constant 0 : i32
    %21 = arith.cmpi ne, %20, %c0_i32_9 : i32
    scf.if %21 {
      %c1_i32_162 = arith.constant 1 : i32
      %141 = arith.addi %arg0, %c1_i32_162 : i32
      %142 = arith.select %16, %141, %arg0 : i32
      %c1_i32_163 = arith.constant 1 : i32
      %143 = arith.addi %arg1, %c1_i32_163 : i32
      %c0_i32_164 = arith.constant 0 : i32
      %144 = arith.select %16, %c0_i32_164, %143 : i32
      %c8_i32_165 = arith.constant 8 : i32
      %145 = arith.muli %144, %c8_i32_165 : i32
      %c0_i32_166 = arith.constant 0 : i32
      %c0_i32_167 = arith.constant 0 : i32
      %146 = tpu.memref_slice %arg2[%142, %145, %c0_i32_166, %c0_i32_167] : memref<2x20x24x128xf32, #tpu.memory_space<any>> -> memref<1x12x24x128xf32, #tpu.memory_space<any>>
      %147 = tpu.memref_squeeze %146 : memref<1x12x24x128xf32, #tpu.memory_space<any>> -> memref<12x24x128xf32, #tpu.memory_space<any>>
      %c0_i32_168 = arith.constant 0 : i32
      %c0_i32_169 = arith.constant 0 : i32
      %c0_i32_170 = arith.constant 0 : i32
      %148 = tpu.memref_slice %arg10[%12, %c0_i32_168, %c0_i32_169, %c0_i32_170] : memref<2x12x24x128xf32, #tpu.memory_space<vmem>> -> memref<1x12x24x128xf32, #tpu.memory_space<vmem>>
      %149 = tpu.memref_squeeze %148 : memref<1x12x24x128xf32, #tpu.memory_space<vmem>> -> memref<12x24x128xf32, #tpu.memory_space<vmem>>
      %150 = tpu.memref_slice %arg13[%12] : memref<2x!tpu.dma_semaphore, #tpu.memory_space<semaphore_mem>> -> memref<1x!tpu.dma_semaphore, #tpu.memory_space<semaphore_mem>>
      %151 = tpu.memref_squeeze %150 : memref<1x!tpu.dma_semaphore, #tpu.memory_space<semaphore_mem>> -> memref<!tpu.dma_semaphore, #tpu.memory_space<semaphore_mem>>
      tpu.enqueue_dma source(%147 : memref<12x24x128xf32, #tpu.memory_space<any>>) target(%149 : memref<12x24x128xf32, #tpu.memory_space<vmem>>) target_semaphore(%151 : memref<!tpu.dma_semaphore, #tpu.memory_space<semaphore_mem>>)
    } else {
    }
    %c8_i32 = arith.constant 8 : i32
    %22 = arith.muli %arg1, %c8_i32 : i32
    %c0_i32_10 = arith.constant 0 : i32
    %c0_i32_11 = arith.constant 0 : i32
    %23 = tpu.memref_slice %arg2[%arg0, %22, %c0_i32_10, %c0_i32_11] : memref<2x20x24x128xf32, #tpu.memory_space<any>> -> memref<1x12x24x128xf32, #tpu.memory_space<any>>
    %24 = tpu.memref_squeeze %23 : memref<1x12x24x128xf32, #tpu.memory_space<any>> -> memref<12x24x128xf32, #tpu.memory_space<any>>
    %c0_i32_12 = arith.constant 0 : i32
    %c0_i32_13 = arith.constant 0 : i32
    %c0_i32_14 = arith.constant 0 : i32
    %25 = tpu.memref_slice %arg10[%11, %c0_i32_12, %c0_i32_13, %c0_i32_14] : memref<2x12x24x128xf32, #tpu.memory_space<vmem>> -> memref<1x12x24x128xf32, #tpu.memory_space<vmem>>
    %26 = tpu.memref_squeeze %25 : memref<1x12x24x128xf32, #tpu.memory_space<vmem>> -> memref<12x24x128xf32, #tpu.memory_space<vmem>>
    %27 = tpu.memref_slice %arg13[%11] : memref<2x!tpu.dma_semaphore, #tpu.memory_space<semaphore_mem>> -> memref<1x!tpu.dma_semaphore, #tpu.memory_space<semaphore_mem>>
    %28 = tpu.memref_squeeze %27 : memref<1x!tpu.dma_semaphore, #tpu.memory_space<semaphore_mem>> -> memref<!tpu.dma_semaphore, #tpu.memory_space<semaphore_mem>>
    tpu.wait_dma2 semaphore(%28 : memref<!tpu.dma_semaphore, #tpu.memory_space<semaphore_mem>>) src(%24 : memref<12x24x128xf32, #tpu.memory_space<any>>) dst(%26 : memref<12x24x128xf32, #tpu.memory_space<vmem>>)
    %c0_i32_15 = arith.constant 0 : i32
    %c0_i32_16 = arith.constant 0 : i32
    %c0_i32_17 = arith.constant 0 : i32
    %29 = tpu.memref_slice %arg10[%11, %c0_i32_15, %c0_i32_16, %c0_i32_17] : memref<2x12x24x128xf32, #tpu.memory_space<vmem>> -> memref<1x12x24x128xf32, #tpu.memory_space<vmem>>
    %30 = tpu.memref_squeeze %29 : memref<1x12x24x128xf32, #tpu.memory_space<vmem>> -> memref<12x24x128xf32, #tpu.memory_space<vmem>>
    %c0 = arith.constant 0 : index
    %c0_18 = arith.constant 0 : index
    %c0_19 = arith.constant 0 : index
    %31 = vector.load %30[%c0, %c0_18, %c0_19] : memref<12x24x128xf32, #tpu.memory_space<vmem>>, vector<10x16x128xf32>
    %32 = vector.shape_cast %31 : vector<10x16x128xf32> to vector<160x128xf32>
    %c0_20 = arith.constant 0 : index
    %c0_21 = arith.constant 0 : index
    %33 = vector.load %arg12[%c0_20, %c0_21] : memref<160x1152xf32, #tpu.memory_space<vmem>>, vector<160x128xf32>
    tpu.vector_store %arg12[%c0_20, %c0_21], %32 {strides = array<i32>} : memref<160x1152xf32, #tpu.memory_space<vmem>>, vector<160x128xf32>,
    %c0_i32_22 = arith.constant 0 : i32
    %c0_i32_23 = arith.constant 0 : i32
    %c0_i32_24 = arith.constant 0 : i32
    %34 = tpu.memref_slice %arg10[%11, %c0_i32_22, %c0_i32_23, %c0_i32_24] : memref<2x12x24x128xf32, #tpu.memory_space<vmem>> -> memref<1x12x24x128xf32, #tpu.memory_space<vmem>>
    %35 = tpu.memref_squeeze %34 : memref<1x12x24x128xf32, #tpu.memory_space<vmem>> -> memref<12x24x128xf32, #tpu.memory_space<vmem>>
    %c0_25 = arith.constant 0 : index
    %c1 = arith.constant 1 : index
    %c0_26 = arith.constant 0 : index
    %36 = vector.load %35[%c0_25, %c1, %c0_26] : memref<12x24x128xf32, #tpu.memory_space<vmem>>, vector<10x16x128xf32>
    %37 = vector.shape_cast %36 : vector<10x16x128xf32> to vector<160x128xf32>
    %c0_27 = arith.constant 0 : index
    %c128 = arith.constant 128 : index
    %38 = vector.load %arg12[%c0_27, %c128] : memref<160x1152xf32, #tpu.memory_space<vmem>>, vector<160x128xf32>
    tpu.vector_store %arg12[%c0_27, %c128], %37 {strides = array<i32>} : memref<160x1152xf32, #tpu.memory_space<vmem>>, vector<160x128xf32>,
    %c0_i32_28 = arith.constant 0 : i32
    %c0_i32_29 = arith.constant 0 : i32
    %c0_i32_30 = arith.constant 0 : i32
    %39 = tpu.memref_slice %arg10[%11, %c0_i32_28, %c0_i32_29, %c0_i32_30] : memref<2x12x24x128xf32, #tpu.memory_space<vmem>> -> memref<1x12x24x128xf32, #tpu.memory_space<vmem>>
    %40 = tpu.memref_squeeze %39 : memref<1x12x24x128xf32, #tpu.memory_space<vmem>> -> memref<12x24x128xf32, #tpu.memory_space<vmem>>
    %c0_31 = arith.constant 0 : index
    %c2 = arith.constant 2 : index
    %c0_32 = arith.constant 0 : index
    %41 = vector.load %40[%c0_31, %c2, %c0_32] : memref<12x24x128xf32, #tpu.memory_space<vmem>>, vector<10x16x128xf32>
    %42 = vector.shape_cast %41 : vector<10x16x128xf32> to vector<160x128xf32>
    %c0_33 = arith.constant 0 : index
    %c256 = arith.constant 256 : index
    %43 = vector.load %arg12[%c0_33, %c256] : memref<160x1152xf32, #tpu.memory_space<vmem>>, vector<160x128xf32>
    tpu.vector_store %arg12[%c0_33, %c256], %42 {strides = array<i32>} : memref<160x1152xf32, #tpu.memory_space<vmem>>, vector<160x128xf32>,
    %c0_i32_34 = arith.constant 0 : i32
    %c0_i32_35 = arith.constant 0 : i32
    %c0_i32_36 = arith.constant 0 : i32
    %44 = tpu.memref_slice %arg10[%11, %c0_i32_34, %c0_i32_35, %c0_i32_36] : memref<2x12x24x128xf32, #tpu.memory_space<vmem>> -> memref<1x12x24x128xf32, #tpu.memory_space<vmem>>
    %45 = tpu.memref_squeeze %44 : memref<1x12x24x128xf32, #tpu.memory_space<vmem>> -> memref<12x24x128xf32, #tpu.memory_space<vmem>>
    %c1_37 = arith.constant 1 : index
    %c0_38 = arith.constant 0 : index
    %c0_39 = arith.constant 0 : index
    %46 = vector.load %45[%c1_37, %c0_38, %c0_39] : memref<12x24x128xf32, #tpu.memory_space<vmem>>, vector<10x16x128xf32>
    %47 = vector.shape_cast %46 : vector<10x16x128xf32> to vector<160x128xf32>
    %c0_40 = arith.constant 0 : index
    %c384 = arith.constant 384 : index
    %48 = vector.load %arg12[%c0_40, %c384] : memref<160x1152xf32, #tpu.memory_space<vmem>>, vector<160x128xf32>
    tpu.vector_store %arg12[%c0_40, %c384], %47 {strides = array<i32>} : memref<160x1152xf32, #tpu.memory_space<vmem>>, vector<160x128xf32>,
    %c0_i32_41 = arith.constant 0 : i32
    %c0_i32_42 = arith.constant 0 : i32
    %c0_i32_43 = arith.constant 0 : i32
    %49 = tpu.memref_slice %arg10[%11, %c0_i32_41, %c0_i32_42, %c0_i32_43] : memref<2x12x24x128xf32, #tpu.memory_space<vmem>> -> memref<1x12x24x128xf32, #tpu.memory_space<vmem>>
    %50 = tpu.memref_squeeze %49 : memref<1x12x24x128xf32, #tpu.memory_space<vmem>> -> memref<12x24x128xf32, #tpu.memory_space<vmem>>
    %c1_44 = arith.constant 1 : index
    %c1_45 = arith.constant 1 : index
    %c0_46 = arith.constant 0 : index
    %51 = vector.load %50[%c1_44, %c1_45, %c0_46] : memref<12x24x128xf32, #tpu.memory_space<vmem>>, vector<10x16x128xf32>
    %52 = vector.shape_cast %51 : vector<10x16x128xf32> to vector<160x128xf32>
    %c0_47 = arith.constant 0 : index
    %c512 = arith.constant 512 : index
    %53 = vector.load %arg12[%c0_47, %c512] : memref<160x1152xf32, #tpu.memory_space<vmem>>, vector<160x128xf32>
    tpu.vector_store %arg12[%c0_47, %c512], %52 {strides = array<i32>} : memref<160x1152xf32, #tpu.memory_space<vmem>>, vector<160x128xf32>,
    %c0_i32_48 = arith.constant 0 : i32
    %c0_i32_49 = arith.constant 0 : i32
    %c0_i32_50 = arith.constant 0 : i32
    %54 = tpu.memref_slice %arg10[%11, %c0_i32_48, %c0_i32_49, %c0_i32_50] : memref<2x12x24x128xf32, #tpu.memory_space<vmem>> -> memref<1x12x24x128xf32, #tpu.memory_space<vmem>>
    %55 = tpu.memref_squeeze %54 : memref<1x12x24x128xf32, #tpu.memory_space<vmem>> -> memref<12x24x128xf32, #tpu.memory_space<vmem>>
    %c1_51 = arith.constant 1 : index
    %c2_52 = arith.constant 2 : index
    %c0_53 = arith.constant 0 : index
    %56 = vector.load %55[%c1_51, %c2_52, %c0_53] : memref<12x24x128xf32, #tpu.memory_space<vmem>>, vector<10x16x128xf32>
    %57 = vector.shape_cast %56 : vector<10x16x128xf32> to vector<160x128xf32>
    %c0_54 = arith.constant 0 : index
    %c640 = arith.constant 640 : index
    %58 = vector.load %arg12[%c0_54, %c640] : memref<160x1152xf32, #tpu.memory_space<vmem>>, vector<160x128xf32>
    tpu.vector_store %arg12[%c0_54, %c640], %57 {strides = array<i32>} : memref<160x1152xf32, #tpu.memory_space<vmem>>, vector<160x128xf32>,
    %c0_i32_55 = arith.constant 0 : i32
    %c0_i32_56 = arith.constant 0 : i32
    %c0_i32_57 = arith.constant 0 : i32
    %59 = tpu.memref_slice %arg10[%11, %c0_i32_55, %c0_i32_56, %c0_i32_57] : memref<2x12x24x128xf32, #tpu.memory_space<vmem>> -> memref<1x12x24x128xf32, #tpu.memory_space<vmem>>
    %60 = tpu.memref_squeeze %59 : memref<1x12x24x128xf32, #tpu.memory_space<vmem>> -> memref<12x24x128xf32, #tpu.memory_space<vmem>>
    %c2_58 = arith.constant 2 : index
    %c0_59 = arith.constant 0 : index
    %c0_60 = arith.constant 0 : index
    %61 = vector.load %60[%c2_58, %c0_59, %c0_60] : memref<12x24x128xf32, #tpu.memory_space<vmem>>, vector<10x16x128xf32>
    %62 = vector.shape_cast %61 : vector<10x16x128xf32> to vector<160x128xf32>
    %c0_61 = arith.constant 0 : index
    %c768 = arith.constant 768 : index
    %63 = vector.load %arg12[%c0_61, %c768] : memref<160x1152xf32, #tpu.memory_space<vmem>>, vector<160x128xf32>
    tpu.vector_store %arg12[%c0_61, %c768], %62 {strides = array<i32>} : memref<160x1152xf32, #tpu.memory_space<vmem>>, vector<160x128xf32>,
    %c0_i32_62 = arith.constant 0 : i32
    %c0_i32_63 = arith.constant 0 : i32
    %c0_i32_64 = arith.constant 0 : i32
    %64 = tpu.memref_slice %arg10[%11, %c0_i32_62, %c0_i32_63, %c0_i32_64] : memref<2x12x24x128xf32, #tpu.memory_space<vmem>> -> memref<1x12x24x128xf32, #tpu.memory_space<vmem>>
    %65 = tpu.memref_squeeze %64 : memref<1x12x24x128xf32, #tpu.memory_space<vmem>> -> memref<12x24x128xf32, #tpu.memory_space<vmem>>
    %c2_65 = arith.constant 2 : index
    %c1_66 = arith.constant 1 : index
    %c0_67 = arith.constant 0 : index
    %66 = vector.load %65[%c2_65, %c1_66, %c0_67] : memref<12x24x128xf32, #tpu.memory_space<vmem>>, vector<10x16x128xf32>
    %67 = vector.shape_cast %66 : vector<10x16x128xf32> to vector<160x128xf32>
    %c0_68 = arith.constant 0 : index
    %c896 = arith.constant 896 : index
    %68 = vector.load %arg12[%c0_68, %c896] : memref<160x1152xf32, #tpu.memory_space<vmem>>, vector<160x128xf32>
    tpu.vector_store %arg12[%c0_68, %c896], %67 {strides = array<i32>} : memref<160x1152xf32, #tpu.memory_space<vmem>>, vector<160x128xf32>,
    %c0_i32_69 = arith.constant 0 : i32
    %c0_i32_70 = arith.constant 0 : i32
    %c0_i32_71 = arith.constant 0 : i32
    %69 = tpu.memref_slice %arg10[%11, %c0_i32_69, %c0_i32_70, %c0_i32_71] : memref<2x12x24x128xf32, #tpu.memory_space<vmem>> -> memref<1x12x24x128xf32, #tpu.memory_space<vmem>>
    %70 = tpu.memref_squeeze %69 : memref<1x12x24x128xf32, #tpu.memory_space<vmem>> -> memref<12x24x128xf32, #tpu.memory_space<vmem>>
    %c2_72 = arith.constant 2 : index
    %c2_73 = arith.constant 2 : index
    %c0_74 = arith.constant 0 : index
    %71 = vector.load %70[%c2_72, %c2_73, %c0_74] : memref<12x24x128xf32, #tpu.memory_space<vmem>>, vector<10x16x128xf32>
    %72 = vector.shape_cast %71 : vector<10x16x128xf32> to vector<160x128xf32>
    %c0_75 = arith.constant 0 : index
    %c1024 = arith.constant 1024 : index
    %73 = vector.load %arg12[%c0_75, %c1024] : memref<160x1152xf32, #tpu.memory_space<vmem>>, vector<160x128xf32>
    tpu.vector_store %arg12[%c0_75, %c1024], %72 {strides = array<i32>} : memref<160x1152xf32, #tpu.memory_space<vmem>>, vector<160x128xf32>,
    %c0_76 = arith.constant 0 : index
    %c0_77 = arith.constant 0 : index
    %74 = vector.load %arg12[%c0_76, %c0_77] : memref<160x1152xf32, #tpu.memory_space<vmem>>, vector<160x1152xf32>
    %c0_78 = arith.constant 0 : index
    %c0_79 = arith.constant 0 : index
    %75 = vector.load %arg3[%c0_78, %c0_79] : memref<1152x128xf32, #tpu.memory_space<vmem>>, vector<1152x128xf32>
    %cst = arith.constant dense<0.000000e+00> : vector<160x128xf32>
    %76 = tpu.matmul %74, %75, %cst {dimension_numbers = #tpu.dot_dimension_numbers<[1], [0], [0], [1], [0, 0, 1, 1], [], []>} : vector<160x1152xf32>, vector<1152x128xf32>, vector<160x128xf32> -> vector<160x128xf32>
    %c0_80 = arith.constant 0 : index
    %c0_81 = arith.constant 0 : index
    %77 = vector.load %arg4[%c0_80, %c0_81] : memref<1x128xf32, #tpu.memory_space<vmem>>, vector<1x128xf32>
    %78 = vector.broadcast %77 : vector<1x128xf32> to vector<160x128xf32>
    %79 = arith.mulf %76, %78 : vector<160x128xf32>
    %c0_82 = arith.constant 0 : index
    %c0_83 = arith.constant 0 : index
    %80 = vector.load %arg5[%c0_82, %c0_83] : memref<1x128xf32, #tpu.memory_space<vmem>>, vector<1x128xf32>
    %81 = vector.broadcast %80 : vector<1x128xf32> to vector<160x128xf32>
    %82 = arith.addf %79, %81 : vector<160x128xf32>
    %cst_84 = arith.constant 0.000000e+00 : f32
    %83 = vector.broadcast %cst_84 : f32 to vector<160x128xf32>
    %84 = arith.maximumf %82, %83 : vector<160x128xf32>
    %85 = vector.shape_cast %84 : vector<160x128xf32> to vector<10x16x128xf32>
    %c0_85 = arith.constant 0 : index
    %c1_86 = arith.constant 1 : index
    %c0_87 = arith.constant 0 : index
    %86 = vector.load %arg11[%c0_85, %c1_86, %c0_87] : memref<10x24x128xf32, #tpu.memory_space<vmem>>, vector<10x16x128xf32>
    tpu.vector_store %arg11[%c0_85, %c1_86, %c0_87], %85 {strides = array<i32>} : memref<10x24x128xf32, #tpu.memory_space<vmem>>, vector<10x16x128xf32>,
    %cst_88 = arith.constant 0.000000e+00 : f32
    %87 = vector.broadcast %cst_88 : f32 to vector<10x1x128xf32>
    %c0_89 = arith.constant 0 : index
    %c0_90 = arith.constant 0 : index
    %c0_91 = arith.constant 0 : index
    %88 = vector.load %arg11[%c0_89, %c0_90, %c0_91] : memref<10x24x128xf32, #tpu.memory_space<vmem>>, vector<10x1x128xf32>
    tpu.vector_store %arg11[%c0_89, %c0_90, %c0_91], %87 {strides = array<i32>} : memref<10x24x128xf32, #tpu.memory_space<vmem>>, vector<10x1x128xf32>,
    %c0_92 = arith.constant 0 : index
    %c17 = arith.constant 17 : index
    %c0_93 = arith.constant 0 : index
    %89 = vector.load %arg11[%c0_92, %c17, %c0_93] : memref<10x24x128xf32, #tpu.memory_space<vmem>>, vector<10x1x128xf32>
    tpu.vector_store %arg11[%c0_92, %c17, %c0_93], %87 {strides = array<i32>} : memref<10x24x128xf32, #tpu.memory_space<vmem>>, vector<10x1x128xf32>,
    %c0_i32_94 = arith.constant 0 : i32
    %90 = arith.cmpi eq, %arg1, %c0_i32_94 : i32
    %91 = arith.extui %90 : i1 to i32
    %c0_i32_95 = arith.constant 0 : i32
    %92 = arith.cmpi ne, %91, %c0_i32_95 : i32
    scf.if %92 {
      %cst_162 = arith.constant 0.000000e+00 : f32
      %141 = vector.broadcast %cst_162 : f32 to vector<1x24x128xf32>
      %c0_163 = arith.constant 0 : index
      %c0_164 = arith.constant 0 : index
      %c0_165 = arith.constant 0 : index
      %142 = vector.load %arg11[%c0_163, %c0_164, %c0_165] : memref<10x24x128xf32, #tpu.memory_space<vmem>>, vector<1x24x128xf32>
      tpu.vector_store %arg11[%c0_163, %c0_164, %c0_165], %141 {strides = array<i32>} : memref<10x24x128xf32, #tpu.memory_space<vmem>>, vector<1x24x128xf32>,
    } else {
    }
    %c1_i32_96 = arith.constant 1 : i32
    %93 = arith.cmpi eq, %arg1, %c1_i32_96 : i32
    %94 = arith.extui %93 : i1 to i32
    %c0_i32_97 = arith.constant 0 : i32
    %95 = arith.cmpi ne, %94, %c0_i32_97 : i32
    scf.if %95 {
      %cst_162 = arith.constant 0.000000e+00 : f32
      %141 = vector.broadcast %cst_162 : f32 to vector<1x24x128xf32>
      %c9 = arith.constant 9 : index
      %c0_163 = arith.constant 0 : index
      %c0_164 = arith.constant 0 : index
      %142 = vector.load %arg11[%c9, %c0_163, %c0_164] : memref<10x24x128xf32, #tpu.memory_space<vmem>>, vector<1x24x128xf32>
      tpu.vector_store %arg11[%c9, %c0_163, %c0_164], %141 {strides = array<i32>} : memref<10x24x128xf32, #tpu.memory_space<vmem>>, vector<1x24x128xf32>,
    } else {
    }
    %c0_98 = arith.constant 0 : index
    %c0_99 = arith.constant 0 : index
    %c0_100 = arith.constant 0 : index
    %96 = vector.load %arg11[%c0_98, %c0_99, %c0_100] : memref<10x24x128xf32, #tpu.memory_space<vmem>>, vector<8x16x128xf32>
    %97 = vector.shape_cast %96 : vector<8x16x128xf32> to vector<128x128xf32>
    %c0_101 = arith.constant 0 : index
    %c0_102 = arith.constant 0 : index
    %98 = vector.load %arg12[%c0_101, %c0_102] : memref<160x1152xf32, #tpu.memory_space<vmem>>, vector<128x128xf32>
    tpu.vector_store %arg12[%c0_101, %c0_102], %97 {strides = array<i32>} : memref<160x1152xf32, #tpu.memory_space<vmem>>, vector<128x128xf32>,
    %c0_103 = arith.constant 0 : index
    %c1_104 = arith.constant 1 : index
    %c0_105 = arith.constant 0 : index
    %99 = vector.load %arg11[%c0_103, %c1_104, %c0_105] : memref<10x24x128xf32, #tpu.memory_space<vmem>>, vector<8x16x128xf32>
    %100 = vector.shape_cast %99 : vector<8x16x128xf32> to vector<128x128xf32>
    %c0_106 = arith.constant 0 : index
    %c128_107 = arith.constant 128 : index
    %101 = vector.load %arg12[%c0_106, %c128_107] : memref<160x1152xf32, #tpu.memory_space<vmem>>, vector<128x128xf32>
    tpu.vector_store %arg12[%c0_106, %c128_107], %100 {strides = array<i32>} : memref<160x1152xf32, #tpu.memory_space<vmem>>, vector<128x128xf32>,
    %c0_108 = arith.constant 0 : index
    %c2_109 = arith.constant 2 : index
    %c0_110 = arith.constant 0 : index
    %102 = vector.load %arg11[%c0_108, %c2_109, %c0_110] : memref<10x24x128xf32, #tpu.memory_space<vmem>>, vector<8x16x128xf32>
    %103 = vector.shape_cast %102 : vector<8x16x128xf32> to vector<128x128xf32>
    %c0_111 = arith.constant 0 : index
    %c256_112 = arith.constant 256 : index
    %104 = vector.load %arg12[%c0_111, %c256_112] : memref<160x1152xf32, #tpu.memory_space<vmem>>, vector<128x128xf32>
    tpu.vector_store %arg12[%c0_111, %c256_112], %103 {strides = array<i32>} : memref<160x1152xf32, #tpu.memory_space<vmem>>, vector<128x128xf32>,
    %c1_113 = arith.constant 1 : index
    %c0_114 = arith.constant 0 : index
    %c0_115 = arith.constant 0 : index
    %105 = vector.load %arg11[%c1_113, %c0_114, %c0_115] : memref<10x24x128xf32, #tpu.memory_space<vmem>>, vector<8x16x128xf32>
    %106 = vector.shape_cast %105 : vector<8x16x128xf32> to vector<128x128xf32>
    %c0_116 = arith.constant 0 : index
    %c384_117 = arith.constant 384 : index
    %107 = vector.load %arg12[%c0_116, %c384_117] : memref<160x1152xf32, #tpu.memory_space<vmem>>, vector<128x128xf32>
    tpu.vector_store %arg12[%c0_116, %c384_117], %106 {strides = array<i32>} : memref<160x1152xf32, #tpu.memory_space<vmem>>, vector<128x128xf32>,
    %c1_118 = arith.constant 1 : index
    %c1_119 = arith.constant 1 : index
    %c0_120 = arith.constant 0 : index
    %108 = vector.load %arg11[%c1_118, %c1_119, %c0_120] : memref<10x24x128xf32, #tpu.memory_space<vmem>>, vector<8x16x128xf32>
    %109 = vector.shape_cast %108 : vector<8x16x128xf32> to vector<128x128xf32>
    %c0_121 = arith.constant 0 : index
    %c512_122 = arith.constant 512 : index
    %110 = vector.load %arg12[%c0_121, %c512_122] : memref<160x1152xf32, #tpu.memory_space<vmem>>, vector<128x128xf32>
    tpu.vector_store %arg12[%c0_121, %c512_122], %109 {strides = array<i32>} : memref<160x1152xf32, #tpu.memory_space<vmem>>, vector<128x128xf32>,
    %c1_123 = arith.constant 1 : index
    %c2_124 = arith.constant 2 : index
    %c0_125 = arith.constant 0 : index
    %111 = vector.load %arg11[%c1_123, %c2_124, %c0_125] : memref<10x24x128xf32, #tpu.memory_space<vmem>>, vector<8x16x128xf32>
    %112 = vector.shape_cast %111 : vector<8x16x128xf32> to vector<128x128xf32>
    %c0_126 = arith.constant 0 : index
    %c640_127 = arith.constant 640 : index
    %113 = vector.load %arg12[%c0_126, %c640_127] : memref<160x1152xf32, #tpu.memory_space<vmem>>, vector<128x128xf32>
    tpu.vector_store %arg12[%c0_126, %c640_127], %112 {strides = array<i32>} : memref<160x1152xf32, #tpu.memory_space<vmem>>, vector<128x128xf32>,
    %c2_128 = arith.constant 2 : index
    %c0_129 = arith.constant 0 : index
    %c0_130 = arith.constant 0 : index
    %114 = vector.load %arg11[%c2_128, %c0_129, %c0_130] : memref<10x24x128xf32, #tpu.memory_space<vmem>>, vector<8x16x128xf32>
    %115 = vector.shape_cast %114 : vector<8x16x128xf32> to vector<128x128xf32>
    %c0_131 = arith.constant 0 : index
    %c768_132 = arith.constant 768 : index
    %116 = vector.load %arg12[%c0_131, %c768_132] : memref<160x1152xf32, #tpu.memory_space<vmem>>, vector<128x128xf32>
    tpu.vector_store %arg12[%c0_131, %c768_132], %115 {strides = array<i32>} : memref<160x1152xf32, #tpu.memory_space<vmem>>, vector<128x128xf32>,
    %c2_133 = arith.constant 2 : index
    %c1_134 = arith.constant 1 : index
    %c0_135 = arith.constant 0 : index
    %117 = vector.load %arg11[%c2_133, %c1_134, %c0_135] : memref<10x24x128xf32, #tpu.memory_space<vmem>>, vector<8x16x128xf32>
    %118 = vector.shape_cast %117 : vector<8x16x128xf32> to vector<128x128xf32>
    %c0_136 = arith.constant 0 : index
    %c896_137 = arith.constant 896 : index
    %119 = vector.load %arg12[%c0_136, %c896_137] : memref<160x1152xf32, #tpu.memory_space<vmem>>, vector<128x128xf32>
    tpu.vector_store %arg12[%c0_136, %c896_137], %118 {strides = array<i32>} : memref<160x1152xf32, #tpu.memory_space<vmem>>, vector<128x128xf32>,
    %c2_138 = arith.constant 2 : index
    %c2_139 = arith.constant 2 : index
    %c0_140 = arith.constant 0 : index
    %120 = vector.load %arg11[%c2_138, %c2_139, %c0_140] : memref<10x24x128xf32, #tpu.memory_space<vmem>>, vector<8x16x128xf32>
    %121 = vector.shape_cast %120 : vector<8x16x128xf32> to vector<128x128xf32>
    %c0_141 = arith.constant 0 : index
    %c1024_142 = arith.constant 1024 : index
    %122 = vector.load %arg12[%c0_141, %c1024_142] : memref<160x1152xf32, #tpu.memory_space<vmem>>, vector<128x128xf32>
    tpu.vector_store %arg12[%c0_141, %c1024_142], %121 {strides = array<i32>} : memref<160x1152xf32, #tpu.memory_space<vmem>>, vector<128x128xf32>,
    %c0_143 = arith.constant 0 : index
    %c0_144 = arith.constant 0 : index
    %123 = vector.load %arg12[%c0_143, %c0_144] : memref<160x1152xf32, #tpu.memory_space<vmem>>, vector<128x1152xf32>
    %c0_145 = arith.constant 0 : index
    %c0_146 = arith.constant 0 : index
    %124 = vector.load %arg6[%c0_145, %c0_146] : memref<1152x128xf32, #tpu.memory_space<vmem>>, vector<1152x128xf32>
    %cst_147 = arith.constant dense<0.000000e+00> : vector<128x128xf32>
    %125 = tpu.matmul %123, %124, %cst_147 {dimension_numbers = #tpu.dot_dimension_numbers<[1], [0], [0], [1], [0, 0, 1, 1], [], []>} : vector<128x1152xf32>, vector<1152x128xf32>, vector<128x128xf32> -> vector<128x128xf32>
    %c0_148 = arith.constant 0 : index
    %c0_149 = arith.constant 0 : index
    %126 = vector.load %arg7[%c0_148, %c0_149] : memref<1x128xf32, #tpu.memory_space<vmem>>, vector<1x128xf32>
    %127 = vector.broadcast %126 : vector<1x128xf32> to vector<128x128xf32>
    %128 = arith.mulf %125, %127 : vector<128x128xf32>
    %c0_150 = arith.constant 0 : index
    %c0_151 = arith.constant 0 : index
    %129 = vector.load %arg8[%c0_150, %c0_151] : memref<1x128xf32, #tpu.memory_space<vmem>>, vector<1x128xf32>
    %130 = vector.broadcast %129 : vector<1x128xf32> to vector<128x128xf32>
    %131 = arith.addf %128, %130 : vector<128x128xf32>
    %c0_i32_152 = arith.constant 0 : i32
    %c0_i32_153 = arith.constant 0 : i32
    %c0_i32_154 = arith.constant 0 : i32
    %132 = tpu.memref_slice %arg10[%11, %c0_i32_152, %c0_i32_153, %c0_i32_154] : memref<2x12x24x128xf32, #tpu.memory_space<vmem>> -> memref<1x12x24x128xf32, #tpu.memory_space<vmem>>
    %133 = tpu.memref_squeeze %132 : memref<1x12x24x128xf32, #tpu.memory_space<vmem>> -> memref<12x24x128xf32, #tpu.memory_space<vmem>>
    %c2_155 = arith.constant 2 : index
    %c1_156 = arith.constant 1 : index
    %c0_157 = arith.constant 0 : index
    %134 = vector.load %133[%c2_155, %c1_156, %c0_157] : memref<12x24x128xf32, #tpu.memory_space<vmem>>, vector<8x16x128xf32>
    %135 = vector.shape_cast %134 : vector<8x16x128xf32> to vector<128x128xf32>
    %136 = arith.addf %131, %135 : vector<128x128xf32>
    %cst_158 = arith.constant 0.000000e+00 : f32
    %137 = vector.broadcast %cst_158 : f32 to vector<128x128xf32>
    %138 = arith.maximumf %136, %137 : vector<128x128xf32>
    %139 = vector.shape_cast %138 : vector<128x128xf32> to vector<1x128x128xf32>
    %c0_159 = arith.constant 0 : index
    %c0_160 = arith.constant 0 : index
    %c0_161 = arith.constant 0 : index
    %140 = vector.load %arg9[%c0_159, %c0_160, %c0_161] : memref<1x128x128xf32, #tpu.memory_space<vmem>>, vector<1x128x128xf32>
    tpu.vector_store %arg9[%c0_159, %c0_160, %c0_161], %139 {strides = array<i32>} : memref<1x128x128xf32, #tpu.memory_space<vmem>>, vector<1x128x128xf32>,
    return
  }
  func.func @transform_1(%arg0: i32, %arg1: i32) -> (i32, i32) {
    %c0_i32 = arith.constant 0 : i32
    %c0_i32_0 = arith.constant 0 : i32
    %c0_i32_1 = arith.constant 0 : i32
    return %c0_i32, %c0_i32_0 : i32, i32
  }
  func.func @transform_2(%arg0: i32, %arg1: i32) -> (i32, i32) {
    %c0_i32 = arith.constant 0 : i32
    %c0_i32_0 = arith.constant 0 : i32
    %c0_i32_1 = arith.constant 0 : i32
    return %c0_i32, %c0_i32_0 : i32, i32
  }
  func.func @transform_3(%arg0: i32, %arg1: i32) -> (i32, i32) {
    %c0_i32 = arith.constant 0 : i32
    %c0_i32_0 = arith.constant 0 : i32
    %c0_i32_1 = arith.constant 0 : i32
    return %c0_i32, %c0_i32_0 : i32, i32
  }
  func.func @transform_4(%arg0: i32, %arg1: i32) -> (i32, i32) {
    %c0_i32 = arith.constant 0 : i32
    %c0_i32_0 = arith.constant 0 : i32
    %c0_i32_1 = arith.constant 0 : i32
    return %c0_i32, %c0_i32_0 : i32, i32
  }
  func.func @transform_5(%arg0: i32, %arg1: i32) -> (i32, i32) {
    %c0_i32 = arith.constant 0 : i32
    %c0_i32_0 = arith.constant 0 : i32
    %c0_i32_1 = arith.constant 0 : i32
    return %c0_i32, %c0_i32_0 : i32, i32
  }
  func.func @transform_6(%arg0: i32, %arg1: i32) -> (i32, i32) {
    %c0_i32 = arith.constant 0 : i32
    %c0_i32_0 = arith.constant 0 : i32
    %c0_i32_1 = arith.constant 0 : i32
    return %c0_i32, %c0_i32_0 : i32, i32
  }
  func.func @transform_7(%arg0: i32, %arg1: i32) -> (i32, i32, i32) {
    %c0_i32 = arith.constant 0 : i32
    %c0_i32_0 = arith.constant 0 : i32
    return %arg0, %arg1, %c0_i32 : i32, i32, i32
  }
}

</mosaic_0001>

<bundles_post_ra>
// kernel: tpu_custom_call.1
= control target key start
LH: loop header
LB: loop body
LE: loop exit
PB: predicated region body
PF: predicated region fallthrough
CT: control target
= control target key end

     0   :  { %s6217_s0 = inlined_call_operand.hbm [shape: f32[2,20,24,128], index: 0, kind: input, shape index: {}]   ;;  %s6218_s1 = inlined_call_operand.hbm [shape: f32[1152,128], index: 1, kind: input, shape index: {}]   ;;  %s6219_s2 = inlined_call_operand.vmem [shape: f32[1,128], index: 2, kind: input, shape index: {}]   ;;  %s6220_s3 = inlined_call_operand.vmem [shape: f32[1,128], index: 3, kind: input, shape index: {}]   ;;  %s6221_s4 = inlined_call_operand.hbm [shape: f32[1152,128], index: 4, kind: input, shape index: {}]   ;;  %s6222_s5 = inlined_call_operand.vmem [shape: f32[1,128], index: 5, kind: input, shape index: {}]   ;;  %s6223_s6 = inlined_call_operand.vmem [shape: f32[1,128], index: 6, kind: input, shape index: {}]   ;;  %s6224_s7 = inlined_call_operand.hbm [shape: f32[2,256,128], index: 7, kind: output, shape index: {}]  }
   0x1   :  { %6245 = sst [smem:[#allocation50_spill]] %s6218_s1 }
   0x2   :  { %6246 = sst [smem:[#allocation51_spill]] %s6221_s4 }
   0x3   :  { %12 = vsyncpa [#allocation7], 0 }
   0x4   :  { %13 = vsyncpa [#allocation10], 0 }
   0x5   :  { %14 = vsyncpa [#allocation8], 0 }
   0x6   :  { %16 = vsyncpa [#allocation8 + $0x1], 0  ;;  %s4617_s24 = smov 0   ;;  %s4619_s25 = smov 0  }
   0x7   :  { %s4621_s26 = smov 0   ;;  %s4623_s27 = smov 0  }
   0x8   :  { %s4625_s28 = smov 0   ;;  %s4627_s29 = smov 0  }
   0x9   :  { %s4629_s30 = smov 0   ;;  %s4631_s8 = smov 0  }
   0xa LB: > { %6247 = sst [smem:[#allocation22_spill]] %s4536_s24  ;;  %s3539_s9 = sadd.s32 4294967295, %s4564_s8   ;;  %s4564_s8 = sphi %s4631_s8, %s22_s8   ;;  %s4560_s30 = sphi %s4629_s30, %s6332_s30   ;;  %s4556_s29 = sphi %s4627_s29, %s6331_s29   ;;  %s4552_s28 = sphi %s4625_s28, %s6330_s28   ;;  %s4548_s27 = sphi %s4623_s27, %s6329_s27   ;;  %s4544_s26 = sphi %s4621_s26, %s6328_s26   ;;  %s4540_s25 = sphi %s4619_s25, %s6334_s25   ;;  %s4536_s24 = sphi %s4617_s24, %s6333_s24  }
   0xb   : > { %6248 = sst [smem:[#allocation23_spill]] %s4544_s26  ;;  %s3540_s10 = sadd.s32 4294967294, %s4564_s8  }
   0xc   : > { %6249 = sst [smem:[#allocation24_spill]] %s4556_s29  ;;  %s31_s11 = sadd.s32 1, %s4556_s29 }
   0xd   : > { %6250 = sst [smem:[#allocation25_spill]] %s4560_s30  ;;  %s34_s12 = sadd.s32 1, %s4560_s30 }
   0xe   : > { %6251 = sst [smem:[#allocation26_spill]] %s4564_s8  ;;  %p32_p0 = scmp.ge.s32.totalorder %s31_s11, 2 }
   0xf   : > { %s169_s13 = sadd.s32 1, %s4544_s26  ;;  %p179_p1 = scmp.ne.s32.totalorder %s4544_s26, %s4540_s25 }
  0x10   : > { %p180_p2 = scmp.eq.s32.totalorder %s3539_s9, 3  ;;  %s6336_s11 = smov (%p32_p0, %s31_s11), 0 }
  0x11   : > { %6252 = sst [smem:[#allocation27_spill]] %s6336_s11  ;;  %s6338_s12 = smov (!%p32_p0, %s34_s12), %s4560_s30 }
  0x12   : > { %s165_s14 = ssub.s32 %s4556_s29, %s6336_s11  ;;  %p4669_p3 = por %p180_p2, %p179_p1 }
  0x13   : > { %p36_p4 = scmp.ge.s32.totalorder %s6338_s12, 2  ;;  %p185_p5 = scmp.ne.s32.totalorder %s4540_s25, %s4536_s24 }
  0x14   : > { %p186_p6 = scmp.eq.s32.totalorder %s3540_s10, 3  ;;  %p3541_p7 = scmp.ge.s32.totalorder %s4564_s8, 1 }
  0x15   : > { %s6340_s12 = smov (%p36_p4, %s6338_s12), 0  ;;  %p193_p9 = scmp.lt.s32.totalorder %s4564_s8, 5 }
  0x16   : > { %6254 = sst [smem:[#allocation28_spill]] %s6340_s12  ;;  %p4678_p8 = por %p186_p6, %p185_p5 }
  0x17   : > { %s164_s17 = ssub.s32 %s4560_s30, %s6340_s12  ;;  %p4685_p10 = pnand %p3541_p7, %p193_p9 }
  0x18   : > { %s6255_s16 = scalar_select %p4678_p8, 1, 0 }
  0x19   : > { %s166_s18 = sor.u32 %s165_s14, %s164_s17  ;;  %p4689_p12 = scmp.eq.s32.totalorder %s3539_s9, 0 }
  0x1a   : > { %6256 = sst [smem:[#allocation29_spill]] %s6255_s16  ;;  %p167_p11 = scmp.eq.s32.totalorder %s166_s18, 0 }
  0x1b   : > { %p4228_p13 = pneg %p4685_p10  ;;  %s4566_s22 = smov [#allocation6]  }
  0x1c   : > { %s4696_s21 = scalar_select %p167_p11, %s4544_s26, %s169_s13  }
  0x1d   : > { %s205_s23 = sshll.u32 %s4566_s22, 4  ;;  %p4700_p0 = pnand %p4689_p12, %p4228_p13  ;;  %s206_s23 = int_to_ptr.vmem [resolvable:$true] %s205_s23 }
  0x1e   : > { %6259 = sst [smem:[#allocation30_spill]] %s4696_s21  ;;  %s4369_s9 = scalar_lea.vmem %s206_s23, 18432 }
  0x1f   : > { %p4360_p1 = pneg %p4700_p0  ;;  %p4370_p2 = scmp.ne.s32.totalorder %s206_s23, %s4369_s9 }
  0x20   : > { %p4377_p6 = scmp.lt.s32.totalorder %s206_s23, %s206_s23  ;;  %p4378_p7 = scmp.lt.s32.totalorder %s4369_s9, %s4369_s9 }
  0x21   : > { %p4372_p4 = pnand %p4370_p2, %p4360_p1 }
  0x22   : > { %p4379_p9 = por %p4378_p7, %p4377_p6 }
  0x23   : > { %p4373_p5 = pneg %p4372_p4 }
  0x25   : > { %p4380_p11 = pnand %p4379_p9, %p4373_p5 }
  0x27   : > { %4383 = shalt.err (!%p4380_p11)
}
  0x28   : > { %s4567_s13 = smov 128   ;;  %s4568_s14 = smov 8  }
  0x29   : > { %s6261_s1 = sld [smem:[#allocation50_spill]]  ;;  %s4569_s22 = smov [#allocation9]  }
  0x2a   : > { %s224_s12 = sshll.u32 %s4569_s22, 4  ;;  %s225_s12 = int_to_ptr.vmem [resolvable:$true] %s224_s12 }
  0x2b   : > { %s4395_s11 = scalar_lea.vmem %s225_s12, 18432  ;;  %p4403_p5 = scmp.lt.s32.totalorder %s225_s12, %s225_s12 }
  0x2c   : > { %p4396_p13 = scmp.ne.s32.totalorder %s225_s12, %s4395_s11  ;;  %p4404_p6 = scmp.lt.s32.totalorder %s4395_s11, %s4395_s11 }
  0x2e   : > { %p4398_p2 = pnand %p4396_p13, %p4360_p1  ;;  %p4405_p7 = por %p4404_p6, %p4403_p5 }
  0x2f   : > { %4231 = dma.hbm_to_vmem [thread:$0]  (!%p4700_p0), %s6261_s1, 18432, %s206_s23, [#allocation7], %s4567_s13, %s4567_s13, %s4568_s14  }
  0x30   : > { %p4399_p4 = pneg %p4398_p2 }
  0x32   : > { %p4406_p9 = pnand %p4405_p7, %p4399_p4 }
  0x34   : > { %4409 = shalt.err (!%p4406_p9)
}
  0x35   : > { %s6262_s4 = sld [smem:[#allocation51_spill]] }
  0x37   : > { %246 = sbr.rel (%p4685_p10) target bundleno = 1040 (0x410), region = 44 }
  0x3b   : > { %4234 = dma.hbm_to_vmem [thread:$0]  (!%p4700_p0), %s6262_s4, 18432, %s225_s12, [#allocation10], %s4567_s13, %s4567_s13, %s4568_s14  }
  0x3c   : > { %4521 = dma.done.wait (%p4689_p12), [#allocation7], 18432  }
  0x3d   : > { %4523 = vsyncadd (%p4689_p12), [#allocation7], 4294948864 }
  0x3e   : > { %4525 = dma.done.wait (%p4689_p12), [#allocation10], 18432  }
  0x3f   : > { %4527 = vsyncadd (%p4689_p12), [#allocation10], 4294948864  ;;  %s6228_s30 = sand.u32 1, %s4540_s25   ;;  %s3548_s11 = sshll.u32 %s4552_s28, 1 }
  0x40   : > { %s4736_s12 = sshll.u32 %s6228_s30, 7  ;;  %s4739_s19 = sadd.s32 %s4548_s27, %s3548_s11 }
  0x41   : > { %p278_p10 = scmp.lt.s32.totalorder %s4739_s19, 0  ;;  %s279_s20 = ssub.s32 0, %s4739_s19 }
  0x42   : > { %s3549_s23 = smin.u32 %s279_s20, %s4739_s19  ;;  %s3554_s13 = smul.u32 192, %s4548_s27 }
  0x43   : > { %s281_s10 = sand.u32 1, %s3549_s23   ;;  %s297_s17 = smul.u32 480, %s4552_s28 }
  0x44   : > { %s282_s14 = ssub.s32 0, %s281_s10  ;;  %p4243_p0 = scmp.eq.s32.totalorder %s4739_s19, 0 }
  0x45   : > { %s6342_s14 = smov (!%p278_p10, %s282_s14), %s281_s10  ;;  %s298_s18 = sadd.s32 %s3554_s13, %s297_s17 }
  0x46   : > { %p3551_p12 = scmp.lt.s32.totalorder %s6342_s14, 0  ;;  %s288_s22 = sadd.s32 2, %s6342_s14 }
  0x47   : > { %s3555_s9 = sshll.u32 %s298_s18, 4  ;;  %p315_p1 = scmp.eq.s32.totalorder %s4548_s27, 1 }
  0x48   : > { %s6344_s22 = smov (!%p3551_p12, %s288_s22), %s6342_s14  ;;  %s4754_s23 = scalar_lea.hbm %s6217_s0, %s3555_s9 }
  0x49   : > { %s301_s10 = smul.u32 288, %s6344_s22  ;;  %s6230_s13 = ssub.s32 1, %s6344_s22 }
  0x4a   : > { %s4765_s1 = smul.u32 288, %s6230_s13  ;;  %s4768_s4 = scalar_lea.sflag [#allocation5], %s6344_s22 }
  0x4b   : > { %s4759_s18 = scalar_lea.vmem [#allocation2], %s301_s10  ;;  %s4410_s11 = scalar_lea.hbm %s4754_s23, 4608 }
  0x4c   : > { %s311_s14 = sshll.u32 %s4759_s18, 4  ;;  %p4411_p13 = scmp.ne.s32.totalorder %s4754_s23, %s4410_s11  ;;  %s312_s14 = int_to_ptr.vmem [resolvable:$true] %s311_s14 }
  0x4d   : > { %s6232_s17 = scalar_lea.hbm %s6217_s0, 15360  ;;  %p4415_p5 = scmp.lt.s32.totalorder %s4754_s23, %s6217_s0 }
  0x4e   : > { %p4412_p2 = pnand %p4411_p13, %p4243_p0  ;;  %p4416_p6 = scmp.lt.s32.totalorder %s6232_s17, %s4410_s11 }
  0x50   : > { %p4413_p4 = pneg %p4412_p2  ;;  %p4417_p7 = por %p4416_p6, %p4415_p5 }
  0x52   : > { %p4418_p9 = pnand %p4417_p7, %p4413_p4 }
  0x54   : > { %4421 = shalt.err (!%p4418_p9)  }
  0x55   : > { %s4422_s13 = scalar_lea.vmem %s312_s14, 4608  ;;  %s4570_s9 = smov [#allocation2]  }
  0x56   : > { %p4423_p10 = scmp.ne.s32.totalorder %s312_s14, %s4422_s13  ;;  %s4426_s20 = sshll.u32 %s4570_s9, 4  ;;  %s4787_s20 = int_to_ptr.vmem [resolvable:$false] %s4426_s20 }
  0x57   : > { %s6231_s29 = scalar_lea.vmem %s4787_s20, 9216  ;;  %p4429_p2 = scmp.lt.s32.totalorder %s312_s14, %s4787_s20 }
  0x58   : > { %p4424_p12 = pnand %p4423_p10, %p4243_p0  ;;  %p4430_p11 = scmp.lt.s32.totalorder %s6231_s29, %s4422_s13 }
  0x5a   : > { %p4425_p13 = pneg %p4424_p12  ;;  %p4431_p5 = por %p4430_p11, %p4429_p2 }
  0x5c   : > { %p4432_p4 = pnand %p4431_p5, %p4425_p13 }
  0x5e   : > { %4435 = shalt.err (!%p4432_p4)  }
  0x5f   : > { %4224 = dma.hbm_to_vmem [thread:$0]  (%p4243_p0), %s4754_s23, 4608, %s312_s14, %s4768_s4 }
  0x60   : > { %s6263_s21 = sadd.s32 1, %s4552_s28  ;;  %s6264_s30 = sadd.s32 1, %s4548_s27 }
  0x61   : > { %s6346_s21 = smov (!%p315_p1, %s6263_s21), %s4552_s28  ;;  %s6348_s30 = smov (%p315_p1, %s6264_s30), 0 }
  0x62   : > { %s328_s13 = smul.u32 480, %s6346_s21  ;;  %s333_s11 = scalar_lea.vmem [#allocation2], %s4765_s1 }
  0x63   : > { %s3557_s19 = smul.u32 192, %s6348_s30  ;;  %s342_s10 = sshll.u32 %s333_s11, 4  ;;  %s343_s10 = int_to_ptr.vmem [resolvable:$true] %s342_s10 }
  0x64   : > { %p6265_p11 = scmp.eq.s32.totalorder %s4552_s28, 1  ;;  %s6267_s16 = ssub.s32 1, %s6344_s22 }
  0x65   : > { %s329_s29 = sadd.s32 %s3557_s19, %s328_s13  ;;  %s334_s24 = scalar_lea.sflag [#allocation5], %s6267_s16 }
  0x66   : > { %p4811_p6 = pnand %p6265_p11, %p315_p1  ;;  %s3558_s23 = sshll.u32 %s329_s29, 4 }
  0x67   : > { %s331_s26 = scalar_lea.hbm %s6217_s0, %s3558_s23  ;;  %s6268_s13 = scalar_lea.hbm %s6217_s0, 15360 }
  0x68   : > { %s4436_s21 = scalar_lea.hbm %s331_s26, 4608  ;;  %p4441_p1 = scmp.lt.s32.totalorder %s331_s26, %s6217_s0 }
  0x69   : > { %p4437_p0 = scmp.ne.s32.totalorder %s331_s26, %s4436_s21  ;;  %p4442_p10 = scmp.lt.s32.totalorder %s6268_s13, %s4436_s21 }
  0x6b   : > { %p4438_p7 = pnand %p4437_p0, %p4811_p6  ;;  %p4443_p12 = por %p4442_p10, %p4441_p1 }
  0x6d   : > { %p4439_p9 = pneg %p4438_p7 }
  0x6f   : > { %p4444_p13 = pnand %p4443_p12, %p4439_p9 }
  0x71   : > { %4447 = shalt.err (!%p4444_p13)  }
  0x72   : > { %s4448_s17 = scalar_lea.vmem %s343_s10, 4608  ;;  %p4455_p11 = scmp.lt.s32.totalorder %s343_s10, %s4787_s20 }
  0x73   : > { %p4449_p2 = scmp.ne.s32.totalorder %s343_s10, %s4448_s17  ;;  %s6269_s16 = scalar_lea.vmem %s4787_s20, 9216 }
  0x74   : > { %p4456_p0 = scmp.lt.s32.totalorder %s6269_s16, %s4448_s17 }
  0x75   : > { %p4450_p5 = pnand %p4449_p2, %p4811_p6 }
  0x76   : > { %p4457_p7 = por %p4456_p0, %p4455_p11 }
  0x77   : > { %p4451_p4 = pneg %p4450_p5 }
  0x79   : > { %p4458_p8 = pnand %p4457_p7, %p4451_p4 }
  0x7b   : > { %4461 = shalt.err (!%p4458_p8)  }
  0x7c   : > { %4225 = dma.hbm_to_vmem [thread:$0]  (%p4811_p6), %s331_s26, 4608, %s343_s10, %s334_s24 }
  0x7d   : > { %s4837_s8 = scalar_lea.vmem [#allocation11], %s4736_s12 }
  0x7e   : > { %4528 = dma.done.wait %s4768_s4, 4608 }
  0x7f   : > { %4529 = vsyncadd %s4768_s4, 4294962688  ;;  %v4571_v0 = vmov 0.0   ;;  %v910_v1 = vld [vmem:[#allocation6 + $0x78] sm:$0xff]  ;;  %v909_v3 = vld [vmem:[#allocation6 + $0x70] sm:$0xff]  ;;  %p3681_p8 = scmp.ne.s32.totalorder %s4548_s27, 0 }
  0x80   : > { %1958 = vst [vmem:[#allocation3] sm:$0x1] %v4571_v0  ;;  %1959 = vst [vmem:[#allocation3 + $0x18] sm:$0x1] %v4571_v0  ;;  %1039 = vmatprep.subr.mxu0 %v4571_v0  ;;  %1204 = vmatprep.subr.mxu1 %v4571_v0  ;;  %v942_v2 = vld [vmem:[#allocation6 + $0x178] sm:$0xff]  ;;  %v941_v4 = vld [vmem:[#allocation6 + $0x170] sm:$0xff] }
  0x81   : > { %1960 = vst [vmem:[#allocation3 + $0x30] sm:$0x1] %v4571_v0  ;;  %1961 = vst [vmem:[#allocation3 + $0x48] sm:$0x1] %v4571_v0  ;;  %1040 = vmatpush1.msra.mxu0 %v910_v1  ;;  %1205 = vmatpush1.msra.mxu1 %v942_v2  ;;  %v908_v5 = vld [vmem:[#allocation6 + $0x68] sm:$0xff]  ;;  %v907_v7 = vld [vmem:[#allocation6 + $0x60] sm:$0xff] }
  0x82   : > { %1962 = vst [vmem:[#allocation3 + $0x60] sm:$0x1] %v4571_v0  ;;  %1963 = vst [vmem:[#allocation3 + $0x78] sm:$0x1] %v4571_v0  ;;  %1041 = vmatprep.subr.mxu0 %v4571_v0  ;;  %1206 = vmatprep.subr.mxu1 %v4571_v0  ;;  %v940_v6 = vld [vmem:[#allocation6 + $0x168] sm:$0xff]  ;;  %v939_v8 = vld [vmem:[#allocation6 + $0x160] sm:$0xff] }
  0x83   : > { %1964 = vst [vmem:[#allocation3 + $0x90] sm:$0x1] %v4571_v0  ;;  %1965 = vst [vmem:[#allocation3 + $0xa8] sm:$0x1] %v4571_v0  ;;  %1042 = vmatpush1.msra.mxu0 %v909_v3  ;;  %1207 = vmatpush1.msra.mxu1 %v941_v4  ;;  %v906_v9 = vld [vmem:[#allocation6 + $0x58] sm:$0xff]  ;;  %v905_v11 = vld [vmem:[#allocation6 + $0x50] sm:$0xff] }
  0x84   : > { %1966 = vst [vmem:[#allocation3 + $0xc0] sm:$0x1] %v4571_v0  ;;  %1967 = vst [vmem:[#allocation3 + $0xd8] sm:$0x1] %v4571_v0  ;;  %1043 = vmatprep.subr.mxu0 %v4571_v0  ;;  %1208 = vmatprep.subr.mxu1 %v4571_v0  ;;  %v938_v10 = vld [vmem:[#allocation6 + $0x158] sm:$0xff]  ;;  %v937_v12 = vld [vmem:[#allocation6 + $0x150] sm:$0xff] }
  0x85   : > { %1968 = vst [vmem:[#allocation3 + $0x11] sm:$0x1] %v4571_v0  ;;  %1969 = vst [vmem:[#allocation3 + $0x29] sm:$0x1] %v4571_v0  ;;  %1044 = vmatpush1.msra.mxu0 %v908_v5  ;;  %1209 = vmatpush1.msra.mxu1 %v940_v6  ;;  %v904_v13 = vld [vmem:[#allocation6 + $0x48] sm:$0xff]  ;;  %v903_v15 = vld [vmem:[#allocation6 + $0x40] sm:$0xff] }
  0x86   : > { %1970 = vst [vmem:[#allocation3 + $0x41] sm:$0x1] %v4571_v0  ;;  %1971 = vst [vmem:[#allocation3 + $0x59] sm:$0x1] %v4571_v0  ;;  %1045 = vmatprep.subr.mxu0 %v4571_v0  ;;  %1210 = vmatprep.subr.mxu1 %v4571_v0  ;;  %v936_v14 = vld [vmem:[#allocation6 + $0x148] sm:$0xff]  ;;  %v935_v16 = vld [vmem:[#allocation6 + $0x140] sm:$0xff] }
  0x87   : > { %1972 = vst [vmem:[#allocation3 + $0x71] sm:$0x1] %v4571_v0  ;;  %1973 = vst [vmem:[#allocation3 + $0x89] sm:$0x1] %v4571_v0  ;;  %1046 = vmatpush1.msra.mxu0 %v907_v7  ;;  %1211 = vmatpush1.msra.mxu1 %v939_v8  ;;  %v902_v17 = vld [vmem:[#allocation6 + $0x38] sm:$0xff]  ;;  %v901_v19 = vld [vmem:[#allocation6 + $0x30] sm:$0xff] }
  0x88   : > { %1974 = vst [vmem:[#allocation3 + $0xa1] sm:$0x1] %v4571_v0  ;;  %1975 = vst [vmem:[#allocation3 + $0xb9] sm:$0x1] %v4571_v0  ;;  %1047 = vmatprep.subr.mxu0 %v4571_v0  ;;  %1212 = vmatprep.subr.mxu1 %v4571_v0  ;;  %v934_v18 = vld [vmem:[#allocation6 + $0x138] sm:$0xff]  ;;  %v933_v20 = vld [vmem:[#allocation6 + $0x130] sm:$0xff] }
  0x89   : > { %1976 = vst [vmem:[#allocation3 + $0xd1] sm:$0x1] %v4571_v0  ;;  %1977 = vst [vmem:[#allocation3 + $0xe9] sm:$0x1] %v4571_v0  ;;  %1048 = vmatpush1.msra.mxu0 %v906_v9  ;;  %1213 = vmatpush1.msra.mxu1 %v938_v10  ;;  %v900_v21 = vld [vmem:[#allocation6 + $0x28] sm:$0xff]  ;;  %v899_v23 = vld [vmem:[#allocation6 + $0x20] sm:$0xff] }
  0x8a   : > { %1049 = vmatprep.subr.mxu0 %v4571_v0  ;;  %1214 = vmatprep.subr.mxu1 %v4571_v0  ;;  %v932_v22 = vld [vmem:[#allocation6 + $0x128] sm:$0xff]  ;;  %v931_v24 = vld [vmem:[#allocation6 + $0x120] sm:$0xff]  ;;  %v898_v25 = vld [vmem:[#allocation6 + $0x18] sm:$0xff] }
  0x8b   : > { %1050 = vmatpush1.msra.mxu0 %v905_v11  ;;  %1215 = vmatpush1.msra.mxu1 %v937_v12  ;;  %v4884_v26 = vld [vmem:[%s4759_s18 + $0x1] sm:$0xff]  ;;  %v4892_v29 = vld [vmem:[%s4759_s18 + $0x18] sm:$0xff]  ;;  %v4898_v31 = vld [vmem:[%s4759_s18 + $0x9] sm:$0xff] }
  0x8c   : > { %1051 = vmatprep.subr.mxu0 %v4571_v0  ;;  %1216 = vmatprep.subr.mxu1 %v4571_v0  ;;  %v4887_v27 = vld [vmem:[%s4759_s18] sm:$0xff]  ;;  %v930_v28 = vld [vmem:[#allocation6 + $0x118] sm:$0xff]  ;;  %v4915_v38 = vld [vmem:[%s4759_s18 + $0x30] sm:$0xff] }
  0x8d   : > { %1052 = vmatpush1.msra.mxu0 %v904_v13  ;;  %1217 = vmatpush1.msra.mxu1 %v936_v14  ;;  %v4895_v30 = vld [vmem:[%s4759_s18 + $0x2] sm:$0xff]  ;;  %v4909_v36 = vld [vmem:[%s4759_s18 + $0xa] sm:$0xff]  ;;  %v4912_v37 = vld [vmem:[%s4759_s18 + $0x19] sm:$0xff]  ;;  %496 = vst [vmem:[#allocation4 + $0x220] sm:$0xff] %v4915_v38 }
  0x8e   : > { %1053 = vmatprep.subr.mxu0 %v4571_v0  ;;  %1218 = vmatprep.subr.mxu1 %v4571_v0  ;;  %v4901_v32 = vld [vmem:[%s4759_s18 + $0x8] sm:$0xff]  ;;  %v4904_v33 = vld [vmem:[%s4759_s18 + $0x20] sm:$0xff]  ;;  %v896_v40 = vld [vmem:[#allocation6 + $0x8] sm:$0xff]  ;;  %415 = vst [vmem:[#allocation4 + $0x48] sm:$0xff] %v4912_v37 }
  0x8f   : > { %1054 = vmatpush1.msra.mxu0 %v903_v15  ;;  %1219 = vmatpush1.msra.mxu1 %v935_v16  ;;  %v897_v34 = vld [vmem:[#allocation6 + $0x10] sm:$0xff]  ;;  %v928_v41 = vld [vmem:[#allocation6 + $0x108] sm:$0xff]  ;;  %v895_v43 = vld [vmem:[#allocation6] sm:$0xff] }
  0x90   : > { %1055 = vmatprep.subr.mxu0 %v4571_v0  ;;  %1220 = vmatprep.subr.mxu1 %v4571_v0  ;;  %v929_v35 = vld [vmem:[#allocation6 + $0x110] sm:$0xff]  ;;  %v4930_v44 = vld [vmem:[%s4759_s18 + $0x38] sm:$0xff]  ;;  %v927_v46 = vld [vmem:[#allocation6 + $0x100] sm:$0xff] }
  0x91   : > { %1056 = vmatpush1.msra.mxu0 %v902_v17  ;;  %1221 = vmatpush1.msra.mxu1 %v934_v18  ;;  %v4918_v39 = vld [vmem:[%s4759_s18 + $0x1a] sm:$0xff]  ;;  %v4933_v45 = vld [vmem:[%s4759_s18 + $0x22] sm:$0xff]  ;;  %497 = vst [vmem:[#allocation4 + $0x450] sm:$0xff] %v4930_v44  ;;  %v4940_v47 = vld [vmem:[%s4759_s18 + $0x31] sm:$0xff] }
  0x92   : > { %1057 = vmatprep.subr.mxu0 %v4571_v0  ;;  %1222 = vmatprep.subr.mxu1 %v4571_v0  ;;  %455 = vst [vmem:[#allocation4 + $0x68] sm:$0xff] %v4918_v39  ;;  %v4926_v42 = vld [vmem:[%s4759_s18 + $0x21] sm:$0xff]  ;;  %456 = vst [vmem:[#allocation4 + $0x558] sm:$0xff] %v4933_v45  ;;  %v4948_v50 = vld [vmem:[%s4759_s18 + $0x32] sm:$0xff] }
  0x93   : > { %1058 = vmatpush1.msra.mxu0 %v901_v19  ;;  %1223 = vmatpush1.msra.mxu1 %v933_v20  ;;  %416 = vst [vmem:[#allocation4 + $0x298] sm:$0xff] %v4926_v42  ;;  %v4943_v48 = vld [vmem:[%s4759_s18 + $0x48] sm:$0xff]  ;;  %417 = vst [vmem:[#allocation4 + $0x3c0] sm:$0xff] %v4940_v47  ;;  %v4951_v51 = vld [vmem:[%s4759_s18 + $0x39] sm:$0xff] }
  0x94   : > { %1059 = vmatprep.subr.mxu0 %v4571_v0  ;;  %1224 = vmatprep.subr.mxu1 %v4571_v0  ;;  %v926_v49 = vld [vmem:[#allocation6 + $0xf8] sm:$0xff]  ;;  %498 = vst [vmem:[#allocation4 + $0x60] sm:$0xff] %v4943_v48  ;;  %457 = vst [vmem:[#allocation4 + $0x320] sm:$0xff] %v4948_v50  ;;  %v4958_v53 = vld [vmem:[%s4759_s18 + $0x50] sm:$0xff] }
  0x95   : > { %1060 = vmatpush1.msra.mxu0 %v900_v21  ;;  %1225 = vmatpush1.msra.mxu1 %v932_v22  ;;  %v958_v52 = vld [vmem:[#allocation6 + $0x1f8] sm:$0xff]  ;;  %418 = vst [vmem:[#allocation4 + $0x170] sm:$0xff] %v4951_v51  ;;  %v4961_v54 = vld [vmem:[%s4759_s18 + $0x3a] sm:$0xff]  ;;  %499 = vst [vmem:[#allocation4 + $0x28] sm:$0xff] %v4958_v53 }
  0x96   : > { %1061 = vmatprep.subr.mxu0 %v4571_v0  ;;  %1226 = vmatprep.subr.mxu1 %v4571_v0  ;;  %458 = vst [vmem:[#allocation4 + $0x2d0] sm:$0xff] %v4961_v54  ;;  %v4966_v55 = vld [vmem:[%s4759_s18 + $0x49] sm:$0xff]  ;;  %v925_v56 = vld [vmem:[#allocation6 + $0xf0] sm:$0xff]  ;;  %v924_v59 = vld [vmem:[#allocation6 + $0xe8] sm:$0xff] }
  0x97   : > { %1062 = vmatpush1.msra.mxu0 %v899_v23  ;;  %1227 = vmatpush1.msra.mxu1 %v931_v24  ;;  %v957_v57 = vld [vmem:[#allocation6 + $0x1f0] sm:$0xff]  ;;  %419 = vst [vmem:[#allocation4 + $0x3d0] sm:$0xff] %v4966_v55  ;;  %v4976_v60 = vld [vmem:[%s4759_s18 + $0x4a] sm:$0xff]  ;;  %v956_v61 = vld [vmem:[#allocation6 + $0x1e8] sm:$0xff] }
  0x98   : > { %1063 = vmatprep.subr.mxu0 %v4571_v0  ;;  %1228 = vmatprep.subr.mxu1 %v4571_v0  ;;  %v4972_v58 = vld [vmem:[%s4759_s18 + $0x60] sm:$0xff]  ;;  %459 = vst [vmem:[#allocation4 + $0x4e8] sm:$0xff] %v4976_v60  ;;  %v4982_v62 = vld [vmem:[%s4759_s18 + $0x51] sm:$0xff]  ;;  %v4985_v63 = vld [vmem:[%s4759_s18 + $0x68] sm:$0xff] }
  0x99   : > { %1064 = vmatpush1.msra.mxu0 %v898_v25  ;;  %1229 = vmatpush1.msra.mxu1 %v930_v28  ;;  %500 = vst [vmem:[#allocation4 + $0x50] sm:$0xff] %v4972_v58  ;;  %420 = vst [vmem:[#allocation4 + $0x160] sm:$0xff] %v4982_v62  ;;  %v4990_v1 = vld [vmem:[%s4759_s18 + $0x52] sm:$0xff]  ;;  %v4996_v4 = vld [vmem:[%s4759_s18 + $0x61] sm:$0xff] }
  0x9a   : > { %1065 = vmatprep.subr.mxu0 %v4571_v0  ;;  %1230 = vmatprep.subr.mxu1 %v4571_v0  ;;  %501 = vst [vmem:[#allocation4 + $0x1b8] sm:$0xff] %v4985_v63  ;;  %v923_v2 = vld [vmem:[#allocation6 + $0xe0] sm:$0xff]  ;;  %460 = vst [vmem:[#allocation4 + $0x308] sm:$0xff] %v4990_v1  ;;  %v5000_v5 = vld [vmem:[%s4759_s18 + $0x78] sm:$0xff] }
  0x9b   : > { %1066 = vmatpush1.msra.mxu0 %v897_v34  ;;  %1231 = vmatpush1.msra.mxu1 %v929_v35  ;;  %v955_v3 = vld [vmem:[#allocation6 + $0x1e0] sm:$0xff]  ;;  %421 = vst [vmem:[#allocation4 + $0x4f0] sm:$0xff] %v4996_v4  ;;  %v5003_v6 = vld [vmem:[%s4759_s18 + $0x62] sm:$0xff]  ;;  %502 = vst [vmem:[#allocation4 + $0x440] sm:$0xff] %v5000_v5 }
  0x9c   : > { %1067 = vmatprep.subr.mxu0 %v4571_v0  ;;  %1232 = vmatprep.subr.mxu1 %v4571_v0  ;;  %v922_v7 = vld [vmem:[#allocation6 + $0xd8] sm:$0xff]  ;;  %461 = vst [vmem:[#allocation4 + $0x2d8] sm:$0xff] %v5003_v6  ;;  %v5014_v10 = vld [vmem:[%s4759_s18 + $0x80] sm:$0xff]  ;;  %v5028_v15 = vld [vmem:[%s4759_s18 + $0x90] sm:$0xff] }
  0x9d   : > { %1068 = vmatpush1.msra.mxu0 %v896_v40  ;;  %1233 = vmatpush1.msra.mxu1 %v928_v41  ;;  %v954_v8 = vld [vmem:[#allocation6 + $0x1d8] sm:$0xff]  ;;  %v921_v12 = vld [vmem:[#allocation6 + $0xd0] sm:$0xff]  ;;  %503 = vst [vmem:[#allocation4 + $0x300] sm:$0xff] %v5014_v10  ;;  %v920_v17 = vld [vmem:[#allocation6 + $0xc8] sm:$0xff] }
  0x9e   : > { %1069 = vmatprep.subr.mxu0 %v4571_v0  ;;  %1234 = vmatprep.subr.mxu1 %v4571_v0  ;;  %v5010_v9 = vld [vmem:[%s4759_s18 + $0x69] sm:$0xff]  ;;  %v953_v13 = vld [vmem:[#allocation6 + $0x1d0] sm:$0xff]  ;;  %v952_v18 = vld [vmem:[#allocation6 + $0x1c8] sm:$0xff]  ;;  %504 = vst [vmem:[#allocation4 + $0x330] sm:$0xff] %v5028_v15 }
  0x9f   : > { %1070 = vmatpush1.msra.mxu0 %v895_v43  ;;  %1235 = vmatpush1.msra.mxu1 %v927_v46  ;;  %422 = vst [vmem:[#allocation4 + $0x158] sm:$0xff] %v5010_v9  ;;  %v5017_v11 = vld [vmem:[%s4759_s18 + $0x6a] sm:$0xff]  ;;  %v5024_v14 = vld [vmem:[%s4759_s18 + $0x79] sm:$0xff]  ;;  %v5038_v19 = vld [vmem:[%s4759_s18 + $0x81] sm:$0xff] }
  0xa0   : > { %1071 = vmatprep.subr.mxu0 %v4571_v0  ;;  %1236 = vmatprep.subr.mxu1 %v4571_v0  ;;  %462 = vst [vmem:[#allocation4 + $0x478] sm:$0xff] %v5017_v11  ;;  %423 = vst [vmem:[#allocation4 + $0x3e0] sm:$0xff] %v5024_v14  ;;  %v5031_v16 = vld [vmem:[%s4759_s18 + $0x7a] sm:$0xff]  ;;  %v919_v21 = vld [vmem:[#allocation6 + $0xc0] sm:$0xff] }
  0xa1   : > { %1072 = vmatpush2.msra.mxu0 %v926_v49  ;;  %1237 = vmatpush2.msra.mxu1 %v958_v52  ;;  %463 = vst [vmem:[#allocation4 + $0x518] sm:$0xff] %v5031_v16  ;;  %424 = vst [vmem:[#allocation4 + $0x580] sm:$0xff] %v5038_v19  ;;  %v5042_v20 = vld [vmem:[%s4759_s18 + $0x98] sm:$0xff]  ;;  %v951_v22 = vld [vmem:[#allocation6 + $0x1c0] sm:$0xff] }
  0xa2   : > { %1073 = vmatprep.subr.mxu0 %v4571_v0  ;;  %1238 = vmatprep.subr.mxu1 %v4571_v0  ;;  %505 = vst [vmem:[#allocation4 + $0xa8] sm:$0xff] %v5042_v20  ;;  %v5048_v23 = vld [vmem:[%s4759_s18 + $0x82] sm:$0xff]  ;;  %v5052_v24 = vld [vmem:[%s4759_s18 + $0x91] sm:$0xff]  ;;  %v5066_v41 = vld [vmem:[%s4759_s18 + $0x99] sm:$0xff] }
  0xa3   : > { %1074 = vmatpush2.msra.mxu0 %v925_v56  ;;  %1239 = vmatpush2.msra.mxu1 %v957_v57  ;;  %464 = vst [vmem:[#allocation4 + $0x128] sm:$0xff] %v5048_v23  ;;  %v5055_v25 = vld [vmem:[%s4759_s18 + $0xa8] sm:$0xff]  ;;  %425 = vst [vmem:[#allocation4 + $0x248] sm:$0xff] %v5052_v24  ;;  %v5062_v35 = vld [vmem:[%s4759_s18 + $0x92] sm:$0xff] }
  0xa4   : > { %1075 = vmatprep.subr.mxu0 %v4571_v0  ;;  %1240 = vmatprep.subr.mxu1 %v4571_v0  ;;  %v918_v28 = vld [vmem:[#allocation6 + $0xb8] sm:$0xff]  ;;  %506 = vst [vmem:[#allocation4 + $0xe0] sm:$0xff] %v5055_v25  ;;  %v917_v40 = vld [vmem:[#allocation6 + $0xb0] sm:$0xff]  ;;  %465 = vst [vmem:[#allocation4 + $0x310] sm:$0xff] %v5062_v35 }
  0xa5   : > { %1076 = vmatpush2.msra.mxu0 %v924_v59  ;;  %1241 = vmatpush2.msra.mxu1 %v956_v61  ;;  %v950_v34 = vld [vmem:[#allocation6 + $0x1b8] sm:$0xff]  ;;  %v949_v43 = vld [vmem:[#allocation6 + $0x1b0] sm:$0xff]  ;;  %426 = vst [vmem:[#allocation4 + $0xf8] sm:$0xff] %v5066_v41  ;;  %v5072_v46 = vld [vmem:[%s4759_s18 + $0xb0] sm:$0xff] }
  0xa6   : > { %1077 = vmatprep.subr.mxu0 %v4571_v0  ;;  %1242 = vmatprep.subr.mxu1 %v4571_v0  ;;  %v5075_v49 = vld [vmem:[%s4759_s18 + $0x9a] sm:$0xff]  ;;  %507 = vst [vmem:[#allocation4 + $0x4d8] sm:$0xff] %v5072_v46  ;;  %v5080_v56 = vld [vmem:[%s4759_s18 + $0xa9] sm:$0xff] }
  0xa7   : > { %1078 = vmatpush2.msra.mxu0 %v923_v2  ;;  %1243 = vmatpush2.msra.mxu1 %v955_v3  ;;  %v916_v52 = vld [vmem:[#allocation6 + $0xa8] sm:$0xff]  ;;  %466 = vst [vmem:[#allocation4 + $0x370] sm:$0xff] %v5075_v49  ;;  %427 = vst [vmem:[#allocation4 + $0x3e8] sm:$0xff] %v5080_v56  ;;  %v5086_v59 = vld [vmem:[%s4759_s18 + $0xc0] sm:$0xff] }
  0xa8   : > { %1079 = vmatprep.subr.mxu0 %v4571_v0  ;;  %1244 = vmatprep.subr.mxu1 %v4571_v0  ;;  %v948_v57 = vld [vmem:[#allocation6 + $0x1a8] sm:$0xff]  ;;  %v5089_v61 = vld [vmem:[%s4759_s18 + $0xaa] sm:$0xff]  ;;  %508 = vst [vmem:[#allocation4 + $0x110] sm:$0xff] %v5086_v59 }
  0xa9   : > { %1080 = vmatpush2.msra.mxu0 %v922_v7  ;;  %1245 = vmatpush2.msra.mxu1 %v954_v8  ;;  %v915_v2 = vld [vmem:[#allocation6 + $0xa0] sm:$0xff]  ;;  %v5098_v8 = vld [vmem:[%s4759_s18 + $0xc8] sm:$0xff] }
  0xaa   : > { %1081 = vmatprep.subr.mxu0 %v4571_v0  ;;  %1246 = vmatprep.subr.mxu1 %v4571_v0  ;;  %v5093_v3 = vld [vmem:[%s4759_s18 + $0xb1] sm:$0xff] }
  0xab   : > { %1082 = vmatpush2.msra.mxu0 %v921_v12  ;;  %1247 = vmatpush2.msra.mxu1 %v953_v13  ;;  %v947_v7 = vld [vmem:[#allocation6 + $0x1a0] sm:$0xff]  ;;  %v5104_v13 = vld [vmem:[%s4759_s18 + $0xc1] sm:$0xff] }
  0xac   : > { %1083 = vmatprep.subr.mxu0 %v4571_v0  ;;  %1248 = vmatprep.subr.mxu1 %v4571_v0  ;;  %v5101_v12 = vld [vmem:[%s4759_s18 + $0xb2] sm:$0xff] }
  0xad   : > { %1084 = vmatpush2.msra.mxu0 %v920_v17  ;;  %1249 = vmatpush2.msra.mxu1 %v952_v18  ;;  %v914_v17 = vld [vmem:[#allocation6 + $0x98] sm:$0xff] }
  0xae   : > { %1085 = vmatprep.subr.mxu0 %v4571_v0  ;;  %1250 = vmatprep.subr.mxu1 %v4571_v0  ;;  %v946_v18 = vld [vmem:[#allocation6 + $0x198] sm:$0xff] }
  0xaf   : > { %1086 = vmatpush2.msra.mxu0 %v919_v21  ;;  %1251 = vmatpush2.msra.mxu1 %v951_v22  ;;  %v5109_v21 = vld [vmem:[%s4759_s18 + $0xd8] sm:$0xff]  ;;  %v913_v22 = vld [vmem:[#allocation6 + $0x90] sm:$0xff] }
  0xb0   : > { %1087 = vmatprep.subr.mxu0 %v4571_v0  ;;  %1252 = vmatprep.subr.mxu1 %v4571_v0  ;;  %6270 = vst [vmem:[#allocation31_spill] sm:$0xff] %v5109_v21  ;;  %v5144_v21 = vld [vmem:[%s4759_s18 + $0xf8] sm:$0xff] }
  0xb1   : > { %1088 = vmatpush2.msra.mxu0 %v918_v28  ;;  %1253 = vmatpush2.msra.mxu1 %v950_v34  ;;  %v5112_v28 = vld [vmem:[%s4759_s18 + $0xc2] sm:$0xff] }
  0xb2   : > { %1089 = vmatprep.subr.mxu0 %v4571_v0  ;;  %1254 = vmatprep.subr.mxu1 %v4571_v0  ;;  %6271 = vst [vmem:[#allocation32_spill] sm:$0xff] %v5112_v28  ;;  %v945_v34 = vld [vmem:[#allocation6 + $0x190] sm:$0xff]  ;;  %469 = vst [vmem:[#allocation4 + $0x3a0] sm:$0xff] %v5112_v28  ;;  %v943_v28 = vld [vmem:[#allocation6 + $0x180] sm:$0xff] }
  0xb3   : > { %1090 = vmatpush2.msra.mxu0 %v917_v40  ;;  %1255 = vmatpush2.msra.mxu1 %v949_v43  ;;  %v5118_v40 = vld [vmem:[%s4759_s18 + $0xc9] sm:$0xff]  ;;  %v5121_v43 = vld [vmem:[%s4759_s18 + $0xe0] sm:$0xff] }
  0xb4   : > { %1091 = vmatprep.subr.mxu0 %v4571_v0  ;;  %1256 = vmatprep.subr.mxu1 %v4571_v0  ;;  %6272 = vst [vmem:[#allocation33_spill] sm:$0xff] %v5118_v40  ;;  %6273 = vst [vmem:[#allocation34_spill] sm:$0xff] %v5121_v43  ;;  %v5133_v43 = vld [vmem:[%s4759_s18 + $0xf0] sm:$0xff]  ;;  %v5141_v40 = vld [vmem:[%s4759_s18 + $0xe1] sm:$0xff] }
  0xb5   : > { %1092 = vmatpush2.msra.mxu0 %v916_v52  ;;  %1257 = vmatpush2.msra.mxu1 %v948_v57  ;;  %v5124_v52 = vld [vmem:[%s4759_s18 + $0xca] sm:$0xff]  ;;  %v912_v57 = vld [vmem:[#allocation6 + $0x88] sm:$0xff] }
  0xb6   : > { %1093 = vmatprep.subr.mxu0 %v4571_v0  ;;  %1258 = vmatprep.subr.mxu1 %v4571_v0  ;;  %6274 = vst [vmem:[#allocation35_spill] sm:$0xff] %v5124_v52  ;;  %470 = vst [vmem:[#allocation4 + $0x140] sm:$0xff] %v5124_v52  ;;  %v5147_v52 = vld [vmem:[%s4759_s18 + $0xe2] sm:$0xff] }
  0xb7   : > { %1094 = vmatpush2.msra.mxu0 %v915_v2  ;;  %1259 = vmatpush2.msra.mxu1 %v947_v7  ;;  %v944_v2 = vld [vmem:[#allocation6 + $0x188] sm:$0xff] }
  0xb8   : > { %1095 = vmatprep.subr.mxu0 %v4571_v0  ;;  %1260 = vmatprep.subr.mxu1 %v4571_v0  ;;  %v5130_v7 = vld [vmem:[%s4759_s18 + $0xd9] sm:$0xff] }
  0xb9   : > { %1096 = vmatpush2.msra.mxu0 %v914_v17  ;;  %1261 = vmatpush2.msra.mxu1 %v946_v18  ;;  %v5136_v17 = vld [vmem:[%s4759_s18 + $0xda] sm:$0xff]  ;;  %v911_v18 = vld [vmem:[#allocation6 + $0x80] sm:$0xff] }
  0xba   : > { %1097 = vmatprep.subr.mxu0 %v4571_v0  ;;  %1262 = vmatprep.subr.mxu1 %v4571_v0 }
  0xbb   : > { %1098 = vmatpush2.msra.mxu0 %v913_v22  ;;  %1263 = vmatpush2.msra.mxu1 %v945_v34  ;;  %v974_v22 = vld [vmem:[#allocation6 + $0x278] sm:$0xff]  ;;  %v973_v34 = vld [vmem:[#allocation6 + $0x270] sm:$0xff] }
  0xbc   : > { %1099 = vmatprep.subr.mxu0 %v4571_v0  ;;  %1264 = vmatprep.subr.mxu1 %v4571_v0 }
  0xbd   : > { %1100 = vmatpush2.msra.mxu0 %v912_v57  ;;  %1265 = vmatpush2.msra.mxu1 %v944_v2  ;;  %v994_v57 = vld [vmem:[#allocation6 + $0x318] sm:$0xff]  ;;  %v989_v2 = vld [vmem:[#allocation6 + $0x2f0] sm:$0xff] }
  0xbe   : > { %1101 = vmatprep.subr.mxu0 %v4571_v0  ;;  %1103 = vmatprep.mubr.f32.mxu0 %v4884_v26  ;;  %v972_v26 = vld [vmem:[#allocation6 + $0x268] sm:$0xff] }
  0xbf   : > { %1102 = vmatpush2.msra.mxu0 %v911_v18  ;;  %1266 = vmatprep.subr.mxu1 %v4571_v0  ;;  %v5246_v18 = vld [vmem:[%s4759_s18 + $0x111] sm:$0xff] }
  0xc0   : > { %1104 = vmatmul.mubr.f32.vlgmr.msra.gmra.mxu0 %v4887_v27  ;;  %1267 = vmatpush2.msra.mxu1 %v943_v28  ;;  %v971_v27 = vld [vmem:[#allocation6 + $0x260] sm:$0xff] }
  0xc1   : > { %1268 = vmatprep.mubr.f32.mxu1 %v4892_v29  ;;  %1369 = vmatprep.subr.mxu0 %v4571_v0  ;;  %v5232_v28 = vld [vmem:[%s4759_s18 + $0x109] sm:$0xff] }
  0xc2   : > { %1269 = vmatmul.mubr.f32.vlgmr.msra.gmra.mxu1 %v4895_v30  ;;  %1370 = vmatpush1.msra.mxu0 %v974_v22  ;;  %v970_v30 = vld [vmem:[#allocation6 + $0x258] sm:$0xff]  ;;  %v5249_v22 = vld [vmem:[%s4759_s18 + $0x110] sm:$0xff] }
  0xc3   : > { %1108 = vmatprep.mubr.f32.mxu0 %v4898_v31  ;;  %1371 = vmatprep.subr.mxu0 %v4571_v0  ;;  %v969_v31 = vld [vmem:[#allocation6 + $0x250] sm:$0xff] }
  0xc4   : > { %1109 = vmatmul.mubr.f32.gmra.mxu0 %v4901_v32  ;;  %1273 = vmatprep.mubr.f32.mxu1 %v4904_v33  ;;  %v968_v32 = vld [vmem:[#allocation6 + $0x248] sm:$0xff] }
  0xc5   : > { %1372 = vmatpush1.msra.mxu0 %v973_v34  ;;  %1113 = vmatprep.mubr.f32.mxu0 %v4912_v37  ;;  %v1005_v37 = vld [vmem:[#allocation6 + $0x370] sm:$0xff]  ;;  %v988_v34 = vld [vmem:[#allocation6 + $0x2e8] sm:$0xff] }
  0xc6   : > { %1274 = vmatmul.mubr.f32.gmra.mxu1 %v4909_v36  ;;  %1373 = vmatprep.subr.mxu0 %v4571_v0  ;;  %v1006_v36 = vld [vmem:[#allocation6 + $0x378] sm:$0xff] }
  0xc7   : > { %1374 = vmatpush1.msra.mxu0 %v972_v26  ;;  %1278 = vmatprep.mubr.f32.mxu1 %v4915_v38  ;;  %v5258_v26 = vld [vmem:[%s4759_s18 + $0x3a] sm:$0xff] }
  0xc8   : > { %1114 = vmatmul.mubr.f32.gmra.mxu0 %v4892_v29  ;;  %1375 = vmatprep.subr.mxu0 %v4571_v0  ;;  %v967_v29 = vld [vmem:[#allocation6 + $0x240] sm:$0xff] }
  0xc9   : > { %1376 = vmatpush1.msra.mxu0 %v971_v27  ;;  %1118 = vmatprep.mubr.f32.mxu0 %v4926_v42  ;;  %v1003_v42 = vld [vmem:[#allocation6 + $0x360] sm:$0xff]  ;;  %v992_v27 = vld [vmem:[#allocation6 + $0x308] sm:$0xff] }
  0xca   : > { %1279 = vmatmul.mubr.f32.gmra.mxu1 %v4918_v39  ;;  %1377 = vmatprep.subr.mxu0 %v4571_v0  ;;  %v965_v39 = vld [vmem:[#allocation6 + $0x230] sm:$0xff] }
  0xcb   : > { %1378 = vmatpush1.msra.mxu0 %v970_v30  ;;  %1283 = vmatprep.mubr.f32.mxu1 %v4930_v44  ;;  %v5268_v30 = vld [vmem:[%s4759_s18 + $0x52] sm:$0xff] }
  0xcc   : > { %1119 = vmatmul.mubr.f32.gmra.mxu0 %v4904_v33  ;;  %1379 = vmatprep.subr.mxu0 %v4571_v0  ;;  %v966_v33 = vld [vmem:[#allocation6 + $0x238] sm:$0xff] }
  0xcd   : > { %1380 = vmatpush1.msra.mxu0 %v969_v31  ;;  %1123 = vmatprep.mubr.f32.mxu0 %v4940_v47  ;;  %v963_v47 = vld [vmem:[#allocation6 + $0x220] sm:$0xff] }
  0xce   : > { %1284 = vmatmul.mubr.f32.gmra.mxu1 %v4933_v45  ;;  %1381 = vmatprep.subr.mxu0 %v4571_v0  ;;  %v1002_v45 = vld [vmem:[#allocation6 + $0x358] sm:$0xff]  ;;  %v987_v31 = vld [vmem:[#allocation6 + $0x2e0] sm:$0xff] }
  0xcf   : > { %1288 = vmatprep.mubr.f32.mxu1 %v4943_v48  ;;  %1382 = vmatpush1.msra.mxu0 %v968_v32  ;;  %v986_v32 = vld [vmem:[#allocation6 + $0x2d8] sm:$0xff] }
  0xd0   : > { %1124 = vmatmul.mubr.f32.gmra.mxu0 %v4915_v38  ;;  %1383 = vmatprep.subr.mxu0 %v4571_v0  ;;  %v1004_v38 = vld [vmem:[#allocation6 + $0x368] sm:$0xff] }
  0xd1   : > { %1534 = vmatprep.subr.mxu1 %v4571_v0  ;;  %1128 = vmatprep.mubr.f32.mxu0 %v4951_v51  ;;  %v1000_v51 = vld [vmem:[#allocation6 + $0x348] sm:$0xff] }
  0xd2   : > { %1289 = vmatmul.mubr.f32.gmra.mxu1 %v4948_v50  ;;  %1384 = vmatpush1.msra.mxu0 %v967_v29  ;;  %v962_v50 = vld [vmem:[#allocation6 + $0x218] sm:$0xff] }
  0xd3   : > { %1535 = vmatpush1.msra.mxu1 %v1006_v36  ;;  %1293 = vmatprep.mubr.f32.mxu1 %v4958_v53  ;;  %v5276_v29 = vld [vmem:[%s4759_s18 + $0x62] sm:$0xff]  ;;  %v5279_v36 = vld [vmem:[%s4759_s18 + $0x6a] sm:$0xff] }
  0xd4   : > { %1129 = vmatmul.mubr.f32.gmra.mxu0 %v4930_v44  ;;  %1385 = vmatprep.subr.mxu0 %v4571_v0  ;;  %v964_v44 = vld [vmem:[#allocation6 + $0x228] sm:$0xff] }
  0xd5   : > { %1536 = vmatprep.subr.mxu1 %v4571_v0  ;;  %1386 = vmatpush1.msra.mxu0 %v966_v33  ;;  %v5286_v33 = vld [vmem:[%s4759_s18 + $0x7a] sm:$0xff] }
  0xd6   : > { %1294 = vmatmul.mubr.f32.gmra.mxu1 %v4961_v54  ;;  %1133 = vmatprep.mubr.f32.mxu0 %v4966_v55  ;;  %v961_v54 = vld [vmem:[#allocation6 + $0x210] sm:$0xff]  ;;  %v998_v55 = vld [vmem:[#allocation6 + $0x338] sm:$0xff] }
  0xd7   : > { %1537 = vmatpush1.msra.mxu1 %v1005_v37  ;;  %1387 = vmatprep.subr.mxu0 %v4571_v0  ;;  %v5291_v37 = vld [vmem:[%s4759_s18 + $0x82] sm:$0xff] }
  0xd8   : > { %1538 = vmatprep.subr.mxu1 %v4571_v0  ;;  %1134 = vmatmul.mubr.f32.gmra.mxu0 %v4943_v48  ;;  %v1001_v48 = vld [vmem:[#allocation6 + $0x350] sm:$0xff] }
  0xd9   : > { %1539 = vmatpush1.msra.mxu1 %v1004_v38  ;;  %1298 = vmatprep.mubr.f32.mxu1 %v4972_v58  ;;  %v5298_v38 = vld [vmem:[%s4759_s18 + $0x92] sm:$0xff] }
  0xda   : > { %1388 = vmatpush1.msra.mxu0 %v965_v39  ;;  %1540 = vmatprep.subr.mxu1 %v4571_v0  ;;  %v5302_v39 = vld [vmem:[%s4759_s18 + $0x9a] sm:$0xff] }
  0xdb   : > { %1299 = vmatmul.mubr.f32.gmra.mxu1 %v4976_v60  ;;  %1389 = vmatprep.subr.mxu0 %v4571_v0  ;;  %v960_v60 = vld [vmem:[#allocation6 + $0x208] sm:$0xff] }
  0xdc   : > { %1541 = vmatpush1.msra.mxu1 %v1003_v42  ;;  %1390 = vmatpush1.msra.mxu0 %v964_v44  ;;  %v983_v42 = vld [vmem:[#allocation6 + $0x2c0] sm:$0xff] }
  0xdd   : > { %1542 = vmatprep.subr.mxu1 %v4571_v0  ;;  %1138 = vmatprep.mubr.f32.mxu0 %v4982_v62  ;;  %v997_v62 = vld [vmem:[#allocation6 + $0x330] sm:$0xff]  ;;  %v5310_v44 = vld [vmem:[%s4759_s18 + $0xaa] sm:$0xff] }
  0xde   : > { %1543 = vmatpush1.msra.mxu1 %v1002_v45  ;;  %1139 = vmatmul.mubr.f32.gmra.mxu0 %v4958_v53  ;;  %v999_v53 = vld [vmem:[#allocation6 + $0x340] sm:$0xff] }
  0xdf   : > { %1303 = vmatprep.mubr.f32.mxu1 %v4985_v63  ;;  %1391 = vmatprep.subr.mxu0 %v4571_v0  ;;  %v5314_v45 = vld [vmem:[%s4759_s18 + $0xb2] sm:$0xff] }
  0xe0   : > { %1544 = vmatprep.subr.mxu1 %v4571_v0  ;;  %1304 = vmatmul.mubr.f32.gmra.mxu1 %v4990_v1  ;;  %v959_v1 = vld [vmem:[#allocation6 + $0x200] sm:$0xff] }
  0xe1   : > { %1392 = vmatpush1.msra.mxu0 %v963_v47  ;;  %1545 = vmatpush1.msra.mxu1 %v1001_v48  ;;  %v1017_v47 = vld [vmem:[#allocation6 + $0x3d0] sm:$0xff]  ;;  %v1016_v48 = vld [vmem:[#allocation6 + $0x3c8] sm:$0xff] }
  0xe2   : > { %1393 = vmatprep.subr.mxu0 %v4571_v0  ;;  %1546 = vmatprep.subr.mxu1 %v4571_v0 }
  0xe3   : > { %1143 = vmatprep.mubr.f32.mxu0 %v4996_v4  ;;  %1394 = vmatpush1.msra.mxu0 %v962_v50  ;;  %v996_v4 = vld [vmem:[#allocation6 + $0x328] sm:$0xff]  ;;  %v981_v50 = vld [vmem:[#allocation6 + $0x2b0] sm:$0xff] }
  0xe4   : > { %1547 = vmatpush1.msra.mxu1 %v1000_v51  ;;  %1144 = vmatmul.mubr.f32.gmra.mxu0 %v4972_v58  ;;  %v5212_v58 = vld [vmem:[%s4759_s18 + $0xf1] sm:$0xff] }
  0xe5   : > { %1308 = vmatprep.mubr.f32.mxu1 %v5000_v5  ;;  %1548 = vmatprep.subr.mxu1 %v4571_v0  ;;  %v1015_v51 = vld [vmem:[#allocation6 + $0x3c0] sm:$0xff] }
  0xe6   : > { %1309 = vmatmul.mubr.f32.gmra.mxu1 %v5003_v6  ;;  %1395 = vmatprep.subr.mxu0 %v4571_v0  ;;  %v5221_v6 = vld [vmem:[%s4759_s18 + $0xf9] sm:$0xff] }
  0xe7   : > { %1549 = vmatpush1.msra.mxu1 %v999_v53  ;;  %1396 = vmatpush1.msra.mxu0 %v961_v54  ;;  %v980_v53 = vld [vmem:[#allocation6 + $0x2a8] sm:$0xff] }
  0xe8   : > { %1550 = vmatprep.subr.mxu1 %v4571_v0  ;;  %1148 = vmatprep.mubr.f32.mxu0 %v5010_v9  ;;  %v990_v9 = vld [vmem:[#allocation6 + $0x2f8] sm:$0xff]  ;;  %v6276_v54 = vld [vmem:[#allocation32_spill] sm:$0xff] }
  0xe9   : > { %1397 = vmatprep.subr.mxu0 %v4571_v0  ;;  %1551 = vmatpush1.msra.mxu1 %v998_v55  ;;  %v1014_v55 = vld [vmem:[#allocation6 + $0x3b8] sm:$0xff] }
  0xea   : > { %1149 = vmatmul.mubr.f32.gmra.mxu0 %v4985_v63  ;;  %1313 = vmatprep.mubr.f32.mxu1 %v5014_v10  ;;  %v5226_v63 = vld [vmem:[%s4759_s18 + $0xf2] sm:$0xff] }
  0xeb   : > { %1398 = vmatpush1.msra.mxu0 %v960_v60  ;;  %1552 = vmatprep.subr.mxu1 %v4571_v0  ;;  %v6277_v60 = vld [vmem:[#allocation33_spill] sm:$0xff] }
  0xec   : > { %1314 = vmatmul.mubr.f32.gmra.mxu1 %v5017_v11  ;;  %1399 = vmatprep.subr.mxu0 %v4571_v0  ;;  %v995_v11 = vld [vmem:[#allocation6 + $0x320] sm:$0xff] }
  0xed   : > { %1553 = vmatpush1.msra.mxu1 %v997_v62  ;;  %1153 = vmatprep.mubr.f32.mxu0 %v5024_v14  ;;  %v5235_v14 = vld [vmem:[%s4759_s18 + $0x108] sm:$0xff]  ;;  %v1013_v62 = vld [vmem:[#allocation6 + $0x3b0] sm:$0xff] }
  0xee   : > { %1554 = vmatprep.subr.mxu1 %v4571_v0  ;;  %1400 = vmatpush1.msra.mxu0 %v959_v1  ;;  %v6278_v1 = vld [vmem:[#allocation34_spill] sm:$0xff] }
  0xef   : > { %1555 = vmatpush1.msra.mxu1 %v996_v4  ;;  %1154 = vmatmul.mubr.f32.gmra.mxu0 %v5000_v5  ;;  %v5240_v5 = vld [vmem:[%s4759_s18 + $0xfa] sm:$0xff]  ;;  %v6279_v4 = vld [vmem:[#allocation35_spill] sm:$0xff] }
  0xf0   : > { %1318 = vmatprep.mubr.f32.mxu1 %v5028_v15  ;;  %1401 = vmatprep.subr.mxu0 %v4571_v0 }
  0xf1   : > { %1556 = vmatprep.subr.mxu1 %v4571_v0  ;;  %1319 = vmatmul.mubr.f32.gmra.mxu1 %v5031_v16  ;;  %v993_v16 = vld [vmem:[#allocation6 + $0x310] sm:$0xff] }
  0xf2   : > { %1402 = vmatpush2.msra.mxu0 %v990_v9  ;;  %1557 = vmatpush1.msra.mxu1 %v995_v11  ;;  %v978_v9 = vld [vmem:[#allocation6 + $0x298] sm:$0xff] }
  0xf3   : > { %1558 = vmatprep.subr.mxu1 %v4571_v0  ;;  %1158 = vmatprep.mubr.f32.mxu0 %v5038_v19  ;;  %v5255_v19 = vld [vmem:[%s4759_s18 + $0x32] sm:$0xff]  ;;  %v5338_v11 = vld [vmem:[%s4759_s18 + $0x10a] sm:$0xff] }
  0xf4   : > { %1403 = vmatprep.subr.mxu0 %v4571_v0  ;;  %1559 = vmatpush1.msra.mxu1 %v994_v57  ;;  %v1012_v57 = vld [vmem:[#allocation6 + $0x3a8] sm:$0xff] }
  0xf5   : > { %1159 = vmatmul.mubr.f32.gmra.mxu0 %v5014_v10  ;;  %1323 = vmatprep.mubr.f32.mxu1 %v5042_v20  ;;  %v5263_v10 = vld [vmem:[%s4759_s18 + $0x4a] sm:$0xff] }
  0xf6   : > { %1404 = vmatpush2.msra.mxu0 %v989_v2  ;;  %1560 = vmatprep.subr.mxu1 %v4571_v0  ;;  %v5341_v2 = vld [vmem:[%s4759_s18 + $0x112] sm:$0xff] }
  0xf7   : > { %1324 = vmatmul.mubr.f32.gmra.mxu1 %v5048_v23  ;;  %1405 = vmatprep.subr.mxu0 %v4571_v0  ;;  %v991_v23 = vld [vmem:[#allocation6 + $0x300] sm:$0xff] }
  0xf8   : > { %1561 = vmatpush1.msra.mxu1 %v993_v16  ;;  %1406 = vmatpush2.msra.mxu0 %v988_v34  ;;  %v1011_v16 = vld [vmem:[#allocation6 + $0x3a0] sm:$0xff]  ;;  %v977_v34 = vld [vmem:[#allocation6 + $0x290] sm:$0xff] }
  0xf9   : > { %1562 = vmatprep.subr.mxu1 %v4571_v0  ;;  %1163 = vmatprep.mubr.f32.mxu0 %v5052_v24  ;;  %v1022_v24 = vld [vmem:[#allocation6 + $0x3f8] sm:$0xff] }
  0xfa   : > { %1563 = vmatpush1.msra.mxu1 %v992_v27  ;;  %1164 = vmatmul.mubr.f32.gmra.mxu0 %v5028_v15  ;;  %v1021_v15 = vld [vmem:[#allocation6 + $0x3f0] sm:$0xff]  ;;  %v1010_v27 = vld [vmem:[#allocation6 + $0x398] sm:$0xff] }
  0xfb   : > { %1328 = vmatprep.mubr.f32.mxu1 %v5055_v25  ;;  %1407 = vmatprep.subr.mxu0 %v4571_v0 }
  0xfc   : > { %1564 = vmatprep.subr.mxu1 %v4571_v0  ;;  %1329 = vmatmul.mubr.f32.gmra.mxu1 %v5062_v35  ;;  %v985_v35 = vld [vmem:[#allocation6 + $0x2d0] sm:$0xff] }
  0xfd   : > { %1408 = vmatpush2.msra.mxu0 %v987_v31  ;;  %1565 = vmatpush1.msra.mxu1 %v991_v23  ;;  %v976_v31 = vld [vmem:[#allocation6 + $0x288] sm:$0xff]  ;;  %v1009_v23 = vld [vmem:[#allocation6 + $0x390] sm:$0xff] }
  0xfe   : > { %1409 = vmatprep.subr.mxu0 %v4571_v0  ;;  %1566 = vmatprep.subr.mxu1 %v4571_v0 }
  0xff   : > { %1168 = vmatprep.mubr.f32.mxu0 %v5066_v41  ;;  %1410 = vmatpush2.msra.mxu0 %v986_v32  ;;  %v1020_v41 = vld [vmem:[#allocation6 + $0x3e8] sm:$0xff]  ;;  %v975_v32 = vld [vmem:[#allocation6 + $0x280] sm:$0xff] }
 0x100   : > { %1567 = vmatpush2.msra.mxu1 %v1022_v24  ;;  %1169 = vmatmul.mubr.f32.gmra.mxu0 %v5042_v20  ;;  %v984_v20 = vld [vmem:[#allocation6 + $0x2c8] sm:$0xff] }
 0x101   : > { %1333 = vmatprep.mubr.f32.mxu1 %v5072_v46  ;;  %1568 = vmatprep.subr.mxu1 %v4571_v0  ;;  %v1008_v24 = vld [vmem:[#allocation6 + $0x388] sm:$0xff] }
 0x102   : > { %1334 = vmatmul.mubr.f32.gmra.mxu1 %v5075_v49  ;;  %1411 = vmatprep.subr.mxu0 %v4571_v0  ;;  %v1019_v49 = vld [vmem:[#allocation6 + $0x3e0] sm:$0xff] }
 0x103   : > { %1569 = vmatpush2.msra.mxu1 %v1021_v15  ;;  %1412 = vmatpush2.msra.mxu0 %v985_v35  ;;  %v1038_v15 = vld [vmem:[#allocation6 + $0x478] sm:$0xff]  ;;  %v4318_v35 = vld [vmem:[#allocation4 + $0x68] sm:$0xff] }
 0x104   : > { %1570 = vmatprep.subr.mxu1 %v4571_v0  ;;  %1173 = vmatprep.mubr.f32.mxu0 %v5080_v56  ;;  %v1018_v56 = vld [vmem:[#allocation6 + $0x3d8] sm:$0xff] }
 0x105   : > { %1413 = vmatprep.subr.mxu0 %v4571_v0  ;;  %1571 = vmatpush2.msra.mxu1 %v1020_v41  ;;  %v1007_v41 = vld [vmem:[#allocation6 + $0x380] sm:$0xff] }
 0x106   : > { %1174 = vmatmul.mubr.f32.gmra.mxu0 %v5055_v25  ;;  %1338 = vmatprep.mubr.f32.mxu1 %v5086_v59  ;;  %v982_v25 = vld [vmem:[#allocation6 + $0x2b8] sm:$0xff] }
 0x107   : > { %1414 = vmatpush2.msra.mxu0 %v984_v20  ;;  %1572 = vmatprep.subr.mxu1 %v4571_v0  ;;  %v4319_v20 = vld [vmem:[#allocation4 + $0x48] sm:$0xff] }
 0x108   : > { %1339 = vmatmul.mubr.f32.gmra.mxu1 %v5089_v61  ;;  %1415 = vmatprep.subr.mxu0 %v4571_v0 }
 0x109   : > { %1573 = vmatpush2.msra.mxu1 %v1019_v49  ;;  %1178 = vmatprep.mubr.f32.mxu0 %v5093_v3  ;;  %v4320_v49 = vld [vmem:[#allocation4 + $0x3c0] sm:$0xff] }
 0x10a   : > { %1574 = vmatprep.subr.mxu1 %v4571_v0  ;;  %1416 = vmatpush2.msra.mxu0 %v983_v42  ;;  %v1037_v42 = vld [vmem:[#allocation6 + $0x470] sm:$0xff] }
 0x10b   : > { %1575 = vmatpush2.msra.mxu1 %v1018_v56  ;;  %1179 = vmatmul.mubr.f32.gmra.mxu0 %v5072_v46  ;;  %v6275_v46 = vld [vmem:[#allocation31_spill] sm:$0xff] }
 0x10c   : > { %1343 = vmatprep.mubr.f32.mxu1 %v5098_v8  ;;  %1417 = vmatprep.subr.mxu0 %v4571_v0  ;;  %v4321_v56 = vld [vmem:[#allocation4 + $0x220] sm:$0xff] }
 0x10d   : > { %1576 = vmatprep.subr.mxu1 %v4571_v0  ;;  %1344 = vmatmul.mubr.f32.gmra.mxu1 %v5101_v12 }
 0x10e   : > { %1418 = vmatpush2.msra.mxu0 %v982_v25  ;;  %1577 = vmatpush2.msra.mxu1 %v1017_v47  ;;  %v4322_v25 = vld [vmem:[#allocation4 + $0x558] sm:$0xff]  ;;  %v4323_v47 = vld [vmem:[#allocation4 + $0x170] sm:$0xff] }
 0x10f   : > { %1578 = vmatprep.subr.mxu1 %v4571_v0  ;;  %1183 = vmatprep.mubr.f32.mxu0 %v5104_v13 }
 0x110   : > { %1419 = vmatprep.subr.mxu0 %v4571_v0  ;;  %1579 = vmatpush2.msra.mxu1 %v1016_v48  ;;  %v1036_v48 = vld [vmem:[#allocation6 + $0x468] sm:$0xff] }
 0x111   : > { %1184 = vmatmul.mubr.f32.gmra.mxu0 %v5086_v59  ;;  %1348 = vmatprep.mubr.f32.mxu1 %v6275_v46  ;;  %v979_v59 = vld [vmem:[#allocation6 + $0x2a0] sm:$0xff] }
 0x112   : > { %1420 = vmatpush2.msra.mxu0 %v981_v50  ;;  %1580 = vmatprep.subr.mxu1 %v4571_v0  ;;  %v4324_v50 = vld [vmem:[#allocation4 + $0x298] sm:$0xff] }
 0x113   : > { %1349 = vmatmul.mubr.f32.gmra.mxu1 %v6276_v54  ;;  %1421 = vmatprep.subr.mxu0 %v4571_v0 }
 0x114   : > { %1581 = vmatpush2.msra.mxu1 %v1015_v51  ;;  %1422 = vmatpush2.msra.mxu0 %v980_v53  ;;  %v4325_v51 = vld [vmem:[#allocation4 + $0x320] sm:$0xff]  ;;  %v4326_v53 = vld [vmem:[#allocation4 + $0x450] sm:$0xff] }
 0x115   : > { %1582 = vmatprep.subr.mxu1 %v4571_v0  ;;  %1188 = vmatprep.mubr.f32.mxu0 %v6277_v60 }
 0x116   : > { %1583 = vmatpush2.msra.mxu1 %v1014_v55  ;;  %1189 = vmatmul.mubr.f32.gmra.mxu0 %v5098_v8  ;;  %v4327_v55 = vld [vmem:[#allocation4 + $0x3d0] sm:$0xff] }
 0x117   : > { %1353 = vmatprep.mubr.f32.mxu1 %v6278_v1  ;;  %1423 = vmatprep.subr.mxu0 %v4571_v0 }
 0x118   : > { %1584 = vmatprep.subr.mxu1 %v4571_v0  ;;  %1354 = vmatmul.mubr.f32.gmra.mxu1 %v6279_v4 }
 0x119   : > { %1424 = vmatpush2.msra.mxu0 %v979_v59  ;;  %1585 = vmatpush2.msra.mxu1 %v1013_v62  ;;  %v1034_v59 = vld [vmem:[#allocation6 + $0x458] sm:$0xff]  ;;  %v4328_v62 = vld [vmem:[#allocation4 + $0x2d0] sm:$0xff] }
 0x11a   : > { %1425 = vmatprep.subr.mxu0 %v4571_v0  ;;  %1586 = vmatprep.subr.mxu1 %v4571_v0 }
 0x11b   : > { %1193 = vmatprep.mubr.f32.mxu0 %v5130_v7  ;;  %1426 = vmatpush2.msra.mxu0 %v978_v9  ;;  %v1033_v9 = vld [vmem:[#allocation6 + $0x450] sm:$0xff] }
 0x11c   : > { %1587 = vmatpush2.msra.mxu1 %v1012_v57  ;;  %1194 = vmatmul.mubr.f32.gmra.mxu0 %v6275_v46  ;;  %v4329_v57 = vld [vmem:[#allocation4 + $0x60] sm:$0xff] }
 0x11d   : > { %1358 = vmatprep.mubr.f32.mxu1 %v5133_v43  ;;  %1588 = vmatprep.subr.mxu1 %v4571_v0 }
 0x11e   : > { %1359 = vmatmul.mubr.f32.gmra.mxu1 %v5136_v17  ;;  %1427 = vmatprep.subr.mxu0 %v4571_v0 }
 0x11f   : > { %1589 = vmatpush2.msra.mxu1 %v1011_v16  ;;  %1428 = vmatpush2.msra.mxu0 %v977_v34  ;;  %v4330_v16 = vld [vmem:[#allocation4 + $0x160] sm:$0xff]  ;;  %v1032_v34 = vld [vmem:[#allocation6 + $0x448] sm:$0xff] }
 0x120   : > { %1590 = vmatprep.subr.mxu1 %v4571_v0  ;;  %1198 = vmatprep.mubr.f32.mxu0 %v5141_v40 }
 0x121   : > { %1429 = vmatprep.subr.mxu0 %v4571_v0  ;;  %1591 = vmatpush2.msra.mxu1 %v1010_v27  ;;  %v4331_v27 = vld [vmem:[#allocation4 + $0x4e8] sm:$0xff] }
 0x122   : > { %1199 = vmatmul.mubr.f32.gmra.mxu0 %v6278_v1  ;;  %1363 = vmatprep.mubr.f32.mxu1 %v5144_v21 }
 0x123   : > { %1430 = vmatpush2.msra.mxu0 %v976_v31  ;;  %1592 = vmatprep.subr.mxu1 %v4571_v0  ;;  %v1031_v31 = vld [vmem:[#allocation6 + $0x440] sm:$0xff] }
 0x124   : > { %1364 = vmatmul.mubr.f32.gmra.mxu1 %v5147_v52  ;;  %1431 = vmatprep.subr.mxu0 %v4571_v0 }
 0x125   : > { %1593 = vmatpush2.msra.mxu1 %v1009_v23  ;;  %1432 = vmatpush2.msra.mxu0 %v975_v32  ;;  %v4332_v23 = vld [vmem:[#allocation4 + $0x28] sm:$0xff]  ;;  %v4333_v32 = vld [vmem:[#allocation4 + $0x4f0] sm:$0xff] }
 0x126   : > { %1594 = vmatprep.subr.mxu1 %v4571_v0  ;;  %1433 = vmatprep.mubr.f32.mxu0 %v4318_v35  ;;  %v1029_v35 = vld [vmem:[#allocation6 + $0x430] sm:$0xff] }
 0x127   : > { %1595 = vmatpush2.msra.mxu1 %v1008_v24  ;;  %1434 = vmatmul.mubr.f32.vlgmr.msra.gmra.mxu0 %v4319_v20  ;;  %v1030_v24 = vld [vmem:[#allocation6 + $0x438] sm:$0xff] }
 0x128   : > { %1596 = vmatprep.subr.mxu1 %v4571_v0  ;;  %4097 = vmatprep.subr.mxu0 %v1038_v15  ;;  %v1035_v0 = vld [vmem:[#allocation6 + $0x460] sm:$0xff]  ;;  %v4336_v20 = vld [vmem:[#allocation4 + $0x158] sm:$0xff] }
 0x129   : > { %1597 = vmatpush2.msra.mxu1 %v1007_v41  ;;  %1598 = vmatprep.mubr.f32.mxu1 %v4320_v49  ;;  %v4335_v41 = vld [vmem:[#allocation4 + $0x50] sm:$0xff] }
 0x12a   : > { %4098 = vmatpush3.msra.mxu0 %v1038_v15  ;;  %1599 = vmatmul.mubr.f32.vlgmr.msra.gmra.mxu1 %v4321_v56  ;;  %v4334_v15 = vld [vmem:[#allocation4 + $0x308] sm:$0xff]  ;;  %v1027_v56 = vld [vmem:[#allocation6 + $0x420] sm:$0xff] }
 0x12b   : > { %1438 = vmatprep.mubr.f32.mxu0 %v4322_v25  ;;  %1603 = vmatprep.mubr.f32.mxu1 %v4323_v47  ;;  %v4338_v25 = vld [vmem:[#allocation4 + $0x1b8] sm:$0xff] }
 0x12c   : > { %1439 = vmatmul.mubr.f32.gmra.mxu0 %v4324_v50  ;;  %4099 = vmatprep.subr.mxu0 %v1037_v42  ;;  %v4340_v50 = vld [vmem:[#allocation4 + $0x478] sm:$0xff] }
 0x12d   : > { %4100 = vmatpush3.msra.mxu0 %v1037_v42  ;;  %1443 = vmatprep.mubr.f32.mxu0 %v4325_v51  ;;  %v4337_v42 = vld [vmem:[#allocation4 + $0x2d8] sm:$0xff]  ;;  %v1025_v51 = vld [vmem:[#allocation6 + $0x410] sm:$0xff] }
 0x12e   : > { %1604 = vmatmul.mubr.f32.gmra.mxu1 %v4326_v53  ;;  %4101 = vmatprep.subr.mxu0 %v1036_v48  ;;  %v4342_v53 = vld [vmem:[#allocation4 + $0x580] sm:$0xff] }
 0x12f   : > { %1608 = vmatprep.mubr.f32.mxu1 %v4327_v55  ;;  %4102 = vmatpush3.msra.mxu0 %v1036_v48  ;;  %v1026_v48 = vld [vmem:[#allocation6 + $0x418] sm:$0xff] }
 0x130   : > { %1444 = vmatmul.mubr.f32.gmra.mxu0 %v4320_v49  ;;  %4103 = vmatprep.subr.mxu0 %v1035_v0  ;;  %v1028_v49 = vld [vmem:[#allocation6 + $0x428] sm:$0xff] }
 0x131   : > { %1448 = vmatprep.mubr.f32.mxu0 %v4328_v62  ;;  %4104 = vmatpush3.msra.mxu0 %v1035_v0  ;;  %v4341_v0 = vld [vmem:[#allocation4 + $0x440] sm:$0xff] }
 0x132   : > { %1609 = vmatmul.mubr.f32.gmra.mxu1 %v4329_v57  ;;  %4105 = vmatprep.subr.mxu0 %v1034_v59  ;;  %v1023_v62 = vld [vmem:[#allocation6 + $0x400] sm:$0xff]  ;;  %v4345_v57 = vld [vmem:[#allocation4 + $0x248] sm:$0xff] }
 0x133   : > { %1613 = vmatprep.mubr.f32.mxu1 %v4330_v16  ;;  %4106 = vmatpush3.msra.mxu0 %v1034_v59  ;;  %v4343_v59 = vld [vmem:[#allocation4 + $0x518] sm:$0xff] }
 0x134   : > { %1449 = vmatmul.mubr.f32.gmra.mxu0 %v4323_v47  ;;  %4107 = vmatprep.subr.mxu0 %v1033_v9  ;;  %v4339_v47 = vld [vmem:[#allocation4 + $0x3e0] sm:$0xff] }
 0x135   : > { %1453 = vmatprep.mubr.f32.mxu0 %v4331_v27  ;;  %4108 = vmatpush3.msra.mxu0 %v1033_v9  ;;  %v4344_v9 = vld [vmem:[#allocation4 + $0x300] sm:$0xff]  ;;  %v4348_v27 = vld [vmem:[#allocation4 + $0xf8] sm:$0xff] }
 0x136   : > { %1614 = vmatmul.mubr.f32.gmra.mxu1 %v4332_v23  ;;  %4109 = vmatprep.subr.mxu0 %v1032_v34  ;;  %v4350_v23 = vld [vmem:[#allocation4 + $0xa8] sm:$0xff] }
 0x137   : > { %1618 = vmatprep.mubr.f32.mxu1 %v4333_v32  ;;  %4110 = vmatpush3.msra.mxu0 %v1032_v34  ;;  %v4347_v34 = vld [vmem:[#allocation4 + $0x330] sm:$0xff] }
 0x138   : > { %1454 = vmatmul.mubr.f32.gmra.mxu0 %v4327_v55  ;;  %4111 = vmatprep.subr.mxu0 %v1031_v31  ;;  %v1024_v55 = vld [vmem:[#allocation6 + $0x408] sm:$0xff] }
 0x139   : > { %1458 = vmatprep.mubr.f32.mxu0 %v4334_v15  ;;  %4112 = vmatpush3.msra.mxu0 %v1031_v31  ;;  %v4349_v31 = vld [vmem:[#allocation4 + $0x310] sm:$0xff]  ;;  %v4353_v15 = vld [vmem:[#allocation4 + $0xe0] sm:$0xff] }
 0x13a   : > { %1619 = vmatmul.mubr.f32.gmra.mxu1 %v4335_v41  ;;  %4113 = vmatprep.subr.mxu0 %v1030_v24  ;;  %v4355_v41 = vld [vmem:[#allocation4 + $0x110] sm:$0xff] }
 0x13b   : > { %1623 = vmatprep.mubr.f32.mxu1 %v4336_v20  ;;  %4114 = vmatpush3.msra.mxu0 %v1030_v24  ;;  %v4352_v24 = vld [vmem:[#allocation4 + $0x370] sm:$0xff] }
 0x13c   : > { %1459 = vmatmul.mubr.f32.gmra.mxu0 %v4330_v16  ;;  %4115 = vmatprep.subr.mxu0 %v1029_v35  ;;  %v4346_v16 = vld [vmem:[#allocation4 + $0x128] sm:$0xff] }
 0x13d   : > { %1463 = vmatprep.mubr.f32.mxu0 %v4337_v42  ;;  %4116 = vmatpush3.msra.mxu0 %v1029_v35  ;;  %v4354_v35 = vld [vmem:[#allocation4 + $0x4d8] sm:$0xff] }
 0x13e   : > { %1624 = vmatmul.mubr.f32.gmra.mxu1 %v4338_v25  ;;  %4117 = vmatprep.subr.mxu0 %v1028_v49 }
 0x13f   : > { %1628 = vmatprep.mubr.f32.mxu1 %v4339_v47  ;;  %4118 = vmatpush3.msra.mxu0 %v1028_v49 }
 0x140   : > { %1464 = vmatmul.mubr.f32.gmra.mxu0 %v4333_v32  ;;  %4119 = vmatprep.subr.mxu0 %v1027_v56  ;;  %v4351_v32 = vld [vmem:[#allocation4 + $0x3e8] sm:$0xff] }
 0x141   : > { %1468 = vmatprep.mubr.f32.mxu0 %v4340_v50  ;;  %4120 = vmatpush3.msra.mxu0 %v1027_v56 }
 0x142   : > { %1629 = vmatmul.mubr.f32.gmra.mxu1 %v4341_v0  ;;  %4121 = vmatprep.subr.mxu0 %v1026_v48 }
 0x143   : > { %1633 = vmatprep.mubr.f32.mxu1 %v4342_v53  ;;  %4122 = vmatpush3.msra.mxu0 %v1026_v48 }
 0x144   : > { %1469 = vmatmul.mubr.f32.gmra.mxu0 %v4336_v20  ;;  %4123 = vmatprep.subr.mxu0 %v1025_v51 }
 0x145   : > { %1473 = vmatprep.mubr.f32.mxu0 %v4343_v59  ;;  %4124 = vmatpush3.msra.mxu0 %v1025_v51 }
 0x146   : > { %1634 = vmatmul.mubr.f32.gmra.mxu1 %v4344_v9  ;;  %4125 = vmatprep.subr.mxu0 %v1024_v55 }
 0x147   : > { %1638 = vmatprep.mubr.f32.mxu1 %v4345_v57  ;;  %4126 = vmatpush3.msra.mxu0 %v1024_v55 }
 0x148   : > { %1474 = vmatmul.mubr.f32.gmra.mxu0 %v4339_v47  ;;  %4127 = vmatprep.subr.mxu0 %v1023_v62 }
 0x149   : > { %1478 = vmatprep.mubr.f32.mxu0 %v4346_v16  ;;  %4128 = vmatpush3.msra.mxu0 %v1023_v62 }
 0x14a   : > { %1639 = vmatmul.mubr.f32.gmra.mxu1 %v4347_v34 }
 0x14b   : > { %1643 = vmatprep.mubr.f32.mxu1 %v4348_v27 }
 0x14c   : > { %1479 = vmatmul.mubr.f32.gmra.mxu0 %v4342_v53 }
 0x14d   : > { %1483 = vmatprep.mubr.f32.mxu0 %v4349_v31 }
 0x14e   : > { %1644 = vmatmul.mubr.f32.gmra.mxu1 %v4350_v23 }
 0x14f   : > { %1648 = vmatprep.mubr.f32.mxu1 %v4351_v32 }
 0x150   : > { %1484 = vmatmul.mubr.f32.gmra.mxu0 %v4345_v57 }
 0x151   : > { %1488 = vmatprep.mubr.f32.mxu0 %v4352_v24 }
 0x152   : > { %1649 = vmatmul.mubr.f32.gmra.mxu1 %v4353_v15 }
 0x153   : > { %1653 = vmatprep.mubr.f32.mxu1 %v5093_v3 }
 0x154   : > { %1489 = vmatmul.mubr.f32.gmra.mxu0 %v4348_v27 }
 0x155   : > { %1493 = vmatprep.mubr.f32.mxu0 %v5089_v61 }
 0x156   : > { %1654 = vmatmul.mubr.f32.gmra.mxu1 %v4354_v35 }
 0x157   : > { %1658 = vmatprep.mubr.f32.mxu1 %v5104_v13 }
 0x158   : > { %1494 = vmatmul.mubr.f32.gmra.mxu0 %v4351_v32 }
 0x159   : > { %1498 = vmatprep.mubr.f32.mxu0 %v5101_v12 }
 0x15a   : > { %1659 = vmatmul.mubr.f32.gmra.mxu1 %v4355_v41 }
 0x15b   : > { %1663 = vmatprep.mubr.f32.mxu1 %v6277_v60 }
 0x15c   : > { %1499 = vmatmul.mubr.f32.gmra.mxu0 %v5093_v3 }
 0x15d   : > { %1503 = vmatprep.mubr.f32.mxu0 %v6276_v54 }
 0x15e   : > { %1664 = vmatmul.mubr.f32.gmra.mxu1 %v5098_v8 }
 0x15f   : > { %1668 = vmatprep.mubr.f32.mxu1 %v5130_v7 }
 0x160   : > { %1504 = vmatmul.mubr.f32.gmra.mxu0 %v5104_v13 }
 0x161   : > { %1508 = vmatprep.mubr.f32.mxu0 %v6279_v4 }
 0x162   : > { %1669 = vmatmul.mubr.f32.gmra.mxu1 %v6275_v46 }
 0x163   : > { %1673 = vmatprep.mubr.f32.mxu1 %v5141_v40 }
 0x164   : > { %1509 = vmatmul.mubr.f32.gmra.mxu0 %v6277_v60 }
 0x165   : > { %1513 = vmatprep.mubr.f32.mxu0 %v5136_v17 }
 0x166   : > { %1674 = vmatmul.mubr.f32.gmra.mxu1 %v6278_v1 }
 0x167   : > { %1678 = vmatprep.mubr.f32.mxu1 %v5212_v58 }
 0x168   : > { %1514 = vmatmul.mubr.f32.gmra.mxu0 %v5130_v7 }
 0x169   : > { %1518 = vmatprep.mubr.f32.mxu0 %v5147_v52 }
 0x16a   : > { %1679 = vmatmul.mubr.f32.gmra.mxu1 %v5133_v43 }
 0x16b   : > { %1683 = vmatprep.mubr.f32.mxu1 %v5221_v6 }
 0x16c   : > { %1519 = vmatmul.mubr.f32.gmra.mxu0 %v5141_v40 }
 0x16d   : > { %1523 = vmatprep.mubr.f32.mxu0 %v5226_v63 }
 0x16e   : > { %1684 = vmatmul.mubr.f32.gmra.mxu1 %v5144_v21 }
 0x16f   : > { %1688 = vmatprep.mubr.f32.mxu1 %v5232_v28 }
 0x170   : > { %1524 = vmatmul.mubr.f32.gmra.mxu0 %v5212_v58 }
 0x171   : > { %1528 = vmatprep.mubr.f32.mxu0 %v5240_v5 }
 0x172   : > { %1689 = vmatmul.mubr.f32.gmra.mxu1 %v5235_v14 }
 0x173   : > { %1693 = vmatprep.mubr.f32.mxu1 %v5246_v18 }
 0x174   : > { %1529 = vmatmul.mubr.f32.gmra.mxu0 %v5221_v6 }
 0x175   : > { %4129 = vmatprep.mubr.f32.mxu0 %v5255_v19 }
 0x176   : > { %1694 = vmatmul.mubr.f32.gmra.mxu1 %v5249_v22 }
 0x178   : > { %4130 = vmatmul.mubr.f32.vlgmr.msra.gmra.mxu0 %v5258_v26  ;;  %v4356_v26 = vld [vmem:[#allocation4 + $0x3a0] sm:$0xff] }
 0x179   : > { %4132 = vmatprep.mubr.f32.mxu0 %v5263_v10 }
 0x17c   : > { %4133 = vmatmul.mubr.f32.gmra.mxu0 %v5268_v30 }
 0x17d   : > { %4135 = vmatprep.mubr.f32.mxu0 %v5276_v29 }
 0x180   : > { %4136 = vmatmul.mubr.f32.gmra.mxu0 %v5279_v36  ;;  %v1105_v61 = vpop.f32.mrf.mxu0  ;;  %v4357_v36 = vld [vmem:[#allocation4 + $0x140] sm:$0xff] }
 0x181   : > { %4138 = vmatprep.mubr.f32.mxu0 %v5286_v33 }
 0x182   : > { %v1270_v3 = vpop.f32.mrf.mxu1  ;;  %v1107_v8 = vpop.f32.mrf.mxu0 }
 0x183   : > { %v5399_v12 = vadd.f32 %v1270_v3, %v1105_v61 }
 0x184   : > { %4139 = vmatmul.mubr.f32.gmra.mxu0 %v5291_v37  ;;  %v1272_v13 = vpop.f32.mrf.mxu1  ;;  %v1110_v21 = vpop.f32.mrf.mxu0 }
 0x185   : > { %4141 = vmatprep.mubr.f32.mxu0 %v5298_v38 }
 0x186   : > { %v1275_v40 = vpop.f32.mrf.mxu1  ;;  %v1112_v43 = vpop.f32.mrf.mxu0 }
 0x187   : > { %v5403_v7 = vadd.f32 %v1275_v40, %v1110_v21 }
 0x188   : > { %4142 = vmatmul.mubr.f32.gmra.mxu0 %v5302_v39  ;;  %v1277_v58 = vpop.f32.mrf.mxu1  ;;  %v1115_v6 = vpop.f32.mrf.mxu0 }
 0x189   : > { %4144 = vmatprep.mubr.f32.mxu0 %v5310_v44 }
 0x18a   : > { %v1280_v28 = vpop.f32.mrf.mxu1  ;;  %v1117_v14 = vpop.f32.mrf.mxu0 }
 0x18b   : > { %v5407_v18 = vadd.f32 %v1280_v28, %v1115_v6 }
 0x18c   : > { %4145 = vmatmul.mubr.f32.gmra.mxu0 %v5314_v45  ;;  %v1282_v22 = vpop.f32.mrf.mxu1  ;;  %v1120_v19 = vpop.f32.mrf.mxu0 }
 0x18d   : > { %4147 = vmatprep.mubr.f32.mxu0 %v4356_v26 }
 0x18e   : > { %v1285_v10 = vpop.f32.mrf.mxu1  ;;  %v1122_v30 = vpop.f32.mrf.mxu0 }
 0x18f   : > { %v5410_v29 = vadd.f32 %v1285_v10, %v1120_v19 }
 0x190   : > { %4148 = vmatmul.mubr.f32.gmra.mxu0 %v4357_v36  ;;  %v1287_v33 = vpop.f32.mrf.mxu1  ;;  %v1125_v37 = vpop.f32.mrf.mxu0 }
 0x191   : > { %4150 = vmatprep.mubr.f32.mxu0 %v5136_v17 }
 0x192   : > { %v1290_v38 = vpop.f32.mrf.mxu1  ;;  %v1127_v39 = vpop.f32.mrf.mxu0 }
 0x193   : > { %v5413_v44 = vadd.f32 %v1290_v38, %v1125_v37 }
 0x194   : > { %4151 = vmatmul.mubr.f32.gmra.mxu0 %v5147_v52  ;;  %v1292_v45 = vpop.f32.mrf.mxu1  ;;  %v1130_v46 = vpop.f32.mrf.mxu0 }
 0x195   : > { %4153 = vmatprep.mubr.f32.mxu0 %v5226_v63 }
 0x196   : > { %v1295_v54 = vpop.f32.mrf.mxu1  ;;  %v1132_v60 = vpop.f32.mrf.mxu0 }
 0x197   : > { %v5417_v1 = vadd.f32 %v1295_v54, %v1130_v46 }
 0x198   : > { %4154 = vmatmul.mubr.f32.gmra.mxu0 %v5240_v5  ;;  %v1297_v4 = vpop.f32.mrf.mxu1  ;;  %v1135_v20 = vpop.f32.mrf.mxu0 }
 0x199   : > { %4156 = vmatprep.mubr.f32.mxu0 %v5338_v11 }
 0x19a   : > { %v1137_v17 = vpop.f32.mrf.mxu0 }
 0x19b   : > { %v1300_v49 = vpop.f32.mrf.mxu1 }
 0x19c   : > { %4157 = vmatmul.mubr.f32.gmra.mxu0 %v5341_v2  ;;  %v5422_v42 = vadd.f32 %v1300_v49, %v1135_v20 }
 0x19d   : > { %v1302_v52 = vpop.f32.mrf.mxu1 }
 0x19e   : > { %v1140_v56 = vpop.f32.mrf.mxu0 }
 0x1a0   : > { %v1305_v25 = vpop.f32.mrf.mxu1  ;;  %v1142_v63 = vpop.f32.mrf.mxu0 }
 0x1a1   : > { %v5424_v47 = vadd.f32 %v1305_v25, %v1140_v56 }
 0x1a2   : > { %v1307_v48 = vpop.f32.mrf.mxu1 }
 0x1a4   : > { %v1145_v50 = vpop.f32.mrf.mxu0 }
 0x1a6   : > { %v1310_v51 = vpop.f32.mrf.mxu1  ;;  %v1147_v5 = vpop.f32.mrf.mxu0 }
 0x1a7   : > { %v5426_v0 = vadd.f32 %v1310_v51, %v1145_v50 }
 0x1a8   : > { %v1312_v53 = vpop.f32.mrf.mxu1 }
 0x1aa   : > { %v1150_v11 = vpop.f32.mrf.mxu0 }
 0x1ac   : > { %v1315_v55 = vpop.f32.mrf.mxu1  ;;  %v1152_v59 = vpop.f32.mrf.mxu0 }
 0x1ad   : > { %v5428_v62 = vadd.f32 %v1315_v55, %v1150_v11 }
 0x1ae   : > { %v1317_v2 = vpop.f32.mrf.mxu1 }
 0x1af   : > { %v1155_v9 = vpop.f32.mrf.mxu0 }
 0x1b1   : > { %v1320_v57 = vpop.f32.mrf.mxu1  ;;  %v1157_v16 = vpop.f32.mrf.mxu0 }
 0x1b2   : > { %v5430_v34 = vadd.f32 %v1320_v57, %v1155_v9 }
 0x1b3   : > { %v1322_v27 = vpop.f32.mrf.mxu1 }
 0x1b5   : > { %v1160_v31 = vpop.f32.mrf.mxu0 }
 0x1b7   : > { %v1325_v23 = vpop.f32.mrf.mxu1  ;;  %v1162_v32 = vpop.f32.mrf.mxu0 }
 0x1b8   : > { %v5432_v24 = vadd.f32 %v1325_v23, %v1160_v31 }
 0x1b9   : > { %v1327_v15 = vpop.f32.mrf.mxu1 }
 0x1ba   : > { %v1165_v35 = vpop.f32.mrf.mxu0 }
 0x1bc   : > { %v1330_v41 = vpop.f32.mrf.mxu1  ;;  %v1167_v61 = vpop.f32.mrf.mxu0 }
 0x1bd   : > { %v5434_v3 = vadd.f32 %v1330_v41, %v1165_v35 }
 0x1be   : > { %v1332_v8 = vpop.f32.mrf.mxu1 }
 0x1c0   : > { %v1170_v13 = vpop.f32.mrf.mxu0 }
 0x1c2   : > { %v1335_v21 = vpop.f32.mrf.mxu1  ;;  %v1172_v40 = vpop.f32.mrf.mxu0 }
 0x1c3   : > { %v5436_v43 = vadd.f32 %v1335_v21, %v1170_v13 }
 0x1c4   : > { %v1337_v58 = vpop.f32.mrf.mxu1 }
 0x1c6   : > { %v1175_v6 = vpop.f32.mrf.mxu0 }
 0x1c8   : > { %v1340_v28 = vpop.f32.mrf.mxu1  ;;  %v1177_v14 = vpop.f32.mrf.mxu0 }
 0x1c9   : > { %v5438_v22 = vadd.f32 %v1340_v28, %v1175_v6 }
 0x1ca   : > { %v1342_v19 = vpop.f32.mrf.mxu1 }
 0x1cb   : > { %v1180_v26 = vpop.f32.mrf.mxu0 }
 0x1cd   : > { %v1345_v10 = vpop.f32.mrf.mxu1  ;;  %v1182_v30 = vpop.f32.mrf.mxu0 }
 0x1ce   : > { %v5440_v36 = vadd.f32 %v1345_v10, %v1180_v26 }
 0x1cf   : > { %v1347_v33 = vpop.f32.mrf.mxu1 }
 0x1d1   : > { %v1185_v37 = vpop.f32.mrf.mxu0 }
 0x1d3   : > { %v1350_v38 = vpop.f32.mrf.mxu1  ;;  %v1187_v39 = vpop.f32.mrf.mxu0 }
 0x1d4   : > { %v5442_v45 = vadd.f32 %v1350_v38, %v1185_v37 }
 0x1d5   : > { %v1352_v46 = vpop.f32.mrf.mxu1 }
 0x1d6   : > { %v1190_v54 = vpop.f32.mrf.mxu0 }
 0x1d8   : > { %v1355_v60 = vpop.f32.mrf.mxu1  ;;  %v1192_v4 = vpop.f32.mrf.mxu0 }
 0x1d9   : > { %v5444_v20 = vadd.f32 %v1355_v60, %v1190_v54 }
 0x1da   : > { %v1357_v17 = vpop.f32.mrf.mxu1 }
 0x1dc   : > { %v1195_v49 = vpop.f32.mrf.mxu0 }
 0x1de   : > { %v1360_v52 = vpop.f32.mrf.mxu1  ;;  %v1197_v56 = vpop.f32.mrf.mxu0 }
 0x1df   : > { %v5446_v25 = vadd.f32 %v1360_v52, %v1195_v49 }
 0x1e0   : > { %v1362_v63 = vpop.f32.mrf.mxu1 }
 0x1e2   : > { %v1200_v48 = vpop.f32.mrf.mxu0 }
 0x1e4   : > { %v1365_v50 = vpop.f32.mrf.mxu1  ;;  %v1202_v51 = vpop.f32.mrf.mxu0 }
 0x1e5   : > { %v5448_v5 = vadd.f32 %v1365_v50, %v1200_v48 }
 0x1e6   : > { %v1367_v53 = vpop.f32.mrf.mxu1 }
 0x1e7   : > { %v1435_v11 = vpop.f32.mrf.mxu0 }
 0x1e8   : > { %v1436_v55 = vadd.f32 %v1435_v11, %v5399_v12 }
 0x1e9   : > { %v1437_v59 = vpop.f32.mrf.mxu0 }
 0x1ea   : > { %v1600_v2 = vpop.f32.mrf.mxu1 }
 0x1eb   : > { %v5451_v9 = vadd.f32 %v1600_v2, %v1436_v55 }
 0x1ec   : > { %v1440_v57 = vpop.f32.mrf.mxu0  ;;  %v1602_v16 = vpop.f32.mrf.mxu1 }
 0x1ed   : > { %v1441_v27 = vadd.f32 %v1440_v57, %v5403_v7 }
 0x1ee   : > { %v1442_v31 = vpop.f32.mrf.mxu0  ;;  %v1605_v23 = vpop.f32.mrf.mxu1 }
 0x1ef   : > { %v5454_v32 = vadd.f32 %v1605_v23, %v1441_v27 }
 0x1f0   : > { %v1445_v15 = vpop.f32.mrf.mxu0  ;;  %v1607_v35 = vpop.f32.mrf.mxu1 }
 0x1f1   : > { %v1446_v41 = vadd.f32 %v1445_v15, %v5407_v18 }
 0x1f2   : > { %v1447_v61 = vpop.f32.mrf.mxu0  ;;  %v1610_v8 = vpop.f32.mrf.mxu1 }
 0x1f3   : > { %v5457_v13 = vadd.f32 %v1610_v8, %v1446_v41 }
 0x1f4   : > { %v1450_v12 = vpop.f32.mrf.mxu0  ;;  %v1612_v21 = vpop.f32.mrf.mxu1 }
 0x1f5   : > { %v1451_v40 = vadd.f32 %v1450_v12, %v5410_v29 }
 0x1f6   : > { %v1452_v58 = vpop.f32.mrf.mxu0  ;;  %v1615_v6 = vpop.f32.mrf.mxu1 }
 0x1f7   : > { %v5460_v28 = vadd.f32 %v1615_v6, %v1451_v40 }
 0x1f8   : > { %v1455_v7 = vpop.f32.mrf.mxu0  ;;  %v1617_v14 = vpop.f32.mrf.mxu1 }
 0x1f9   : > { %v1456_v19 = vadd.f32 %v1455_v7, %v5413_v44 }
 0x1fa   : > { %v1457_v26 = vpop.f32.mrf.mxu0  ;;  %v1620_v10 = vpop.f32.mrf.mxu1 }
 0x1fb   : > { %v5463_v30 = vadd.f32 %v1620_v10, %v1456_v19 }
 0x1fc   : > { %v1460_v18 = vpop.f32.mrf.mxu0  ;;  %v1622_v33 = vpop.f32.mrf.mxu1 }
 0x1fd   : > { %v1461_v37 = vadd.f32 %v1460_v18, %v5417_v1 }
 0x1fe   : > { %v1462_v38 = vpop.f32.mrf.mxu0  ;;  %v1625_v39 = vpop.f32.mrf.mxu1 }
 0x1ff   : > { %v5466_v46 = vadd.f32 %v1625_v39, %v1461_v37 }
 0x200   : > { %v1465_v29 = vpop.f32.mrf.mxu0  ;;  %v1627_v54 = vpop.f32.mrf.mxu1 }
 0x201   : > { %v1466_v60 = vadd.f32 %v1465_v29, %v5422_v42 }
 0x202   : > { %v1467_v4 = vpop.f32.mrf.mxu0  ;;  %v1630_v17 = vpop.f32.mrf.mxu1 }
 0x203   : > { %v5469_v49 = vadd.f32 %v1630_v17, %v1466_v60 }
 0x204   : > { %v5471_v44 = vpop.f32.mrf.mxu0  ;;  %v1632_v52 = vpop.f32.mrf.mxu1 }
 0x206   : > { %v1472_v56 = vpop.f32.mrf.mxu0  ;;  %v5473_v63 = vpop.f32.mrf.mxu1 }
 0x208   : > { %v5475_v48 = vpop.f32.mrf.mxu0  ;;  %v1637_v1 = vpop.f32.mrf.mxu1 }
 0x20a   : > { %v1477_v50 = vpop.f32.mrf.mxu0  ;;  %v5477_v51 = vpop.f32.mrf.mxu1 }
 0x20c   : > { %v5479_v53 = vpop.f32.mrf.mxu0  ;;  %v1642_v11 = vpop.f32.mrf.mxu1 }
 0x20e   : > { %v1482_v42 = vpop.f32.mrf.mxu0  ;;  %v5481_v55 = vpop.f32.mrf.mxu1 }
 0x210   : > { %v5483_v59 = vpop.f32.mrf.mxu0  ;;  %v1647_v2 = vpop.f32.mrf.mxu1 }
 0x212   : > { %v1487_v57 = vpop.f32.mrf.mxu0  ;;  %v5485_v16 = vpop.f32.mrf.mxu1 }
 0x214   : > { %v5487_v27 = vpop.f32.mrf.mxu0  ;;  %v1652_v31 = vpop.f32.mrf.mxu1 }
 0x216   : > { %v1492_v23 = vpop.f32.mrf.mxu0  ;;  %v5489_v15 = vpop.f32.mrf.mxu1 }
 0x217   : > { %v5526_v23 = vld [vmem:[%s6219_s2] ss:$0 sm:$0xff] }
 0x218   : > { %v5491_v35 = vpop.f32.mrf.mxu0  ;;  %v1657_v41 = vpop.f32.mrf.mxu1 }
 0x21a   : > { %v1497_v61 = vpop.f32.mrf.mxu0  ;;  %v5493_v8 = vpop.f32.mrf.mxu1 }
 0x21c   : > { %v5495_v12 = vpop.f32.mrf.mxu0  ;;  %v1662_v21 = vpop.f32.mrf.mxu1 }
 0x21d   : > { %v5532_v21 = vld [vmem:[%s6220_s3] ss:$0 sm:$0xff] }
 0x21e   : > { %v1502_v40 = vpop.f32.mrf.mxu0  ;;  %v5497_v58 = vpop.f32.mrf.mxu1 }
 0x220   : > { %v5499_v6 = vpop.f32.mrf.mxu0  ;;  %v1667_v7 = vpop.f32.mrf.mxu1 }
 0x222   : > { %v1507_v14 = vpop.f32.mrf.mxu0  ;;  %v5501_v19 = vpop.f32.mrf.mxu1 }
 0x224   : > { %v5503_v26 = vpop.f32.mrf.mxu0  ;;  %v1672_v10 = vpop.f32.mrf.mxu1 }
 0x226   : > { %v1512_v18 = vpop.f32.mrf.mxu0  ;;  %v5505_v33 = vpop.f32.mrf.mxu1 }
 0x228   : > { %v5507_v37 = vpop.f32.mrf.mxu0  ;;  %v1677_v38 = vpop.f32.mrf.mxu1 }
 0x22a   : > { %v1517_v39 = vpop.f32.mrf.mxu0  ;;  %v5509_v29 = vpop.f32.mrf.mxu1 }
 0x22c   : > { %v5511_v54 = vpop.f32.mrf.mxu0  ;;  %v1682_v60 = vpop.f32.mrf.mxu1 }
 0x22e   : > { %v1522_v4 = vpop.f32.mrf.mxu0  ;;  %v5513_v17 = vpop.f32.mrf.mxu1 }
 0x230   : > { %v5515_v52 = vpop.f32.mrf.mxu0  ;;  %v1687_v56 = vpop.f32.mrf.mxu1 }
 0x232   : > { %v1527_v1 = vpop.f32.mrf.mxu0  ;;  %v5517_v50 = vpop.f32.mrf.mxu1 }
 0x234   : > { %v5519_v11 = vpop.f32.mrf.mxu0  ;;  %v1692_v42 = vpop.f32.mrf.mxu1 }
 0x236   : > { %v1532_v2 = vpop.f32.mrf.mxu0  ;;  %v5521_v57 = vpop.f32.mrf.mxu1 }
 0x238   : > { %v4131_v31 = vpop.f32.mrf.mxu0  ;;  %v1697_v41 = vpop.f32.mrf.mxu1 }
 0x239   : > { %v1771_v61 = vadd.f32 %v4131_v31, %v5454_v32  ;;  %v1471_v32 = vadd.f32 %v5471_v44, %v5424_v47  ;;  %v1481_v47 = vadd.f32 %v5479_v53, %v5428_v62 }
 0x23a   : > { %v1765_v40 = vpop.f32.mrf.mxu0 }
 0x23b   : > { %v1872_v7 = vmul.f32 %v5526_v23, %v1771_v61  ;;  %v1766_v14 = vadd.f32 %v1765_v40, %v5451_v9  ;;  %v1636_v61 = vadd.f32 %v5473_v63, %v1471_v32  ;;  %v1646_v53 = vadd.f32 %v5481_v55, %v1481_v47 }
 0x23c   : > { %v4134_v10 = vpop.f32.mrf.mxu0 }
 0x23d   : > { %v1899_v18 = vadd.f32 %v5532_v21, %v1872_v7  ;;  %v1871_v38 = vmul.f32 %v5526_v23, %v1766_v14  ;;  %v1781_v39 = vadd.f32 %v4134_v10, %v5460_v28  ;;  %v1476_v10 = vadd.f32 %v5475_v48, %v5426_v0 }
 0x23e   : > { %v1775_v60 = vpop.f32.mrf.mxu0 }
 0x23f   : > { %v1919_v4 = vmax.f32 %v1899_v18, 0.0  ;;  %v1898_v56 = vadd.f32 %v5532_v21, %v1871_v38  ;;  %v1874_v1 = vmul.f32 %v5526_v23, %v1781_v39  ;;  %v1776_v42 = vadd.f32 %v1775_v60, %v5457_v13 }
 0x240   : > { %v4137_v2 = vpop.f32.mrf.mxu0  ;;  %v1491_v39 = vadd.f32 %v5487_v27, %v5432_v24 }
 0x241   : > { %1939 = vst [vmem:[#allocation3 + $0x9] sm:$0xff] %v1919_v4  ;;  %v1918_v9 = vmax.f32 %v1898_v56, 0.0  ;;  %v1901_v31 = vadd.f32 %v5532_v21, %v1874_v1  ;;  %v1873_v41 = vmul.f32 %v5526_v23, %v1776_v42  ;;  %v1791_v28 = vadd.f32 %v4137_v2, %v5466_v46 }
 0x242   : > { %v1785_v44 = vpop.f32.mrf.mxu0  ;;  %v1641_v4 = vadd.f32 %v5477_v51, %v1476_v10  ;;  %v1486_v56 = vadd.f32 %v5483_v59, %v5430_v34  ;;  %v1656_v2 = vadd.f32 %v5489_v15, %v1491_v39  ;;  %v1506_v10 = vadd.f32 %v5499_v6, %v5438_v22 }
 0x243   : > { %1938 = vst [vmem:[#allocation3 + $0x1] sm:$0xff] %v1918_v9  ;;  %v1921_v40 = vmax.f32 %v1901_v31, 0.0  ;;  %v1900_v7 = vadd.f32 %v5532_v21, %v1873_v41  ;;  %v1876_v13 = vmul.f32 %v5526_v23, %v1791_v28  ;;  %v1786_v14 = vadd.f32 %v1785_v44, %v5463_v30 }
 0x244   : > { %v4140_v18 = vpop.f32.mrf.mxu0  ;;  %v1501_v9 = vadd.f32 %v5495_v12, %v5436_v43  ;;  %v1651_v41 = vadd.f32 %v5485_v16, %v1486_v56  ;;  %v1496_v28 = vadd.f32 %v5491_v35, %v5434_v3  ;;  %v1671_v39 = vadd.f32 %v5501_v19, %v1506_v10 }
 0x245   : > { %1941 = vst [vmem:[#allocation3 + $0x21] sm:$0xff] %v1921_v40  ;;  %v1920_v46 = vmax.f32 %v1900_v7, 0.0  ;;  %v1903_v63 = vadd.f32 %v5532_v21, %v1876_v13  ;;  %v1875_v38 = vmul.f32 %v5526_v23, %v1786_v14  ;;  %v1801_v62 = vadd.f32 %v4140_v18, %v1636_v61 }
 0x246   : > { %v1795_v32 = vpop.f32.mrf.mxu0  ;;  %v1666_v44 = vadd.f32 %v5497_v58, %v1501_v9  ;;  %v1511_v40 = vadd.f32 %v5503_v26, %v5440_v36  ;;  %v1661_v14 = vadd.f32 %v5493_v8, %v1496_v28 }
 0x247   : > { %1940 = vst [vmem:[#allocation3 + $0x19] sm:$0xff] %v1920_v46  ;;  %v1923_v60 = vmax.f32 %v1903_v63, 0.0  ;;  %v1902_v30 = vadd.f32 %v5532_v21, %v1875_v38  ;;  %v1878_v0 = vmul.f32 %v5526_v23, %v1801_v62  ;;  %v1796_v48 = vadd.f32 %v1795_v32, %v5469_v49 }
 0x248   : > { %v4143_v1 = vpop.f32.mrf.mxu0  ;;  %v1676_v63 = vadd.f32 %v5505_v33, %v1511_v40  ;;  %v1521_v38 = vadd.f32 %v5511_v54, %v5444_v20  ;;  %v1516_v32 = vadd.f32 %v5507_v37, %v5442_v45 }
 0x249   : > { %1943 = vst [vmem:[#allocation3 + $0x39] sm:$0xff] %v1923_v60  ;;  %v1922_v55 = vmax.f32 %v1902_v30, 0.0  ;;  %v1905_v42 = vadd.f32 %v5532_v21, %v1878_v0  ;;  %v1877_v24 = vmul.f32 %v5526_v23, %v1796_v48  ;;  %v1811_v27 = vadd.f32 %v4143_v1, %v1646_v53 }
 0x24a   : > { %v1805_v31 = vpop.f32.mrf.mxu0  ;;  %v1686_v0 = vadd.f32 %v5513_v17, %v1521_v38  ;;  %v1531_v48 = vadd.f32 %v5519_v11, %v5448_v5  ;;  %v1681_v1 = vadd.f32 %v5509_v29, %v1516_v32 }
 0x24b   : > { %1942 = vst [vmem:[#allocation3 + $0x31] sm:$0xff] %v1922_v55  ;;  %v1925_v49 = vmax.f32 %v1905_v42, 0.0  ;;  %v1904_v51 = vadd.f32 %v5532_v21, %v1877_v24  ;;  %v1880_v34 = vmul.f32 %v5526_v23, %v1811_v27  ;;  %v1806_v59 = vadd.f32 %v1805_v31, %v1641_v4 }
 0x24c   : > { %v4146_v61 = vpop.f32.mrf.mxu0  ;;  %v1526_v55 = vadd.f32 %v5515_v52, %v5446_v25  ;;  %v1696_v27 = vadd.f32 %v5521_v57, %v1531_v48 }
 0x24d   : > { %1945 = vst [vmem:[#allocation3 + $0x51] sm:$0xff] %v1925_v49  ;;  %v1924_v47 = vmax.f32 %v1904_v51, 0.0  ;;  %v1907_v15 = vadd.f32 %v5532_v21, %v1880_v34  ;;  %v1879_v43 = vmul.f32 %v5526_v23, %v1806_v59  ;;  %v1821_v12 = vadd.f32 %v4146_v61, %v1656_v2 }
 0x24e   : > { %v1815_v7 = vpop.f32.mrf.mxu0  ;;  %v1691_v25 = vadd.f32 %v5517_v50, %v1526_v55 }
 0x24f   : > { %1944 = vst [vmem:[#allocation3 + $0x49] sm:$0xff] %v1924_v47  ;;  %v1927_v13 = vmax.f32 %v1907_v15, 0.0  ;;  %v1906_v16 = vadd.f32 %v5532_v21, %v1879_v43  ;;  %v1882_v3 = vmul.f32 %v5526_v23, %v1821_v12  ;;  %v1816_v35 = vadd.f32 %v1815_v7, %v1651_v41 }
 0x250   : > { %v4149_v18 = vpop.f32.mrf.mxu0 }
 0x251   : > { %1947 = vst [vmem:[#allocation3 + $0x69] sm:$0xff] %v1927_v13  ;;  %v1926_v46 = vmax.f32 %v1906_v16, 0.0  ;;  %v1909_v58 = vadd.f32 %v5532_v21, %v1882_v3  ;;  %v1881_v36 = vmul.f32 %v5526_v23, %v1816_v35  ;;  %v1831_v26 = vadd.f32 %v4149_v18, %v1666_v44 }
 0x252   : > { %v1825_v62 = vpop.f32.mrf.mxu0 }
 0x253   : > { %1946 = vst [vmem:[#allocation3 + $0x61] sm:$0xff] %v1926_v46  ;;  %v1929_v53 = vmax.f32 %v1909_v58, 0.0  ;;  %v1908_v8 = vadd.f32 %v5532_v21, %v1881_v36  ;;  %v1884_v22 = vmul.f32 %v5526_v23, %v1831_v26  ;;  %v1826_v6 = vadd.f32 %v1825_v62, %v1661_v14 }
 0x254   : > { %v4152_v60 = vpop.f32.mrf.mxu0 }
 0x255   : > { %1949 = vst [vmem:[#allocation3 + $0x81] sm:$0xff] %v1929_v53  ;;  %v1928_v30 = vmax.f32 %v1908_v8, 0.0  ;;  %v1911_v33 = vadd.f32 %v5532_v21, %v1884_v22  ;;  %v1883_v20 = vmul.f32 %v5526_v23, %v1826_v6  ;;  %v1841_v54 = vadd.f32 %v4152_v60, %v1676_v63 }
 0x256   : > { %v1835_v4 = vpop.f32.mrf.mxu0 }
 0x257   : > { %1948 = vst [vmem:[#allocation3 + $0x79] sm:$0xff] %v1928_v30  ;;  %v1931_v56 = vmax.f32 %v1911_v33, 0.0  ;;  %v1910_v19 = vadd.f32 %v5532_v21, %v1883_v20  ;;  %v1886_v45 = vmul.f32 %v5526_v23, %v1841_v54  ;;  %v1836_v37 = vadd.f32 %v1835_v4, %v1671_v39 }
 0x258   : > { %v4155_v42 = vpop.f32.mrf.mxu0 }
 0x259   : > { %1951 = vst [vmem:[#allocation3 + $0x99] sm:$0xff] %v1931_v56  ;;  %v1930_v24 = vmax.f32 %v1910_v19, 0.0  ;;  %v1913_v17 = vadd.f32 %v5532_v21, %v1886_v45  ;;  %v1885_v5 = vmul.f32 %v5526_v23, %v1836_v37  ;;  %v1851_v11 = vadd.f32 %v4155_v42, %v1686_v0 }
 0x25a   : > { %v1845_v2 = vpop.f32.mrf.mxu0 }
 0x25b   : > { %1950 = vst [vmem:[#allocation3 + $0x91] sm:$0xff] %v1930_v24  ;;  %v1933_v9 = vmax.f32 %v1913_v17, 0.0  ;;  %v1912_v31 = vadd.f32 %v5532_v21, %v1885_v5  ;;  %v1888_v29 = vmul.f32 %v5526_v23, %v1851_v11  ;;  %v1846_v49 = vadd.f32 %v1845_v2, %v1681_v1 }
 0x25c   : > { %v4158_v52 = vpop.f32.mrf.mxu0 }
 0x25d   : > { %1953 = vst [vmem:[#allocation3 + $0xb1] sm:$0xff] %v1933_v9  ;;  %v1932_v51 = vmax.f32 %v1912_v31, 0.0  ;;  %v1915_v34 = vadd.f32 %v5532_v21, %v1888_v29  ;;  %v1887_v59 = vmul.f32 %v5526_v23, %v1846_v49  ;;  %v1861_v41 = vadd.f32 %v4158_v52, %v1696_v27 }
 0x25e   : > { %v1855_v28 = vpop.f32.mrf.mxu0 }
 0x25f   : > { %1952 = vst [vmem:[#allocation3 + $0xa9] sm:$0xff] %v1932_v51  ;;  %v1935_v57 = vmax.f32 %v1915_v34, 0.0  ;;  %v1914_v61 = vadd.f32 %v5532_v21, %v1887_v59  ;;  %v1890_v47 = vmul.f32 %v5526_v23, %v1861_v41  ;;  %v1856_v15 = vadd.f32 %v1855_v28, %v1691_v25 }
 0x261   : > { %1955 = vst [vmem:[#allocation3 + $0xc9] sm:$0xff] %v1935_v57  ;;  %v1934_v43 = vmax.f32 %v1914_v61, 0.0  ;;  %v1917_v50 = vadd.f32 %v5532_v21, %v1890_v47  ;;  %v1889_v12 = vmul.f32 %v5526_v23, %v1856_v15 }
 0x263   : > { %1954 = vst [vmem:[#allocation3 + $0xc1] sm:$0xff] %v1934_v43  ;;  %v1937_v44 = vmax.f32 %v1917_v50, 0.0  ;;  %v1916_v40 = vadd.f32 %v5532_v21, %v1889_v12  ;;  %1981 = sbr.rel (%p3681_p8) target bundleno = 619 (0x26b), region = 72 }
 0x265   : > { %1957 = vst [vmem:[#allocation3 + $0xe1] sm:$0xff] %v1937_v44  ;;  %v1936_v7 = vmax.f32 %v1916_v40, 0.0 }
 0x267   : > { %1956 = vst [vmem:[#allocation3 + $0xd9] sm:$0xff] %v1936_v7 }
 0x268   : > { %v4572_v13 = vmov 0.0  }
 0x269   : > { %1982 = vst [vmem:[#allocation3] sm:$0xff] %v4572_v13  ;;  %1983 = vst [vmem:[#allocation3 + $0x8] sm:$0xff] %v4572_v13 }
 0x26a   : > { %1984 = vst [vmem:[#allocation3 + $0x10] sm:$0xff] %v4572_v13 }
 0x26b PF: > { %p3682_p6 = scmp.ne.s32.totalorder %s4548_s27, 1 }
 0x26d   : > { %1987 = sbr.rel (%p3682_p6) target bundleno = 629 (0x275), region = 76 }
 0x272   : > { %v4573_v16 = vmov 0.0  }
 0x273   : > { %1989 = vst [vmem:[#allocation3 + $0xd8] sm:$0xff] %v4573_v16  ;;  %1990 = vst [vmem:[#allocation3 + $0xe0] sm:$0xff] %v4573_v16 }
 0x274   : > { %1991 = vst [vmem:[#allocation3 + $0xe8] sm:$0xff] %v4573_v16 }
 0x275 PF: > { %v2457_v23 = vld [vmem:[#allocation9 + $0xf8] sm:$0xff]  ;;  %v2456_v14 = vld [vmem:[#allocation9 + $0xf0] sm:$0xff]  ;;  %v2455_v58 = vld [vmem:[#allocation9 + $0xe8] sm:$0xff]  ;;  %s3702_s10 = sshll.u32 %s4548_s27, 4  ;;  %s3703_s9 = sshll.u32 %s4552_s28, 5 }
 0x276   : > { %v2489_v21 = vld [vmem:[#allocation9 + $0x1f8] sm:$0xff]  ;;  %3745 = vmatprep.subr.mxu1 %v2457_v23  ;;  %v2488_v10 = vld [vmem:[#allocation9 + $0x1f0] sm:$0xff]  ;;  %v2487_v36 = vld [vmem:[#allocation9 + $0x1e8] sm:$0xff]  ;;  %s3418_s23 = sadd.s32 %s3703_s9, %s3702_s10  ;;  %s3421_s28 = sshll.u32 %s4837_s8, 4  ;;  %s6160_s28 = int_to_ptr.vmem [resolvable:$true] %s3421_s28 }
 0x277   : > { %v2441_v3 = vld [vmem:[#allocation9 + $0x78] sm:$0xff]  ;;  %3825 = vmatprep.subr.mxu0 %v2489_v21  ;;  %v2440_v18 = vld [vmem:[#allocation9 + $0x70] sm:$0xff]  ;;  %v2439_v26 = vld [vmem:[#allocation9 + $0x68] sm:$0xff]  ;;  %s3704_s27 = sshll.u32 %s3418_s23, 7  ;;  %s4462_s11 = scalar_lea.vmem %s6160_s28, 2048 }
 0x278   : > { %v2473_v35 = vld [vmem:[#allocation9 + $0x178] sm:$0xff]  ;;  %3746 = vmatpush3.msra.mxu1 %v2441_v3  ;;  %v2472_v46 = vld [vmem:[#allocation9 + $0x170] sm:$0xff]  ;;  %v2471_v63 = vld [vmem:[#allocation9 + $0x168] sm:$0xff]  ;;  %s6158_s1 = scalar_lea.hbm %s6224_s7, %s3704_s27  ;;  %p4463_p9 = scmp.ne.s32.totalorder %s6160_s28, %s4462_s11 }
 0x279   : > { %3826 = vmatpush3.msra.mxu0 %v2473_v35  ;;  %3747 = vmatprep.subr.mxu1 %v2456_v14  ;;  %v2454_v38 = vld [vmem:[#allocation9 + $0xe0] sm:$0xff]  ;;  %v2453_v22 = vld [vmem:[#allocation9 + $0xd8] sm:$0xff]  ;;  %v2452_v60 = vld [vmem:[#allocation9 + $0xd0] sm:$0xff]  ;;  %s4574_s13 = smov [#allocation11]  }
 0x27a   : > { %3827 = vmatprep.subr.mxu0 %v2488_v10  ;;  %3748 = vmatpush3.msra.mxu1 %v2440_v18  ;;  %v2486_v62 = vld [vmem:[#allocation9 + $0x1e0] sm:$0xff]  ;;  %v2485_v6 = vld [vmem:[#allocation9 + $0x1d8] sm:$0xff]  ;;  %v2484_v30 = vld [vmem:[#allocation9 + $0x1d0] sm:$0xff]  ;;  %p4464_p1 = pnand %p4463_p9, %p4669_p3  ;;  %s4466_s17 = sshll.u32 %s4574_s13, 4  ;;  %s4467_s17 = int_to_ptr.vmem [resolvable:$false] %s4466_s17 }
 0x27b   : > { %3828 = vmatpush3.msra.mxu0 %v2472_v46  ;;  %3749 = vmatprep.subr.mxu1 %v2455_v58  ;;  %v2438_v53 = vld [vmem:[#allocation9 + $0x60] sm:$0xff]  ;;  %v2437_v39 = vld [vmem:[#allocation9 + $0x58] sm:$0xff]  ;;  %v2436_v33 = vld [vmem:[#allocation9 + $0x50] sm:$0xff]  ;;  %s4468_s16 = scalar_lea.vmem %s4467_s17, 4096  ;;  %p4469_p12 = scmp.lt.s32.totalorder %s6160_s28, %s4467_s17 }
 0x27c   : > { %3829 = vmatprep.subr.mxu0 %v2487_v36  ;;  %v2470_v8 = vld [vmem:[#allocation9 + $0x160] sm:$0xff]  ;;  %3750 = vmatpush3.msra.mxu1 %v2439_v26  ;;  %v2469_v32 = vld [vmem:[#allocation9 + $0x158] sm:$0xff]  ;;  %v2468_v20 = vld [vmem:[#allocation9 + $0x150] sm:$0xff]  ;;  %p4465_p10 = pneg %p4464_p1  ;;  %p4470_p13 = scmp.lt.s32.totalorder %s4468_s16, %s4462_s11 }
 0x27d   : > { %3830 = vmatpush3.msra.mxu0 %v2471_v63  ;;  %3751 = vmatprep.subr.mxu1 %v2454_v38  ;;  %v2451_v54 = vld [vmem:[#allocation9 + $0xc8] sm:$0xff]  ;;  %v2450_v56 = vld [vmem:[#allocation9 + $0xc0] sm:$0xff]  ;;  %v2449_v1 = vld [vmem:[#allocation9 + $0xb8] sm:$0xff] }
 0x27e   : > { %3831 = vmatprep.subr.mxu0 %v2486_v62  ;;  %3752 = vmatpush3.msra.mxu1 %v2438_v53  ;;  %v2483_v0 = vld [vmem:[#allocation9 + $0x1c8] sm:$0xff]  ;;  %v2482_v19 = vld [vmem:[#allocation9 + $0x1c0] sm:$0xff]  ;;  %v2481_v55 = vld [vmem:[#allocation9 + $0x1b8] sm:$0xff]  ;;  %p4471_p2 = por %p4470_p13, %p4469_p12 }
 0x27f   : > { %3832 = vmatpush3.msra.mxu0 %v2470_v8  ;;  %3753 = vmatprep.subr.mxu1 %v2453_v22  ;;  %v2435_v48 = vld [vmem:[#allocation9 + $0x48] sm:$0xff]  ;;  %v2434_v45 = vld [vmem:[#allocation9 + $0x40] sm:$0xff]  ;;  %v2433_v42 = vld [vmem:[#allocation9 + $0x38] sm:$0xff] }
 0x280   : > { %3833 = vmatprep.subr.mxu0 %v2485_v6  ;;  %3754 = vmatpush3.msra.mxu1 %v2437_v39  ;;  %v2467_v4 = vld [vmem:[#allocation9 + $0x148] sm:$0xff]  ;;  %v2466_v37 = vld [vmem:[#allocation9 + $0x140] sm:$0xff]  ;;  %v2465_v24 = vld [vmem:[#allocation9 + $0x138] sm:$0xff]  ;;  %p4472_p5 = pnand %p4471_p2, %p4465_p10 }
 0x281   : > { %3834 = vmatpush3.msra.mxu0 %v2469_v32  ;;  %3755 = vmatprep.subr.mxu1 %v2452_v60  ;;  %v2448_v17 = vld [vmem:[#allocation9 + $0xb0] sm:$0xff]  ;;  %v2447_v2 = vld [vmem:[#allocation9 + $0xa8] sm:$0xff]  ;;  %v2446_v49 = vld [vmem:[#allocation9 + $0xa0] sm:$0xff] }
 0x282   : > { %3835 = vmatprep.subr.mxu0 %v2484_v30  ;;  %3756 = vmatpush3.msra.mxu1 %v2436_v33  ;;  %v2480_v5 = vld [vmem:[#allocation9 + $0x1b0] sm:$0xff]  ;;  %v2479_v9 = vld [vmem:[#allocation9 + $0x1a8] sm:$0xff]  ;;  %v2478_v25 = vld [vmem:[#allocation9 + $0x1a0] sm:$0xff] }
 0x283   : > { %3836 = vmatpush3.msra.mxu0 %v2468_v20  ;;  %3757 = vmatprep.subr.mxu1 %v2451_v54  ;;  %v2432_v11 = vld [vmem:[#allocation9 + $0x30] sm:$0xff]  ;;  %v2431_v31 = vld [vmem:[#allocation9 + $0x28] sm:$0xff]  ;;  %v2430_v52 = vld [vmem:[#allocation9 + $0x20] sm:$0xff] }
 0x284   : > { %3837 = vmatprep.subr.mxu0 %v2483_v0  ;;  %3758 = vmatpush3.msra.mxu1 %v2435_v48  ;;  %v2464_v27 = vld [vmem:[#allocation9 + $0x130] sm:$0xff]  ;;  %v2463_v29 = vld [vmem:[#allocation9 + $0x128] sm:$0xff]  ;;  %v2462_v51 = vld [vmem:[#allocation9 + $0x120] sm:$0xff] }
 0x285   : > { %3838 = vmatpush3.msra.mxu0 %v2467_v4  ;;  %3759 = vmatprep.subr.mxu1 %v2450_v56  ;;  %v2445_v34 = vld [vmem:[#allocation9 + $0x98] sm:$0xff]  ;;  %v5623_v61 = vld [vmem:[#allocation3 + $0x18] sm:$0xff]  ;;  %v2444_v47 = vld [vmem:[#allocation9 + $0x90] sm:$0xff] }
 0x286   : > { %3839 = vmatprep.subr.mxu0 %v2482_v19  ;;  %3760 = vmatpush3.msra.mxu1 %v2434_v45  ;;  %v2477_v59 = vld [vmem:[#allocation9 + $0x198] sm:$0xff]  ;;  %v2476_v15 = vld [vmem:[#allocation9 + $0x190] sm:$0xff]  ;;  %v2443_v13 = vld [vmem:[#allocation9 + $0x88] sm:$0xff] }
 0x287   : > { %3840 = vmatpush3.msra.mxu0 %v2466_v37  ;;  %3761 = vmatprep.subr.mxu1 %v2449_v1  ;;  %v2429_v41 = vld [vmem:[#allocation9 + $0x18] sm:$0xff]  ;;  %v5625_v43 = vld [vmem:[#allocation3] sm:$0xff]  ;;  %v2475_v21 = vld [vmem:[#allocation9 + $0x188] sm:$0xff] }
 0x288   : > { %3841 = vmatprep.subr.mxu0 %v2481_v55  ;;  %3762 = vmatpush3.msra.mxu1 %v2433_v42  ;;  %v2461_v28 = vld [vmem:[#allocation9 + $0x118] sm:$0xff]  ;;  %v2428_v12 = vld [vmem:[#allocation9 + $0x10] sm:$0xff]  ;;  %v5639_v35 = vld [vmem:[#allocation3 + $0x30] sm:$0xff] }
 0x289   : > { %3842 = vmatpush3.msra.mxu0 %v2465_v24  ;;  %3763 = vmatprep.subr.mxu1 %v2448_v17  ;;  %v5621_v57 = vld [vmem:[#allocation3 + $0x1] sm:$0xff]  ;;  %v5629_v40 = vld [vmem:[#allocation3 + $0x9] sm:$0xff]  ;;  %v5637_v3 = vld [vmem:[#allocation3 + $0x19] sm:$0xff]  ;;  %2107 = vst [vmem:[#allocation4 + $0x220] sm:$0xff] %v5639_v35 }
 0x28a   : > { %3843 = vmatprep.subr.mxu0 %v2480_v5  ;;  %3764 = vmatpush3.msra.mxu1 %v2432_v11  ;;  %v5627_v50 = vld [vmem:[#allocation3 + $0x2] sm:$0xff]  ;;  %v5635_v23 = vld [vmem:[#allocation3 + $0xa] sm:$0xff]  ;;  %v2427_v14 = vld [vmem:[#allocation9 + $0x8] sm:$0xff]  ;;  %2042 = vst [vmem:[#allocation4 + $0x48] sm:$0xff] %v5637_v3 }
 0x28b   : > { %3844 = vmatpush3.msra.mxu0 %v2464_v27  ;;  %3765 = vmatprep.subr.mxu1 %v2447_v2  ;;  %v2460_v44 = vld [vmem:[#allocation9 + $0x110] sm:$0xff]  ;;  %v5633_v16 = vld [vmem:[#allocation3 + $0x8] sm:$0xff]  ;;  %v2459_v10 = vld [vmem:[#allocation9 + $0x108] sm:$0xff] }
 0x28c   : > { %3845 = vmatprep.subr.mxu0 %v2479_v9  ;;  %3766 = vmatpush3.msra.mxu1 %v2431_v31  ;;  %v5631_v7 = vld [vmem:[#allocation3 + $0x20] sm:$0xff]  ;;  %v5648_v58 = vld [vmem:[#allocation3 + $0x38] sm:$0xff]  ;;  %v2442_v26 = vld [vmem:[#allocation9 + $0x80] sm:$0xff] }
 0x28d   : > { %3846 = vmatpush3.msra.mxu0 %v2463_v29  ;;  %3767 = vmatprep.subr.mxu1 %v2446_v49  ;;  %v5643_v18 = vld [vmem:[#allocation3 + $0x1a] sm:$0xff]  ;;  %v5650_v36 = vld [vmem:[#allocation3 + $0x22] sm:$0xff]  ;;  %v2474_v63 = vld [vmem:[#allocation9 + $0x180] sm:$0xff]  ;;  %2108 = vst [vmem:[#allocation4 + $0x450] sm:$0xff] %v5648_v58 }
 0x28e   : > { %3847 = vmatprep.subr.mxu0 %v2478_v25  ;;  %3768 = vmatpush3.msra.mxu1 %v2430_v52  ;;  %2074 = vst [vmem:[#allocation4 + $0x68] sm:$0xff] %v5643_v18  ;;  %v5646_v46 = vld [vmem:[#allocation3 + $0x21] sm:$0xff]  ;;  %2075 = vst [vmem:[#allocation4 + $0x558] sm:$0xff] %v5650_v36  ;;  %v5655_v38 = vld [vmem:[#allocation3 + $0x31] sm:$0xff] }
 0x28f   : > { %3848 = vmatpush3.msra.mxu0 %v2462_v51  ;;  %3769 = vmatprep.subr.mxu1 %v2445_v34  ;;  %2043 = vst [vmem:[#allocation4 + $0x298] sm:$0xff] %v5646_v46  ;;  %v2426_v62 = vld [vmem:[#allocation9] sm:$0xff]  ;;  %2044 = vst [vmem:[#allocation4 + $0x3c0] sm:$0xff] %v5655_v38  ;;  %v5658_v53 = vld [vmem:[#allocation3 + $0x48] sm:$0xff] }
 0x290   : > { %3849 = vmatprep.subr.mxu0 %v2477_v59  ;;  %3770 = vmatpush3.msra.mxu1 %v2429_v41  ;;  %v5660_v8 = vld [vmem:[#allocation3 + $0x32] sm:$0xff]  ;;  %2109 = vst [vmem:[#allocation4 + $0x60] sm:$0xff] %v5658_v53  ;;  %v2521_v32 = vld [vmem:[#allocation9 + $0x2f8] sm:$0xff]  ;;  %v5670_v60 = vld [vmem:[#allocation3 + $0x3a] sm:$0xff] }
 0x291   : > { %3850 = vmatpush3.msra.mxu0 %v2461_v28  ;;  %3771 = vmatprep.subr.mxu1 %v2444_v47  ;;  %v2458_v22 = vld [vmem:[#allocation9 + $0x100] sm:$0xff]  ;;  %2076 = vst [vmem:[#allocation4 + $0x320] sm:$0xff] %v5660_v8  ;;  %v5664_v6 = vld [vmem:[#allocation3 + $0x39] sm:$0xff]  ;;  %2077 = vst [vmem:[#allocation4 + $0x2d0] sm:$0xff] %v5670_v60 }
 0x292   : > { %3851 = vmatprep.subr.mxu0 %v2476_v15  ;;  %3772 = vmatpush3.msra.mxu1 %v2428_v12  ;;  %v5666_v39 = vld [vmem:[#allocation3 + $0x50] sm:$0xff]  ;;  %2045 = vst [vmem:[#allocation4 + $0x170] sm:$0xff] %v5664_v6  ;;  %v5676_v33 = vld [vmem:[#allocation3 + $0x60] sm:$0xff]  ;;  %v2505_v54 = vld [vmem:[#allocation9 + $0x278] sm:$0xff] }
 0x293   : > { %3852 = vmatpush3.msra.mxu0 %v2460_v44  ;;  %3773 = vmatprep.subr.mxu1 %v2443_v13  ;;  %2110 = vst [vmem:[#allocation4 + $0x28] sm:$0xff] %v5666_v39  ;;  %v5674_v30 = vld [vmem:[#allocation3 + $0x49] sm:$0xff]  ;;  %2111 = vst [vmem:[#allocation4 + $0x50] sm:$0xff] %v5676_v33  ;;  %v5684_v0 = vld [vmem:[#allocation3 + $0x51] sm:$0xff] }
 0x294   : > { %3853 = vmatprep.subr.mxu0 %v2475_v21  ;;  %3774 = vmatpush3.msra.mxu1 %v2427_v14  ;;  %v5678_v20 = vld [vmem:[#allocation3 + $0x4a] sm:$0xff]  ;;  %2046 = vst [vmem:[#allocation4 + $0x3d0] sm:$0xff] %v5674_v30  ;;  %v2520_v48 = vld [vmem:[#allocation9 + $0x2f0] sm:$0xff]  ;;  %2047 = vst [vmem:[#allocation4 + $0x160] sm:$0xff] %v5684_v0 }
 0x295   : > { %3854 = vmatpush3.msra.mxu0 %v2459_v10  ;;  %3775 = vmatprep.subr.mxu1 %v2442_v26  ;;  %2078 = vst [vmem:[#allocation4 + $0x4e8] sm:$0xff] %v5678_v20  ;;  %v5689_v4 = vld [vmem:[#allocation3 + $0x68] sm:$0xff]  ;;  %v5691_v56 = vld [vmem:[#allocation3 + $0x52] sm:$0xff]  ;;  %v2504_v19 = vld [vmem:[#allocation9 + $0x270] sm:$0xff] }
 0x296   : > { %3855 = vmatprep.subr.mxu0 %v2474_v63  ;;  %3776 = vmatpush3.msra.mxu1 %v2426_v62  ;;  %2112 = vst [vmem:[#allocation4 + $0x1b8] sm:$0xff] %v5689_v4  ;;  %2079 = vst [vmem:[#allocation4 + $0x308] sm:$0xff] %v5691_v56  ;;  %v2553_v45 = vld [vmem:[#allocation9 + $0x3f8] sm:$0xff]  ;;  %v5699_v1 = vld [vmem:[#allocation3 + $0x78] sm:$0xff] }
 0x297   : > { %2634 = vmatprep.mubr.f32.mxu1 %v5621_v57  ;;  %3856 = vmatpush3.msra.mxu0 %v2458_v22  ;;  %v5697_v37 = vld [vmem:[#allocation3 + $0x61] sm:$0xff]  ;;  %v2519_v42 = vld [vmem:[#allocation9 + $0x2e8] sm:$0xff]  ;;  %2113 = vst [vmem:[#allocation4 + $0x440] sm:$0xff] %v5699_v1  ;;  %v5708_v5 = vld [vmem:[#allocation3 + $0x69] sm:$0xff] }
 0x298   : > { %2779 = vmatprep.mubr.f32.mxu0 %v5623_v61  ;;  %2635 = vmatmul.mubr.f32.vlgmr.msra.gmra.mxu1 %v5625_v43  ;;  %v5701_v55 = vld [vmem:[#allocation3 + $0x62] sm:$0xff]  ;;  %v2503_v24 = vld [vmem:[#allocation9 + $0x268] sm:$0xff]  ;;  %2048 = vst [vmem:[#allocation4 + $0x4f0] sm:$0xff] %v5697_v37  ;;  %2049 = vst [vmem:[#allocation4 + $0x158] sm:$0xff] %v5708_v5 }
 0x299   : > { %2780 = vmatmul.mubr.f32.vlgmr.msra.gmra.mxu0 %v5627_v50  ;;  %3905 = vmatprep.subr.mxu1 %v2521_v32  ;;  %2080 = vst [vmem:[#allocation4 + $0x2d8] sm:$0xff] %v5701_v55  ;;  %v2537_v17 = vld [vmem:[#allocation9 + $0x378] sm:$0xff]  ;;  %v5710_v11 = vld [vmem:[#allocation3 + $0x80] sm:$0xff]  ;;  %v2518_v2 = vld [vmem:[#allocation9 + $0x2e0] sm:$0xff] }
 0x29a   : > { %2639 = vmatprep.mubr.f32.mxu1 %v5629_v40  ;;  %3906 = vmatpush3.msra.mxu1 %v2505_v54  ;;  %2114 = vst [vmem:[#allocation4 + $0x300] sm:$0xff] %v5710_v11  ;;  %v5715_v27 = vld [vmem:[#allocation3 + $0x6a] sm:$0xff]  ;;  %v5719_v9 = vld [vmem:[#allocation3 + $0x79] sm:$0xff]  ;;  %v5732_v51 = vld [vmem:[#allocation3 + $0x81] sm:$0xff] }
 0x29b   : > { %2784 = vmatprep.mubr.f32.mxu0 %v5631_v7  ;;  %3907 = vmatprep.subr.mxu1 %v2520_v48  ;;  %2081 = vst [vmem:[#allocation4 + $0x478] sm:$0xff] %v5715_v27  ;;  %v2552_v31 = vld [vmem:[#allocation9 + $0x3f0] sm:$0xff]  ;;  %2050 = vst [vmem:[#allocation4 + $0x3e0] sm:$0xff] %v5719_v9  ;;  %v5722_v29 = vld [vmem:[#allocation3 + $0x90] sm:$0xff] }
 0x29c   : > { %3985 = vmatprep.subr.mxu0 %v2553_v45  ;;  %2640 = vmatmul.mubr.f32.gmra.mxu1 %v5633_v16  ;;  %v5724_v49 = vld [vmem:[#allocation3 + $0x7a] sm:$0xff]  ;;  %v2502_v25 = vld [vmem:[#allocation9 + $0x260] sm:$0xff]  ;;  %2115 = vst [vmem:[#allocation4 + $0x330] sm:$0xff] %v5722_v29  ;;  %2051 = vst [vmem:[#allocation4 + $0x580] sm:$0xff] %v5732_v51 }
 0x29d   : > { %2785 = vmatmul.mubr.f32.gmra.mxu0 %v5635_v23  ;;  %3908 = vmatpush3.msra.mxu1 %v2504_v19  ;;  %v2536_v52 = vld [vmem:[#allocation9 + $0x370] sm:$0xff]  ;;  %2082 = vst [vmem:[#allocation4 + $0x518] sm:$0xff] %v5724_v49  ;;  %v5734_v34 = vld [vmem:[#allocation3 + $0x98] sm:$0xff]  ;;  %v2517_v41 = vld [vmem:[#allocation9 + $0x2d8] sm:$0xff] }
 0x29e   : > { %2644 = vmatprep.mubr.f32.mxu1 %v5637_v3  ;;  %2789 = vmatprep.mubr.f32.mxu0 %v5639_v35  ;;  %2116 = vst [vmem:[#allocation4 + $0xa8] sm:$0xff] %v5734_v34  ;;  %v5738_v59 = vld [vmem:[#allocation3 + $0x82] sm:$0xff]  ;;  %v2551_v57 = vld [vmem:[#allocation9 + $0x3e8] sm:$0xff]  ;;  %v2550_v12 = vld [vmem:[#allocation9 + $0x3e0] sm:$0xff] }
 0x29f   : > { %3909 = vmatprep.subr.mxu1 %v2519_v42  ;;  %3986 = vmatpush3.msra.mxu0 %v2537_v17  ;;  %v2501_v28 = vld [vmem:[#allocation9 + $0x258] sm:$0xff]  ;;  %2083 = vst [vmem:[#allocation4 + $0x128] sm:$0xff] %v5738_v59  ;;  %v5743_v47 = vld [vmem:[#allocation3 + $0x91] sm:$0xff]  ;;  %v2516_v50 = vld [vmem:[#allocation9 + $0x2d0] sm:$0xff] }
 0x2a0   : > { %3910 = vmatpush3.msra.mxu1 %v2503_v24  ;;  %3987 = vmatprep.subr.mxu0 %v2552_v31  ;;  %v5745_v15 = vld [vmem:[#allocation3 + $0xa8] sm:$0xff]  ;;  %2052 = vst [vmem:[#allocation4 + $0x248] sm:$0xff] %v5743_v47  ;;  %v5751_v43 = vld [vmem:[#allocation3 + $0x92] sm:$0xff]  ;;  %v5762_v16 = vld [vmem:[#allocation3 + $0x9a] sm:$0xff] }
 0x2a1   : > { %2645 = vmatmul.mubr.f32.gmra.mxu1 %v5623_v61  ;;  %2790 = vmatmul.mubr.f32.gmra.mxu0 %v5643_v18  ;;  %v2535_v61 = vld [vmem:[#allocation9 + $0x368] sm:$0xff]  ;;  %2117 = vst [vmem:[#allocation4 + $0xe0] sm:$0xff] %v5745_v15  ;;  %2084 = vst [vmem:[#allocation4 + $0x310] sm:$0xff] %v5751_v43  ;;  %v5756_v40 = vld [vmem:[#allocation3 + $0xb0] sm:$0xff] }
 0x2a2   : > { %2649 = vmatprep.mubr.f32.mxu1 %v5646_v46  ;;  %2794 = vmatprep.mubr.f32.mxu0 %v5648_v58  ;;  %v5754_v44 = vld [vmem:[#allocation3 + $0x99] sm:$0xff]  ;;  %v2534_v13 = vld [vmem:[#allocation9 + $0x360] sm:$0xff]  ;;  %2118 = vst [vmem:[#allocation4 + $0x4d8] sm:$0xff] %v5756_v40  ;;  %2085 = vst [vmem:[#allocation4 + $0x370] sm:$0xff] %v5762_v16 }
 0x2a3   : > { %3911 = vmatprep.subr.mxu1 %v2518_v2  ;;  %3988 = vmatpush3.msra.mxu0 %v2536_v52  ;;  %2053 = vst [vmem:[#allocation4 + $0xf8] sm:$0xff] %v5754_v44  ;;  %v5767_v23 = vld [vmem:[#allocation3 + $0xa9] sm:$0xff]  ;;  %v5769_v21 = vld [vmem:[#allocation3 + $0xc0] sm:$0xff]  ;;  %v2515_v14 = vld [vmem:[#allocation9 + $0x2c8] sm:$0xff] }
 0x2a4   : > { %3912 = vmatpush3.msra.mxu1 %v2502_v25  ;;  %3989 = vmatprep.subr.mxu0 %v2551_v57  ;;  %v2549_v10 = vld [vmem:[#allocation9 + $0x3d8] sm:$0xff]  ;;  %2054 = vst [vmem:[#allocation4 + $0x3e8] sm:$0xff] %v5767_v23  ;;  %2119 = vst [vmem:[#allocation4 + $0x110] sm:$0xff] %v5769_v21  ;;  %v2499_v63 = vld [vmem:[#allocation9 + $0x248] sm:$0xff] }
 0x2a5   : > { %2650 = vmatmul.mubr.f32.gmra.mxu1 %v5631_v7  ;;  %2795 = vmatmul.mubr.f32.gmra.mxu0 %v5650_v36  ;;  %v2500_v7 = vld [vmem:[#allocation9 + $0x250] sm:$0xff]  ;;  %v5773_v26 = vld [vmem:[#allocation3 + $0xaa] sm:$0xff]  ;;  %v5783_v54 = vld [vmem:[#allocation3 + $0xb2] sm:$0xff] }
 0x2a6   : > { %2654 = vmatprep.mubr.f32.mxu1 %v5655_v38  ;;  %2799 = vmatprep.mubr.f32.mxu0 %v5658_v53  ;;  %v2533_v62 = vld [vmem:[#allocation9 + $0x358] sm:$0xff]  ;;  %v5779_v22 = vld [vmem:[#allocation3 + $0xb1] sm:$0xff]  ;;  %v2548_v19 = vld [vmem:[#allocation9 + $0x3d0] sm:$0xff] }
 0x2a7   : > { %3913 = vmatprep.subr.mxu1 %v2517_v41  ;;  %3990 = vmatpush3.msra.mxu0 %v2535_v61  ;;  %v5781_v32 = vld [vmem:[#allocation3 + $0xc8] sm:$0xff]  ;;  %v2514_v48 = vld [vmem:[#allocation9 + $0x2c0] sm:$0xff]  ;;  %v2532_v42 = vld [vmem:[#allocation9 + $0x350] sm:$0xff] }
 0x2a8   : > { %3914 = vmatpush3.msra.mxu1 %v2501_v28  ;;  %3991 = vmatprep.subr.mxu0 %v2550_v12  ;;  %v2498_v45 = vld [vmem:[#allocation9 + $0x240] sm:$0xff]  ;;  %v2513_v24 = vld [vmem:[#allocation9 + $0x2b8] sm:$0xff]  ;;  %v2547_v17 = vld [vmem:[#allocation9 + $0x3c8] sm:$0xff] }
 0x2a9   : > { %2655 = vmatmul.mubr.f32.gmra.mxu1 %v5639_v35  ;;  %2800 = vmatmul.mubr.f32.gmra.mxu0 %v5660_v8  ;;  %v2497_v2 = vld [vmem:[#allocation9 + $0x238] sm:$0xff]  ;;  %v2531_v31 = vld [vmem:[#allocation9 + $0x348] sm:$0xff]  ;;  %v2512_v25 = vld [vmem:[#allocation9 + $0x2b0] sm:$0xff] }
 0x2aa   : > { %2659 = vmatprep.mubr.f32.mxu1 %v5664_v6  ;;  %2804 = vmatprep.mubr.f32.mxu0 %v5666_v39  ;;  %v5793_v52 = vld [vmem:[#allocation3 + $0xc1] sm:$0xff]  ;;  %v5795_v28 = vld [vmem:[#allocation3 + $0xc9] sm:$0xff]  ;;  %v5801_v12 = vld [vmem:[#allocation3 + $0xd8] sm:$0xff] }
 0x2ab   : > { %3915 = vmatprep.subr.mxu1 %v2516_v50  ;;  %3992 = vmatpush3.msra.mxu0 %v2534_v13  ;;  %v2496_v41 = vld [vmem:[#allocation9 + $0x230] sm:$0xff]  ;;  %v2546_v61 = vld [vmem:[#allocation9 + $0x3c0] sm:$0xff] }
 0x2ac   : > { %3916 = vmatpush3.msra.mxu1 %v2500_v7  ;;  %3993 = vmatprep.subr.mxu0 %v2549_v10  ;;  %v5797_v57 = vld [vmem:[#allocation3 + $0xc2] sm:$0xff]  ;;  %v5799_v50 = vld [vmem:[#allocation3 + $0xd9] sm:$0xff]  ;;  %v2530_v7 = vld [vmem:[#allocation9 + $0x340] sm:$0xff] }
 0x2ad   : > { %2660 = vmatmul.mubr.f32.gmra.mxu1 %v5648_v58  ;;  %2805 = vmatmul.mubr.f32.gmra.mxu0 %v5670_v60  ;;  %v5805_v13 = vld [vmem:[#allocation3 + $0xca] sm:$0xff]  ;;  %v2511_v10 = vld [vmem:[#allocation9 + $0x2a8] sm:$0xff] }
 0x2ae   : > { %2664 = vmatprep.mubr.f32.mxu1 %v5674_v30  ;;  %2809 = vmatprep.mubr.f32.mxu0 %v5676_v33 }
 0x2af   : > { %3917 = vmatprep.subr.mxu1 %v2515_v14  ;;  %3994 = vmatpush3.msra.mxu0 %v2533_v62  ;;  %v5807_v14 = vld [vmem:[#allocation3 + $0xe1] sm:$0xff]  ;;  %v5813_v62 = vld [vmem:[#allocation3 + $0x32] sm:$0xff] }
 0x2b0   : > { %3918 = vmatpush3.msra.mxu1 %v2499_v63  ;;  %3995 = vmatprep.subr.mxu0 %v2548_v19  ;;  %v5811_v63 = vld [vmem:[#allocation3 + $0xe0] sm:$0xff]  ;;  %v5817_v19 = vld [vmem:[#allocation3 + $0x4a] sm:$0xff] }
 0x2b1   : > { %2665 = vmatmul.mubr.f32.gmra.mxu1 %v5658_v53  ;;  %2810 = vmatmul.mubr.f32.gmra.mxu0 %v5678_v20 }
 0x2b2   : > { %2669 = vmatprep.mubr.f32.mxu1 %v5684_v0  ;;  %2814 = vmatprep.mubr.f32.mxu0 %v5689_v4 }
 0x2b3   : > { %3919 = vmatprep.subr.mxu1 %v2514_v48  ;;  %3996 = vmatpush3.msra.mxu0 %v2532_v42  ;;  %v5815_v48 = vld [vmem:[#allocation3 + $0x3a] sm:$0xff]  ;;  %v5821_v42 = vld [vmem:[#allocation3 + $0x62] sm:$0xff] }
 0x2b4   : > { %3920 = vmatpush3.msra.mxu1 %v2498_v45  ;;  %3997 = vmatprep.subr.mxu0 %v2547_v17  ;;  %v5819_v45 = vld [vmem:[#allocation3 + $0x52] sm:$0xff]  ;;  %v5823_v17 = vld [vmem:[#allocation3 + $0xda] sm:$0xff] }
 0x2b5   : > { %2670 = vmatmul.mubr.f32.gmra.mxu1 %v5666_v39  ;;  %2815 = vmatmul.mubr.f32.gmra.mxu0 %v5691_v56  ;;  %6280 = vst [vmem:[#allocation31_spill] sm:$0xff] %v5823_v17  ;;  %v2509_v17 = vld [vmem:[#allocation9 + $0x298] sm:$0xff] }
 0x2b6   : > { %2674 = vmatprep.mubr.f32.mxu1 %v5697_v37  ;;  %2819 = vmatprep.mubr.f32.mxu0 %v5699_v1 }
 0x2b7   : > { %3921 = vmatprep.subr.mxu1 %v2513_v24  ;;  %3998 = vmatpush3.msra.mxu0 %v2531_v31  ;;  %v2545_v24 = vld [vmem:[#allocation9 + $0x3b8] sm:$0xff]  ;;  %v2495_v31 = vld [vmem:[#allocation9 + $0x228] sm:$0xff] }
 0x2b8   : > { %3922 = vmatpush3.msra.mxu1 %v2497_v2  ;;  %3999 = vmatprep.subr.mxu0 %v2546_v61  ;;  %v5825_v2 = vld [vmem:[#allocation3 + $0xe2] sm:$0xff] }
 0x2b9   : > { %2675 = vmatmul.mubr.f32.gmra.mxu1 %v5676_v33  ;;  %2820 = vmatmul.mubr.f32.gmra.mxu0 %v5701_v55  ;;  %6281 = vst [vmem:[#allocation32_spill] sm:$0xff] %v5825_v2  ;;  %v2544_v61 = vld [vmem:[#allocation9 + $0x3b0] sm:$0xff] }
 0x2ba   : > { %2679 = vmatprep.mubr.f32.mxu1 %v5708_v5  ;;  %2824 = vmatprep.mubr.f32.mxu0 %v5710_v11  ;;  %v2528_v2 = vld [vmem:[#allocation9 + $0x330] sm:$0xff] }
 0x2bb   : > { %3923 = vmatprep.subr.mxu1 %v2512_v25  ;;  %4000 = vmatpush3.msra.mxu0 %v2530_v7  ;;  %v2529_v25 = vld [vmem:[#allocation9 + $0x338] sm:$0xff]  ;;  %v2494_v7 = vld [vmem:[#allocation9 + $0x220] sm:$0xff] }
 0x2bc   : > { %3924 = vmatpush3.msra.mxu1 %v2496_v41  ;;  %4001 = vmatprep.subr.mxu0 %v2545_v24  ;;  %v2510_v41 = vld [vmem:[#allocation9 + $0x2a0] sm:$0xff]  ;;  %v2493_v24 = vld [vmem:[#allocation9 + $0x218] sm:$0xff] }
 0x2bd   : > { %2680 = vmatmul.mubr.f32.gmra.mxu1 %v5689_v4  ;;  %2825 = vmatmul.mubr.f32.gmra.mxu0 %v5715_v27 }
 0x2be   : > { %2684 = vmatprep.mubr.f32.mxu1 %v5719_v9  ;;  %2829 = vmatprep.mubr.f32.mxu0 %v5722_v29 }
 0x2bf   : > { %3925 = vmatprep.subr.mxu1 %v2511_v10  ;;  %4002 = vmatpush3.msra.mxu0 %v2529_v25  ;;  %v2543_v10 = vld [vmem:[#allocation9 + $0x3a8] sm:$0xff]  ;;  %v2508_v25 = vld [vmem:[#allocation9 + $0x290] sm:$0xff] }
 0x2c0   : > { %3926 = vmatpush3.msra.mxu1 %v2495_v31  ;;  %4003 = vmatprep.subr.mxu0 %v2544_v61  ;;  %v2527_v31 = vld [vmem:[#allocation9 + $0x328] sm:$0xff]  ;;  %v2526_v61 = vld [vmem:[#allocation9 + $0x320] sm:$0xff] }
 0x2c1   : > { %2685 = vmatmul.mubr.f32.gmra.mxu1 %v5699_v1  ;;  %2830 = vmatmul.mubr.f32.gmra.mxu0 %v5724_v49 }
 0x2c2   : > { %2689 = vmatprep.mubr.f32.mxu1 %v5732_v51  ;;  %2834 = vmatprep.mubr.f32.mxu0 %v5734_v34 }
 0x2c3   : > { %3927 = vmatprep.subr.mxu1 %v2510_v41  ;;  %4004 = vmatpush3.msra.mxu0 %v2528_v2  ;;  %v2542_v41 = vld [vmem:[#allocation9 + $0x3a0] sm:$0xff]  ;;  %v2492_v2 = vld [vmem:[#allocation9 + $0x210] sm:$0xff] }
 0x2c4   : > { %3928 = vmatpush3.msra.mxu1 %v2494_v7  ;;  %4005 = vmatprep.subr.mxu0 %v2543_v10  ;;  %v2507_v7 = vld [vmem:[#allocation9 + $0x288] sm:$0xff] }
 0x2c5   : > { %2690 = vmatmul.mubr.f32.gmra.mxu1 %v5710_v11  ;;  %2835 = vmatmul.mubr.f32.gmra.mxu0 %v5738_v59  ;;  %v2491_v10 = vld [vmem:[#allocation9 + $0x208] sm:$0xff] }
 0x2c6   : > { %2694 = vmatprep.mubr.f32.mxu1 %v5743_v47  ;;  %2839 = vmatprep.mubr.f32.mxu0 %v5745_v15 }
 0x2c7   : > { %3929 = vmatprep.subr.mxu1 %v2509_v17  ;;  %4006 = vmatpush3.msra.mxu0 %v2527_v31  ;;  %v2541_v17 = vld [vmem:[#allocation9 + $0x398] sm:$0xff]  ;;  %v2506_v31 = vld [vmem:[#allocation9 + $0x280] sm:$0xff] }
 0x2c8   : > { %3930 = vmatpush3.msra.mxu1 %v2493_v24  ;;  %4007 = vmatprep.subr.mxu0 %v2542_v41  ;;  %v2525_v24 = vld [vmem:[#allocation9 + $0x318] sm:$0xff]  ;;  %v2490_v41 = vld [vmem:[#allocation9 + $0x200] sm:$0xff] }
 0x2c9   : > { %2695 = vmatmul.mubr.f32.gmra.mxu1 %v5722_v29  ;;  %2840 = vmatmul.mubr.f32.gmra.mxu0 %v5751_v43 }
 0x2ca   : > { %2699 = vmatprep.mubr.f32.mxu1 %v5754_v44  ;;  %2844 = vmatprep.mubr.f32.mxu0 %v5756_v40 }
 0x2cb   : > { %3931 = vmatprep.subr.mxu1 %v2508_v25  ;;  %4008 = vmatpush3.msra.mxu0 %v2526_v61  ;;  %v2540_v25 = vld [vmem:[#allocation9 + $0x390] sm:$0xff]  ;;  %v2539_v61 = vld [vmem:[#allocation9 + $0x388] sm:$0xff] }
 0x2cc   : > { %3932 = vmatpush3.msra.mxu1 %v2492_v2  ;;  %4009 = vmatprep.subr.mxu0 %v2541_v17  ;;  %v2524_v2 = vld [vmem:[#allocation9 + $0x310] sm:$0xff]  ;;  %v2569_v17 = vld [vmem:[#allocation9 + $0x478] sm:$0xff] }
 0x2cd   : > { %2700 = vmatmul.mubr.f32.gmra.mxu1 %v5734_v34  ;;  %2845 = vmatmul.mubr.f32.gmra.mxu0 %v5762_v16 }
 0x2ce   : > { %2704 = vmatprep.mubr.f32.mxu1 %v5767_v23  ;;  %2849 = vmatprep.mubr.f32.mxu0 %v5769_v21 }
 0x2cf   : > { %3933 = vmatprep.subr.mxu1 %v2507_v7  ;;  %4010 = vmatpush3.msra.mxu0 %v2525_v24  ;;  %v2523_v7 = vld [vmem:[#allocation9 + $0x308] sm:$0xff]  ;;  %v2522_v24 = vld [vmem:[#allocation9 + $0x300] sm:$0xff] }
 0x2d0   : > { %3934 = vmatpush3.msra.mxu1 %v2491_v10  ;;  %4011 = vmatprep.subr.mxu0 %v2540_v25  ;;  %v2538_v10 = vld [vmem:[#allocation9 + $0x380] sm:$0xff]  ;;  %v2567_v25 = vld [vmem:[#allocation9 + $0x468] sm:$0xff] }
 0x2d1   : > { %2705 = vmatmul.mubr.f32.gmra.mxu1 %v5745_v15  ;;  %2850 = vmatmul.mubr.f32.gmra.mxu0 %v5773_v26 }
 0x2d2   : > { %2709 = vmatprep.mubr.f32.mxu1 %v5779_v22  ;;  %2854 = vmatprep.mubr.f32.mxu0 %v5781_v32 }
 0x2d3   : > { %3935 = vmatprep.subr.mxu1 %v2506_v31  ;;  %4012 = vmatpush3.msra.mxu0 %v2524_v2  ;;  %v2568_v31 = vld [vmem:[#allocation9 + $0x470] sm:$0xff] }
 0x2d4   : > { %3936 = vmatpush3.msra.mxu1 %v2490_v41  ;;  %4013 = vmatprep.subr.mxu0 %v2539_v61 }
 0x2d5   : > { %2710 = vmatmul.mubr.f32.gmra.mxu1 %v5756_v40  ;;  %2855 = vmatmul.mubr.f32.gmra.mxu0 %v5783_v54 }
 0x2d6   : > { %2924 = vmatprep.mubr.f32.mxu1 %v5643_v18  ;;  %4014 = vmatpush3.msra.mxu0 %v2523_v7  ;;  %v2566_v18 = vld [vmem:[#allocation9 + $0x460] sm:$0xff] }
 0x2d7   : > { %4159 = vmatprep.subr.mxu1 %v2569_v17  ;;  %4015 = vmatprep.subr.mxu0 %v2538_v10 }
 0x2d8   : > { %3069 = vmatprep.mubr.f32.mxu0 %v5655_v38  ;;  %4016 = vmatpush3.msra.mxu0 %v2522_v24 }
 0x2d9   : > { %2925 = vmatmul.mubr.f32.vlgmr.msra.gmra.mxu1 %v5637_v3  ;;  %3070 = vmatmul.mubr.f32.vlgmr.msra.gmra.mxu0 %v5639_v35  ;;  %v2565_v3 = vld [vmem:[#allocation9 + $0x458] sm:$0xff]  ;;  %v2564_v35 = vld [vmem:[#allocation9 + $0x450] sm:$0xff] }
 0x2da   : > { %4160 = vmatpush3.msra.mxu1 %v2569_v17  ;;  %2929 = vmatprep.mubr.f32.mxu1 %v5650_v36  ;;  %v2561_v36 = vld [vmem:[#allocation9 + $0x438] sm:$0xff] }
 0x2db   : > { %4161 = vmatprep.subr.mxu1 %v2568_v31  ;;  %3074 = vmatprep.mubr.f32.mxu0 %v5664_v6 }
 0x2dc   : > { %4162 = vmatpush3.msra.mxu1 %v2568_v31 }
 0x2dd   : > { %2930 = vmatmul.mubr.f32.gmra.mxu1 %v5646_v46  ;;  %4163 = vmatprep.subr.mxu1 %v2567_v25  ;;  %v2563_v46 = vld [vmem:[#allocation9 + $0x448] sm:$0xff] }
 0x2de   : > { %3075 = vmatmul.mubr.f32.gmra.mxu0 %v5648_v58  ;;  %2934 = vmatprep.mubr.f32.mxu1 %v5660_v8  ;;  %v2562_v58 = vld [vmem:[#allocation9 + $0x440] sm:$0xff] }
 0x2df   : > { %3079 = vmatprep.mubr.f32.mxu0 %v5674_v30  ;;  %4164 = vmatpush3.msra.mxu1 %v2567_v25  ;;  %v2558_v8 = vld [vmem:[#allocation9 + $0x420] sm:$0xff] }
 0x2e0   : > { %4165 = vmatprep.subr.mxu1 %v2566_v18 }
 0x2e1   : > { %2935 = vmatmul.mubr.f32.gmra.mxu1 %v5655_v38  ;;  %v2560_v38 = vld [vmem:[#allocation9 + $0x430] sm:$0xff] }
 0x2e2   : > { %3080 = vmatmul.mubr.f32.gmra.mxu0 %v5658_v53  ;;  %2939 = vmatprep.mubr.f32.mxu1 %v5670_v60  ;;  %v2559_v53 = vld [vmem:[#allocation9 + $0x428] sm:$0xff] }
 0x2e3   : > { %3084 = vmatprep.mubr.f32.mxu0 %v5684_v0  ;;  %4166 = vmatpush3.msra.mxu1 %v2566_v18  ;;  %v2555_v60 = vld [vmem:[#allocation9 + $0x408] sm:$0xff] }
 0x2e4   : > { %4167 = vmatprep.subr.mxu1 %v2565_v3 }
 0x2e5   : > { %2940 = vmatmul.mubr.f32.gmra.mxu1 %v5664_v6  ;;  %v2557_v6 = vld [vmem:[#allocation9 + $0x418] sm:$0xff] }
 0x2e6   : > { %3085 = vmatmul.mubr.f32.gmra.mxu0 %v5666_v39  ;;  %2944 = vmatprep.mubr.f32.mxu1 %v5678_v20  ;;  %v2556_v39 = vld [vmem:[#allocation9 + $0x410] sm:$0xff]  ;;  %v6283_v20 = vld [vmem:[#allocation32_spill] sm:$0xff] }
 0x2e7   : > { %3089 = vmatprep.mubr.f32.mxu0 %v5697_v37  ;;  %4168 = vmatpush3.msra.mxu1 %v2565_v3 }
 0x2e8   : > { %4169 = vmatprep.subr.mxu1 %v2564_v35 }
 0x2e9   : > { %2945 = vmatmul.mubr.f32.gmra.mxu1 %v5674_v30  ;;  %v2554_v30 = vld [vmem:[#allocation9 + $0x400] sm:$0xff] }
 0x2ea   : > { %3090 = vmatmul.mubr.f32.gmra.mxu0 %v5676_v33  ;;  %2949 = vmatprep.mubr.f32.mxu1 %v5691_v56  ;;  %v6282_v33 = vld [vmem:[#allocation31_spill] sm:$0xff] }
 0x2eb   : > { %3094 = vmatprep.mubr.f32.mxu0 %v5708_v5  ;;  %4170 = vmatpush3.msra.mxu1 %v2564_v35 }
 0x2ec   : > { %4171 = vmatprep.subr.mxu1 %v2563_v46 }
 0x2ed   : > { %2950 = vmatmul.mubr.f32.gmra.mxu1 %v5684_v0 }
 0x2ee   : > { %3095 = vmatmul.mubr.f32.gmra.mxu0 %v5689_v4  ;;  %2954 = vmatprep.mubr.f32.mxu1 %v5701_v55 }
 0x2ef   : > { %3099 = vmatprep.mubr.f32.mxu0 %v5719_v9  ;;  %4172 = vmatpush3.msra.mxu1 %v2563_v46 }
 0x2f0   : > { %4173 = vmatprep.subr.mxu1 %v2562_v58 }
 0x2f1   : > { %2955 = vmatmul.mubr.f32.gmra.mxu1 %v5697_v37 }
 0x2f2   : > { %3100 = vmatmul.mubr.f32.gmra.mxu0 %v5699_v1  ;;  %2959 = vmatprep.mubr.f32.mxu1 %v5715_v27 }
 0x2f3   : > { %3104 = vmatprep.mubr.f32.mxu0 %v5732_v51  ;;  %4174 = vmatpush3.msra.mxu1 %v2562_v58 }
 0x2f4   : > { %4175 = vmatprep.subr.mxu1 %v2561_v36 }
 0x2f5   : > { %2960 = vmatmul.mubr.f32.gmra.mxu1 %v5708_v5 }
 0x2f6   : > { %3105 = vmatmul.mubr.f32.gmra.mxu0 %v5710_v11  ;;  %2964 = vmatprep.mubr.f32.mxu1 %v5724_v49 }
 0x2f7   : > { %3109 = vmatprep.mubr.f32.mxu0 %v5743_v47  ;;  %4176 = vmatpush3.msra.mxu1 %v2561_v36 }
 0x2f8   : > { %4177 = vmatprep.subr.mxu1 %v2560_v38 }
 0x2f9   : > { %2965 = vmatmul.mubr.f32.gmra.mxu1 %v5719_v9 }
 0x2fa   : > { %3110 = vmatmul.mubr.f32.gmra.mxu0 %v5722_v29  ;;  %2969 = vmatprep.mubr.f32.mxu1 %v5738_v59 }
 0x2fb   : > { %3114 = vmatprep.mubr.f32.mxu0 %v5754_v44  ;;  %4178 = vmatpush3.msra.mxu1 %v2560_v38 }
 0x2fc   : > { %4179 = vmatprep.subr.mxu1 %v2559_v53 }
 0x2fd   : > { %2970 = vmatmul.mubr.f32.gmra.mxu1 %v5732_v51 }
 0x2fe   : > { %3115 = vmatmul.mubr.f32.gmra.mxu0 %v5734_v34  ;;  %2974 = vmatprep.mubr.f32.mxu1 %v5751_v43 }
 0x2ff   : > { %3119 = vmatprep.mubr.f32.mxu0 %v5767_v23  ;;  %4180 = vmatpush3.msra.mxu1 %v2559_v53 }
 0x300   : > { %4181 = vmatprep.subr.mxu1 %v2558_v8 }
 0x301   : > { %2975 = vmatmul.mubr.f32.gmra.mxu1 %v5743_v47 }
 0x302   : > { %3120 = vmatmul.mubr.f32.gmra.mxu0 %v5745_v15  ;;  %2979 = vmatprep.mubr.f32.mxu1 %v5762_v16 }
 0x303   : > { %3124 = vmatprep.mubr.f32.mxu0 %v5779_v22  ;;  %4182 = vmatpush3.msra.mxu1 %v2558_v8 }
 0x304   : > { %4183 = vmatprep.subr.mxu1 %v2557_v6 }
 0x305   : > { %2980 = vmatmul.mubr.f32.gmra.mxu1 %v5754_v44 }
 0x306   : > { %3125 = vmatmul.mubr.f32.gmra.mxu0 %v5756_v40  ;;  %2984 = vmatprep.mubr.f32.mxu1 %v5773_v26 }
 0x307   : > { %3129 = vmatprep.mubr.f32.mxu0 %v5793_v52  ;;  %4184 = vmatpush3.msra.mxu1 %v2557_v6 }
 0x308   : > { %4185 = vmatprep.subr.mxu1 %v2556_v39 }
 0x309   : > { %2985 = vmatmul.mubr.f32.gmra.mxu1 %v5767_v23 }
 0x30a   : > { %3130 = vmatmul.mubr.f32.gmra.mxu0 %v5769_v21  ;;  %2989 = vmatprep.mubr.f32.mxu1 %v5783_v54 }
 0x30b   : > { %3134 = vmatprep.mubr.f32.mxu0 %v5795_v28  ;;  %4186 = vmatpush3.msra.mxu1 %v2556_v39 }
 0x30c   : > { %4187 = vmatprep.subr.mxu1 %v2555_v60 }
 0x30d   : > { %2990 = vmatmul.mubr.f32.gmra.mxu1 %v5779_v22 }
 0x30e   : > { %3135 = vmatmul.mubr.f32.gmra.mxu0 %v5781_v32  ;;  %2994 = vmatprep.mubr.f32.mxu1 %v5797_v57 }
 0x30f   : > { %3139 = vmatprep.mubr.f32.mxu0 %v5799_v50  ;;  %4188 = vmatpush3.msra.mxu1 %v2555_v60 }
 0x310   : > { %4189 = vmatprep.subr.mxu1 %v2554_v30 }
 0x311   : > { %2995 = vmatmul.mubr.f32.gmra.mxu1 %v5793_v52 }
 0x312   : > { %3140 = vmatmul.mubr.f32.gmra.mxu0 %v5801_v12  ;;  %2999 = vmatprep.mubr.f32.mxu1 %v5805_v13 }
 0x313   : > { %3144 = vmatprep.mubr.f32.mxu0 %v5807_v14  ;;  %4190 = vmatpush3.msra.mxu1 %v2554_v30 }
 0x315   : > { %3000 = vmatmul.mubr.f32.gmra.mxu1 %v5795_v28 }
 0x316   : > { %3145 = vmatmul.mubr.f32.gmra.mxu0 %v5811_v63  ;;  %4191 = vmatprep.mubr.f32.mxu1 %v5813_v62 }
 0x319   : > { %4192 = vmatmul.mubr.f32.vlgmr.msra.gmra.mxu1 %v5815_v48 }
 0x31a   : > { %4194 = vmatprep.mubr.f32.mxu1 %v5817_v19 }
 0x31d   : > { %4195 = vmatmul.mubr.f32.gmra.mxu1 %v5819_v45 }
 0x31e   : > { %4197 = vmatprep.mubr.f32.mxu1 %v5821_v42 }
 0x321   : > { %4198 = vmatmul.mubr.f32.gmra.mxu1 %v5715_v27 }
 0x322   : > { %4200 = vmatprep.mubr.f32.mxu1 %v5724_v49 }
 0x325   : > { %4201 = vmatmul.mubr.f32.gmra.mxu1 %v5738_v59 }
 0x326   : > { %4203 = vmatprep.mubr.f32.mxu1 %v5751_v43 }
 0x329   : > { %4204 = vmatmul.mubr.f32.gmra.mxu1 %v5762_v16 }
 0x32a   : > { %4206 = vmatprep.mubr.f32.mxu1 %v5773_v26 }
 0x32d   : > { %4207 = vmatmul.mubr.f32.gmra.mxu1 %v5783_v54 }
 0x32e   : > { %4209 = vmatprep.mubr.f32.mxu1 %v5797_v57 }
 0x331   : > { %4210 = vmatmul.mubr.f32.gmra.mxu1 %v5805_v13 }
 0x332   : > { %4212 = vmatprep.mubr.f32.mxu1 %v6282_v33 }
 0x335   : > { %4213 = vmatmul.mubr.f32.gmra.mxu1 %v6283_v20 }
 0x358   : > { %v3777_v0 = vpop.f32.mrf.mxu1 }
 0x359   : > { %v3857_v4 = vpop.f32.mrf.mxu0 }
 0x35a   : > { %v3778_v56 = vpop.f32.mrf.mxu1 }
 0x35b   : > { %v3858_v37 = vpop.f32.mrf.mxu0  ;;  %v3779_v1 = vadd.f32 %v3778_v56, %v3777_v0 }
 0x35c   : > { %v3859_v55 = vadd.f32 %v3858_v37, %v3857_v4  ;;  %v3780_v5 = vpop.f32.mrf.mxu1 }
 0x35d   : > { %v3860_v11 = vpop.f32.mrf.mxu0 }
 0x35e   : > { %v5933_v27 = vadd.f32 %v3859_v55, %v3779_v1  ;;  %v3781_v9 = vpop.f32.mrf.mxu1 }
 0x35f   : > { %v3861_v29 = vpop.f32.mrf.mxu0  ;;  %v3782_v49 = vadd.f32 %v3781_v9, %v3780_v5 }
 0x360   : > { %v3862_v51 = vadd.f32 %v3861_v29, %v3860_v11 }
 0x361   : > { %v3783_v34 = vpop.f32.mrf.mxu1  ;;  %v3863_v59 = vpop.f32.mrf.mxu0 }
 0x362   : > { %v5935_v47 = vadd.f32 %v3862_v51, %v3782_v49 }
 0x363   : > { %v3784_v15 = vpop.f32.mrf.mxu1  ;;  %v3864_v43 = vpop.f32.mrf.mxu0 }
 0x364   : > { %v3785_v44 = vadd.f32 %v3784_v15, %v3783_v34  ;;  %v3865_v40 = vadd.f32 %v3864_v43, %v3863_v59 }
 0x365   : > { %v3786_v16 = vpop.f32.mrf.mxu1  ;;  %v3866_v23 = vpop.f32.mrf.mxu0 }
 0x366   : > { %v5937_v21 = vadd.f32 %v3865_v40, %v3785_v44 }
 0x367   : > { %v3787_v26 = vpop.f32.mrf.mxu1  ;;  %v3867_v22 = vpop.f32.mrf.mxu0 }
 0x368   : > { %v3788_v32 = vadd.f32 %v3787_v26, %v3786_v16  ;;  %v3868_v54 = vadd.f32 %v3867_v22, %v3866_v23 }
 0x369   : > { %v3789_v52 = vpop.f32.mrf.mxu1  ;;  %v3869_v28 = vpop.f32.mrf.mxu0 }
 0x36a   : > { %v5939_v57 = vadd.f32 %v3868_v54, %v3788_v32 }
 0x36b   : > { %v3790_v50 = vpop.f32.mrf.mxu1  ;;  %v3870_v12 = vpop.f32.mrf.mxu0 }
 0x36c   : > { %v3791_v13 = vadd.f32 %v3790_v50, %v3789_v52  ;;  %v3871_v14 = vadd.f32 %v3870_v12, %v3869_v28 }
 0x36d   : > { %v3792_v63 = vpop.f32.mrf.mxu1  ;;  %v3872_v62 = vpop.f32.mrf.mxu0 }
 0x36e   : > { %v5941_v48 = vadd.f32 %v3871_v14, %v3791_v13 }
 0x36f   : > { %v3793_v19 = vpop.f32.mrf.mxu1  ;;  %v3873_v45 = vpop.f32.mrf.mxu0 }
 0x370   : > { %v3794_v42 = vadd.f32 %v3793_v19, %v3792_v63  ;;  %v3874_v41 = vadd.f32 %v3873_v45, %v3872_v62 }
 0x371   : > { %v3795_v2 = vpop.f32.mrf.mxu1  ;;  %v3875_v61 = vpop.f32.mrf.mxu0 }
 0x372   : > { %v5943_v7 = vadd.f32 %v3874_v41, %v3794_v42 }
 0x373   : > { %v3796_v17 = vpop.f32.mrf.mxu1  ;;  %v3876_v10 = vpop.f32.mrf.mxu0 }
 0x374   : > { %v3797_v24 = vadd.f32 %v3796_v17, %v3795_v2  ;;  %v3877_v31 = vadd.f32 %v3876_v10, %v3875_v61 }
 0x375   : > { %v3798_v25 = vpop.f32.mrf.mxu1  ;;  %v3878_v18 = vpop.f32.mrf.mxu0 }
 0x376   : > { %v5945_v3 = vadd.f32 %v3877_v31, %v3797_v24 }
 0x377   : > { %v3799_v35 = vpop.f32.mrf.mxu1  ;;  %v3879_v46 = vpop.f32.mrf.mxu0 }
 0x378   : > { %v3800_v58 = vadd.f32 %v3799_v35, %v3798_v25  ;;  %v3880_v36 = vadd.f32 %v3879_v46, %v3878_v18 }
 0x379   : > { %v3801_v38 = vpop.f32.mrf.mxu1  ;;  %v3881_v53 = vpop.f32.mrf.mxu0 }
 0x37a   : > { %v5947_v8 = vadd.f32 %v3880_v36, %v3800_v58 }
 0x37b   : > { %v3802_v6 = vpop.f32.mrf.mxu1  ;;  %v3882_v39 = vpop.f32.mrf.mxu0 }
 0x37c   : > { %v3803_v60 = vadd.f32 %v3802_v6, %v3801_v38  ;;  %v3883_v30 = vadd.f32 %v3882_v39, %v3881_v53 }
 0x37d   : > { %v3804_v33 = vpop.f32.mrf.mxu1  ;;  %v3884_v20 = vpop.f32.mrf.mxu0 }
 0x37e   : > { %v5949_v0 = vadd.f32 %v3883_v30, %v3803_v60 }
 0x37f   : > { %v3805_v4 = vpop.f32.mrf.mxu1  ;;  %v3885_v56 = vpop.f32.mrf.mxu0 }
 0x380   : > { %v3806_v37 = vadd.f32 %v3805_v4, %v3804_v33  ;;  %v3886_v1 = vadd.f32 %v3885_v56, %v3884_v20 }
 0x381   : > { %v3807_v55 = vpop.f32.mrf.mxu1  ;;  %v3887_v5 = vpop.f32.mrf.mxu0 }
 0x382   : > { %v5951_v11 = vadd.f32 %v3886_v1, %v3806_v37 }
 0x383   : > { %v3808_v9 = vpop.f32.mrf.mxu1  ;;  %v3888_v29 = vpop.f32.mrf.mxu0 }
 0x384   : > { %6284 = vst [vmem:[#allocation33_spill] sm:$0xff] %v5951_v11  ;;  %v3809_v49 = vadd.f32 %v3808_v9, %v3807_v55  ;;  %v3889_v51 = vadd.f32 %v3888_v29, %v3887_v5 }
 0x385   : > { %v3810_v34 = vpop.f32.mrf.mxu1  ;;  %v3890_v59 = vpop.f32.mrf.mxu0 }
 0x386   : > { %v5953_v15 = vadd.f32 %v3889_v51, %v3809_v49 }
 0x387   : > { %v3811_v43 = vpop.f32.mrf.mxu1  ;;  %v3891_v44 = vpop.f32.mrf.mxu0 }
 0x388   : > { %6285 = vst [vmem:[#allocation34_spill] sm:$0xff] %v5953_v15  ;;  %v3812_v40 = vadd.f32 %v3811_v43, %v3810_v34  ;;  %v3892_v16 = vadd.f32 %v3891_v44, %v3890_v59 }
 0x389   : > { %v3813_v23 = vpop.f32.mrf.mxu1  ;;  %v3893_v26 = vpop.f32.mrf.mxu0 }
 0x38a   : > { %v5955_v22 = vadd.f32 %v3892_v16, %v3812_v40 }
 0x38b   : > { %v3814_v32 = vpop.f32.mrf.mxu1  ;;  %v3894_v54 = vpop.f32.mrf.mxu0 }
 0x38c   : > { %6286 = vst [vmem:[#allocation35_spill] sm:$0xff] %v5955_v22  ;;  %v3815_v52 = vadd.f32 %v3814_v32, %v3813_v23  ;;  %v3895_v28 = vadd.f32 %v3894_v54, %v3893_v26 }
 0x38d   : > { %v3816_v50 = vpop.f32.mrf.mxu1  ;;  %v3896_v12 = vpop.f32.mrf.mxu0 }
 0x38e   : > { %v5957_v13 = vadd.f32 %v3895_v28, %v3815_v52 }
 0x38f   : > { %v3817_v14 = vpop.f32.mrf.mxu1  ;;  %v3897_v63 = vpop.f32.mrf.mxu0 }
 0x390   : > { %6287 = vst [vmem:[#allocation31_spill] sm:$0xff] %v5957_v13  ;;  %v3818_v62 = vadd.f32 %v3817_v14, %v3816_v50  ;;  %v3898_v19 = vadd.f32 %v3897_v63, %v3896_v12 }
 0x391   : > { %v3819_v45 = vpop.f32.mrf.mxu1  ;;  %v3899_v42 = vpop.f32.mrf.mxu0 }
 0x392   : > { %v5959_v41 = vadd.f32 %v3898_v19, %v3818_v62 }
 0x393   : > { %v3820_v2 = vpop.f32.mrf.mxu1  ;;  %v3900_v61 = vpop.f32.mrf.mxu0 }
 0x394   : > { %6288 = vst [vmem:[#allocation32_spill] sm:$0xff] %v5959_v41  ;;  %v3821_v17 = vadd.f32 %v3820_v2, %v3819_v45  ;;  %v3901_v10 = vadd.f32 %v3900_v61, %v3899_v42 }
 0x395   : > { %v3822_v24 = vpop.f32.mrf.mxu1  ;;  %v5961_v31 = vpop.f32.mrf.mxu0 }
 0x396   : > { %v5963_v25 = vadd.f32 %v3901_v10, %v3821_v17 }
 0x397   : > { %v3823_v18 = vpop.f32.mrf.mxu1  ;;  %v5967_v46 = vpop.f32.mrf.mxu0 }
 0x398   : > { %6289 = vst [vmem:[#allocation36_spill] sm:$0xff] %v5963_v25  ;;  %v5965_v35 = vadd.f32 %v3823_v18, %v3822_v24 }
 0x399   : > { %v3937_v58 = vpop.f32.mrf.mxu1  ;;  %v5969_v36 = vpop.f32.mrf.mxu0 }
 0x39b   : > { %v3938_v38 = vpop.f32.mrf.mxu1  ;;  %v4018_v53 = vpop.f32.mrf.mxu0 }
 0x39d   : > { %v3940_v6 = vpop.f32.mrf.mxu1 }
 0x39e   : > { %v4020_v39 = vpop.f32.mrf.mxu0 }
 0x39f   : > { %v3941_v60 = vpop.f32.mrf.mxu1 }
 0x3a0   : > { %v4021_v30 = vpop.f32.mrf.mxu0 }
 0x3a1   : > { %v3943_v33 = vpop.f32.mrf.mxu1 }
 0x3a2   : > { %v4023_v20 = vpop.f32.mrf.mxu0 }
 0x3a3   : > { %v3944_v4 = vpop.f32.mrf.mxu1 }
 0x3a4   : > { %v4024_v56 = vpop.f32.mrf.mxu0 }
 0x3a5   : > { %v3946_v37 = vpop.f32.mrf.mxu1 }
 0x3a6   : > { %v4026_v1 = vpop.f32.mrf.mxu0 }
 0x3a7   : > { %v3947_v55 = vpop.f32.mrf.mxu1 }
 0x3a8   : > { %v4027_v5 = vpop.f32.mrf.mxu0 }
 0x3a9   : > { %v3949_v9 = vpop.f32.mrf.mxu1 }
 0x3aa   : > { %v4029_v29 = vpop.f32.mrf.mxu0 }
 0x3ab   : > { %v3950_v49 = vpop.f32.mrf.mxu1 }
 0x3ac   : > { %v4030_v51 = vpop.f32.mrf.mxu0 }
 0x3ad   : > { %v3952_v34 = vpop.f32.mrf.mxu1 }
 0x3ae   : > { %v4032_v59 = vpop.f32.mrf.mxu0 }
 0x3af   : > { %v3953_v43 = vpop.f32.mrf.mxu1 }
 0x3b0   : > { %v4033_v44 = vpop.f32.mrf.mxu0 }
 0x3b1   : > { %v3955_v40 = vpop.f32.mrf.mxu1 }
 0x3b2   : > { %v5971_v16 = vpop.f32.mrf.mxu0 }
 0x3b3   : > { %v3956_v23 = vpop.f32.mrf.mxu1 }
 0x3b4   : > { %v5973_v26 = vpop.f32.mrf.mxu0 }
 0x3b5   : > { %v3958_v32 = vpop.f32.mrf.mxu1 }
 0x3b6   : > { %v5975_v54 = vpop.f32.mrf.mxu0 }
 0x3b7   : > { %v3959_v52 = vpop.f32.mrf.mxu1 }
 0x3b8   : > { %v5977_v28 = vpop.f32.mrf.mxu0 }
 0x3b9   : > { %v3961_v50 = vpop.f32.mrf.mxu1 }
 0x3ba   : > { %v5979_v12 = vpop.f32.mrf.mxu0 }
 0x3bb   : > { %v3962_v14 = vpop.f32.mrf.mxu1 }
 0x3bc   : > { %v5981_v63 = vpop.f32.mrf.mxu0 }
 0x3bd   : > { %v3964_v62 = vpop.f32.mrf.mxu1 }
 0x3be   : > { %v5983_v19 = vpop.f32.mrf.mxu0 }
 0x3bf   : > { %6290 = vst [vmem:[#allocation37_spill] sm:$0xff] %v5983_v19  ;;  %v3965_v45 = vpop.f32.mrf.mxu1  ;;  %v3948_v19 = vadd.f32 %v3947_v55, %v3946_v37  ;;  %v3957_v55 = vadd.f32 %v3956_v23, %v3955_v40 }
 0x3c0   : > { %v5985_v42 = vpop.f32.mrf.mxu0 }
 0x3c1   : > { %6291 = vst [vmem:[#allocation38_spill] sm:$0xff] %v5985_v42  ;;  %v5987_v2 = vpop.f32.mrf.mxu1 }
 0x3c2   : > { %6292 = vst [vmem:[#allocation39_spill] sm:$0xff] %v5987_v2  ;;  %v5989_v61 = vpop.f32.mrf.mxu0  ;;  %v3942_v2 = vadd.f32 %v3941_v60, %v3940_v6  ;;  %v4019_v6 = vadd.f32 %v4018_v53, %v5969_v36  ;;  %v3954_v60 = vadd.f32 %v3953_v43, %v3952_v34  ;;  %v6034_v53 = vld [vmem:[%s6222_s5] ss:$0 sm:$0xff] }
 0x3c3   : > { %6293 = vst [vmem:[#allocation40_spill] sm:$0xff] %v5989_v61  ;;  %v5991_v17 = vpop.f32.mrf.mxu1 }
 0x3c4   : > { %6294 = vst [vmem:[#allocation41_spill] sm:$0xff] %v5991_v17  ;;  %v5995_v24 = vpop.f32.mrf.mxu0 }
 0x3c5   : > { %v5993_v10 = vpop.f32.mrf.mxu1  ;;  %6296 = vst [vmem:[#allocation43_spill] sm:$0xff] %v5995_v24  ;;  %v2932_v24 = vadd.f32 %v3942_v2, %v5935_v47 }
 0x3c6   : > { %6295 = vst [vmem:[#allocation42_spill] sm:$0xff] %v5993_v10  ;;  %v6001_v41 = vpop.f32.mrf.mxu0  ;;  %v3939_v10 = vadd.f32 %v3938_v38, %v3937_v58  ;;  %v3904_v58 = vadd.f32 %v5967_v46, %v5961_v31  ;;  %v2952_v31 = vadd.f32 %v3954_v60, %v5943_v7  ;;  %v4034_v46 = vadd.f32 %v4033_v44, %v4032_v59  ;;  %v3688_v60 = vld [vmem:[%s4759_s18 + $0x51] sm:$0xff] }
 0x3c7   : > { %v5997_v18 = vpop.f32.mrf.mxu1  ;;  %6299 = vst [vmem:[#allocation46_spill] sm:$0xff] %v6001_v41  ;;  %v3945_v41 = vadd.f32 %v3944_v4, %v3943_v33  ;;  %v2942_v33 = vadd.f32 %v3948_v19, %v5939_v57  ;;  %v4028_v4 = vadd.f32 %v4027_v5, %v4026_v1 }
 0x3c8   : > { %6297 = vst [vmem:[#allocation44_spill] sm:$0xff] %v5997_v18  ;;  %v6007_v22 = vpop.f32.mrf.mxu0  ;;  %v4022_v18 = vadd.f32 %v4021_v30, %v4020_v39  ;;  %v4025_v30 = vadd.f32 %v4024_v56, %v4023_v20  ;;  %v6040_v57 = vadd.f32 %v3904_v58, %v5965_v35  ;;  %v6045_v20 = vld [vmem:[%s6223_s6] ss:$0 sm:$0xff]  ;;  %v3966_v35 = vadd.f32 %v3965_v45, %v3964_v62 }
 0x3c9   : > { %v5999_v25 = vpop.f32.mrf.mxu1  ;;  %v2937_v39 = vadd.f32 %v3945_v41, %v5937_v21  ;;  %v3087_v5 = vadd.f32 %v4028_v4, %v2942_v33  ;;  %v6308_v4 = vld [vmem:[#allocation39_spill] sm:$0xff] }
 0x3ca   : > { %6298 = vst [vmem:[#allocation45_spill] sm:$0xff] %v5999_v25  ;;  %v6013_v42 = vpop.f32.mrf.mxu0  ;;  %v3077_v47 = vadd.f32 %v4022_v18, %v2932_v24  ;;  %v6305_v18 = vld [vmem:[#allocation38_spill] sm:$0xff] }
 0x3cb   : > { %v6003_v13 = vpop.f32.mrf.mxu1 }
 0x3cc   : > { %6300 = vst [vmem:[#allocation47_spill] sm:$0xff] %v6003_v13  ;;  %v3951_v13 = vadd.f32 %v3950_v49, %v3949_v9  ;;  %v2957_v49 = vadd.f32 %v3957_v55, %v5945_v3  ;;  %v4040_v3 = vadd.f32 %v5977_v28, %v5975_v54  ;;  %v3687_v55 = vld [vmem:[%s4759_s18 + $0x49] sm:$0xff] }
 0x3cd   : > { %v6005_v15 = vpop.f32.mrf.mxu1  ;;  %v6306_v54 = vld [vmem:[#allocation42_spill] sm:$0xff] }
 0x3ce   : > { %6301 = vst [vmem:[#allocation48_spill] sm:$0xff] %v6005_v15  ;;  %v2927_v15 = vadd.f32 %v3939_v10, %v5933_v27  ;;  %v2947_v37 = vadd.f32 %v3951_v13, %v5941_v48  ;;  %v4031_v27 = vadd.f32 %v4030_v51, %v4029_v29  ;;  %v3960_v48 = vadd.f32 %v3959_v52, %v3958_v32  ;;  %v3686_v51 = vld [vmem:[%s4759_s18 + $0x39] sm:$0xff] }
 0x3cf   : > { %v6009_v61 = vpop.f32.mrf.mxu1  ;;  %v3963_v13 = vadd.f32 %v3962_v14, %v3961_v50  ;;  %v3082_v29 = vadd.f32 %v4025_v30, %v2937_v39  ;;  %v3097_v32 = vadd.f32 %v4034_v46, %v2952_v31  ;;  %v3685_v50 = vld [vmem:[%s4759_s18 + $0x31] sm:$0xff]  ;;  %v6303_v10 = vld [vmem:[#allocation33_spill] sm:$0xff] }
 0x3d0   : > { %6302 = vst [vmem:[#allocation49_spill] sm:$0xff] %v6009_v61  ;;  %v6022_v61 = vpop.f32.mrf.mxu0  ;;  %v3072_v41 = vadd.f32 %v4019_v6, %v2927_v15  ;;  %v4037_v15 = vadd.f32 %v5973_v26, %v5971_v16  ;;  %v3092_v59 = vadd.f32 %v4031_v27, %v2947_v37  ;;  %v2962_v52 = vadd.f32 %v3960_v48, %v5947_v8  ;;  %v6304_v8 = vld [vmem:[#allocation37_spill] sm:$0xff]  ;;  %v6307_v28 = vld [vmem:[#allocation44_spill] sm:$0xff] }
 0x3d1   : > { %v6011_v17 = vpop.f32.mrf.mxu1  ;;  %v2967_v16 = vadd.f32 %v3963_v13, %v5949_v0  ;;  %v4043_v26 = vadd.f32 %v5981_v63, %v5979_v12  ;;  %v2972_v24 = vadd.f32 %v3966_v35, %v6303_v10  ;;  %v4046_v6 = vadd.f32 %v6305_v18, %v6304_v8  ;;  %v6309_v37 = vld [vmem:[#allocation41_spill] sm:$0xff] }
 0x3d2   : > { %v6037_v9 = vpop.f32.mrf.mxu0  ;;  %v3972_v0 = vadd.f32 %v6307_v28, %v6306_v54  ;;  %v3102_v63 = vadd.f32 %v4037_v15, %v2957_v49  ;;  %v3969_v27 = vadd.f32 %v6309_v37, %v6308_v4  ;;  %v3107_v46 = vadd.f32 %v4040_v3, %v2962_v52  ;;  %v6313_v52 = vld [vmem:[#allocation43_spill] sm:$0xff] }
 0x3d3   : > { %v6016_v25 = vpop.f32.mrf.mxu1  ;;  %v3117_v35 = vadd.f32 %v4046_v6, %v2972_v24  ;;  %v6318_v6 = vld [vmem:[#allocation34_spill] sm:$0xff]  ;;  %v4055_v28 = vadd.f32 %v6022_v61, %v6013_v42  ;;  %v6319_v37 = vld [vmem:[#allocation31_spill] sm:$0xff] }
 0x3d4   : > { %v6052_v43 = vpop.f32.mrf.mxu0  ;;  %v2977_v54 = vadd.f32 %v3969_v27, %v6318_v6 }
 0x3d5   : > { %v6018_v11 = vpop.f32.mrf.mxu1  ;;  %v4058_v42 = vadd.f32 %v6052_v43, %v6037_v9 }
 0x3d6   : > { %v6071_v58 = vpop.f32.mrf.mxu0 }
 0x3d7   : > { %v6026_v38 = vpop.f32.mrf.mxu1 }
 0x3d9   : > { %v4193_v36 = vpop.f32.mrf.mxu1 }
 0x3da   : > { %v3222_v21 = vadd.f32 %v4193_v36, %v3077_v47 }
 0x3db   : > { %v3216_v56 = vpop.f32.mrf.mxu1 }
 0x3dc   : > { %v3303_v1 = vmul.f32 %v6034_v53, %v3222_v21  ;;  %v3217_v7 = vadd.f32 %v3216_v56, %v3072_v41  ;;  %v3112_v21 = vadd.f32 %v4043_v26, %v2967_v16  ;;  %v6314_v16 = vld [vmem:[#allocation45_spill] sm:$0xff]  ;;  %v6315_v26 = vld [vmem:[#allocation47_spill] sm:$0xff] }
 0x3dd   : > { %v4196_v34 = vpop.f32.mrf.mxu1 }
 0x3de   : > { %v3326_v44 = vadd.f32 %v6045_v20, %v3303_v1  ;;  %v3302_v40 = vmul.f32 %v6034_v53, %v3217_v7  ;;  %v3232_v23 = vadd.f32 %v4196_v34, %v3087_v5  ;;  %v6310_v1 = vld [vmem:[#allocation35_spill] sm:$0xff]  ;;  %v6311_v5 = vld [vmem:[#allocation46_spill] sm:$0xff] }
 0x3df   : > { %v3226_v14 = vpop.f32.mrf.mxu1  ;;  %v2982_v7 = vadd.f32 %v3972_v0, %v6310_v1  ;;  %v3981_v1 = vadd.f32 %v6016_v25, %v6011_v17 }
 0x3e0   : > { %v3358_v62 = vadd.f32 %v3686_v51, %v3326_v44  ;;  %v3325_v19 = vadd.f32 %v6045_v20, %v3302_v40  ;;  %v3305_v45 = vmul.f32 %v6034_v53, %v3232_v23  ;;  %v3227_v2 = vadd.f32 %v3226_v14, %v3082_v29  ;;  %v4060_v51 = vpop.f32.mrf.mxu0  ;;  %v3690_v40 = vld [vmem:[%s4759_s18 + $0x69] sm:$0xff]  ;;  %v6317_v14 = vld [vmem:[#allocation49_spill] sm:$0xff] }
 0x3e1   : > { %v4199_v12 = vpop.f32.mrf.mxu1  ;;  %v4052_v29 = vadd.f32 %v6007_v22, %v6311_v5  ;;  %v3975_v22 = vadd.f32 %v6315_v26, %v6314_v16  ;;  %v3694_v5 = vld [vmem:[%s4759_s18 + $0x99] sm:$0xff]  ;;  %v4061_v25 = vadd.f32 %v4060_v51, %v6071_v58 }
 0x3e2   : > { %v3374_v47 = vmax.f32 %v3358_v62, 0.0  ;;  %v3357_v39 = vadd.f32 %v3685_v50, %v3325_v19  ;;  %v3328_v30 = vadd.f32 %v6045_v20, %v3305_v45  ;;  %v3304_v33 = vmul.f32 %v6034_v53, %v3227_v2  ;;  %v6316_v50 = vld [vmem:[#allocation48_spill] sm:$0xff]  ;;  %v3689_v45 = vld [vmem:[%s4759_s18 + $0x61] sm:$0xff] }
 0x3e3   : > { %v3242_v36 = vadd.f32 %v4199_v12, %v3097_v32  ;;  %v3236_v31 = vpop.f32.mrf.mxu1  ;;  %v6312_v32 = vld [vmem:[#allocation40_spill] sm:$0xff]  ;;  %v3978_v62 = vadd.f32 %v6317_v14, %v6316_v50  ;;  %v2987_v27 = vadd.f32 %v3975_v22, %v6319_v37 }
 0x3e4   : > { %3390 = vst [vmem:[%s4837_s8 + $0x8] sm:$0xff] %v3374_v47  ;;  %v3373_v41 = vmax.f32 %v3357_v39, 0.0  ;;  %v3360_v48 = vadd.f32 %v3688_v60, %v3328_v30  ;;  %v3327_v13 = vadd.f32 %v6045_v20, %v3304_v33  ;;  %v3237_v56 = vadd.f32 %v3236_v31, %v3092_v59  ;;  %v3692_v60 = vld [vmem:[%s4759_s18 + $0x81] sm:$0xff]  ;;  %v4062_v39 = vpop.f32.mrf.mxu0  ;;  %v3691_v31 = vld [vmem:[%s4759_s18 + $0x79] sm:$0xff]  ;;  %v3696_v22 = vld [vmem:[%s4759_s18 + $0xb1] sm:$0xff] }
 0x3e5   : > { %v3307_v49 = vmul.f32 %v6034_v53, %v3242_v36  ;;  %v4202_v15 = vpop.f32.mrf.mxu1  ;;  %v4049_v3 = vadd.f32 %v6313_v52, %v6312_v32  ;;  %v3127_v47 = vadd.f32 %v4052_v29, %v2982_v7  ;;  %v3984_v7 = vadd.f32 %v6026_v38, %v6018_v11 }
 0x3e6   : > { %3389 = vst [vmem:[%s4837_s8] sm:$0xff] %v3373_v41  ;;  %v3376_v34 = vmax.f32 %v3360_v48, 0.0  ;;  %v3359_v44 = vadd.f32 %v3687_v55, %v3327_v13  ;;  %v3306_v23 = vmul.f32 %v6034_v53, %v3237_v56  ;;  %v3252_v59 = vadd.f32 %v4202_v15, %v3107_v46  ;;  %v6320_v55 = vld [vmem:[#allocation32_spill] sm:$0xff] }
 0x3e7   : > { %v3330_v19 = vadd.f32 %v6045_v20, %v3307_v49  ;;  %v3246_v2 = vpop.f32.mrf.mxu1  ;;  %v2992_v36 = vadd.f32 %v3978_v62, %v6320_v55  ;;  %v3122_v29 = vadd.f32 %v4049_v3, %v2977_v54  ;;  %v4063_v49 = vpop.f32.mrf.mxu0  ;;  %v6321_v3 = vld [vmem:[#allocation36_spill] sm:$0xff]  ;;  %v3002_v26 = vadd.f32 %v3984_v7, %v6040_v57 }
 0x3e8   : > { %3392 = vst [vmem:[%s4837_s8 + $0x18] sm:$0xff] %v3376_v34  ;;  %v3375_v10 = vmax.f32 %v3359_v44, 0.0  ;;  %v3329_v24 = vadd.f32 %v6045_v20, %v3306_v23  ;;  %v3309_v8 = vmul.f32 %v6034_v53, %v3252_v59  ;;  %v3247_v18 = vadd.f32 %v3246_v2, %v3102_v63  ;;  %v3693_v59 = vld [vmem:[%s4759_s18 + $0x91] sm:$0xff] }
 0x3e9   : > { %v3362_v0 = vadd.f32 %v3690_v40, %v3330_v19  ;;  %v4205_v12 = vpop.f32.mrf.mxu1  ;;  %v3137_v38 = vadd.f32 %v4058_v42, %v2992_v36  ;;  %v3132_v40 = vadd.f32 %v4055_v28, %v2987_v27  ;;  %v2997_v16 = vadd.f32 %v3981_v1, %v6321_v3  ;;  %v3698_v28 = vld [vmem:[%s4759_s18 + $0xc9] sm:$0xff] }
 0x3ea   : > { %3391 = vst [vmem:[%s4837_s8 + $0x10] sm:$0xff] %v3375_v10  ;;  %v3361_v30 = vadd.f32 %v3689_v45, %v3329_v24  ;;  %v3332_v33 = vadd.f32 %v6045_v20, %v3309_v8  ;;  %v3308_v4 = vmul.f32 %v6034_v53, %v3247_v18  ;;  %v3262_v63 = vadd.f32 %v4205_v12, %v3117_v35  ;;  %v3695_v10 = vld [vmem:[%s4759_s18 + $0xa9] sm:$0xff] }
 0x3eb   : > { %v3378_v61 = vmax.f32 %v3362_v0, 0.0  ;;  %v3256_v46 = vpop.f32.mrf.mxu1  ;;  %v4064_v58 = vadd.f32 %v4063_v49, %v4062_v39  ;;  %v3142_v12 = vadd.f32 %v4061_v25, %v2997_v16 }
 0x3ec   : > { %v3377_v41 = vmax.f32 %v3361_v30, 0.0  ;;  %v3364_v48 = vadd.f32 %v3692_v60, %v3332_v33  ;;  %v3331_v13 = vadd.f32 %v6045_v20, %v3308_v4  ;;  %v3311_v56 = vmul.f32 %v6034_v53, %v3262_v63  ;;  %v3697_v4 = vld [vmem:[%s4759_s18 + $0xc1] sm:$0xff] }
 0x3ed   : > { %3394 = vst [vmem:[%s4837_s8 + $0x28] sm:$0xff] %v3378_v61  ;;  %v3257_v9 = vadd.f32 %v3256_v46, %v3112_v21  ;;  %v4208_v43 = vpop.f32.mrf.mxu1  ;;  %v3147_v0 = vadd.f32 %v4064_v58, %v3002_v26 }
 0x3ee   : > { %3393 = vst [vmem:[%s4837_s8 + $0x20] sm:$0xff] %v3377_v41  ;;  %v3380_v15 = vmax.f32 %v3364_v48, 0.0  ;;  %v3363_v35 = vadd.f32 %v3691_v31, %v3331_v13  ;;  %v3334_v34 = vadd.f32 %v6045_v20, %v3311_v56  ;;  %v3272_v44 = vadd.f32 %v4208_v43, %v3127_v47  ;;  %v3700_v41 = vld [vmem:[%s4759_s18 + $0xe1] sm:$0xff]  ;;  %v3699_v56 = vld [vmem:[%s4759_s18 + $0xd9] sm:$0xff]  ;;  %s6322_s18 = sand.u32 1, %s4540_s25  }
 0x3ef   : > { %v3310_v17 = vmul.f32 %v6034_v53, %v3257_v9  ;;  %v3266_v11 = vpop.f32.mrf.mxu1  ;;  %s6166_s30 = scalar_lea.sflag [#allocation8], %s6322_s18 }
 0x3f0   : > { %3396 = vst [vmem:[%s4837_s8 + $0x38] sm:$0xff] %v3380_v15  ;;  %v3379_v21 = vmax.f32 %v3363_v35, 0.0  ;;  %v3366_v23 = vadd.f32 %v3694_v5, %v3334_v34  ;;  %v3313_v32 = vmul.f32 %v6034_v53, %v3272_v44  ;;  %v3267_v52 = vadd.f32 %v3266_v11, %v3122_v29 }
 0x3f1   : > { %v3333_v51 = vadd.f32 %v6045_v20, %v3310_v17  ;;  %v4211_v50 = vpop.f32.mrf.mxu1 }
 0x3f2   : > { %3395 = vst [vmem:[%s4837_s8 + $0x30] sm:$0xff] %v3379_v21  ;;  %v3382_v14 = vmax.f32 %v3366_v23, 0.0  ;;  %v3336_v62 = vadd.f32 %v6045_v20, %v3313_v32  ;;  %v3312_v19 = vmul.f32 %v6034_v53, %v3267_v52  ;;  %v3282_v45 = vadd.f32 %v4211_v50, %v3137_v38 }
 0x3f3   : > { %v3365_v2 = vadd.f32 %v3693_v59, %v3333_v51  ;;  %v3276_v24 = vpop.f32.mrf.mxu1 }
 0x3f4   : > { %3398 = vst [vmem:[%s4837_s8 + $0x48] sm:$0xff] %v3382_v14  ;;  %v3368_v57 = vadd.f32 %v3696_v22, %v3336_v62  ;;  %v3335_v8 = vadd.f32 %v6045_v20, %v3312_v19  ;;  %v3315_v18 = vmul.f32 %v6034_v53, %v3282_v45  ;;  %v3277_v6 = vadd.f32 %v3276_v24, %v3132_v40 }
 0x3f5   : > { %v3381_v54 = vmax.f32 %v3365_v2, 0.0  ;;  %v4214_v60 = vpop.f32.mrf.mxu1 }
 0x3f6   : > { %v3384_v47 = vmax.f32 %v3368_v57, 0.0  ;;  %v3367_v39 = vadd.f32 %v3695_v10, %v3335_v8  ;;  %v3338_v30 = vadd.f32 %v6045_v20, %v3315_v18  ;;  %v3314_v33 = vmul.f32 %v6034_v53, %v3277_v6 }
 0x3f7   : > { %3397 = vst [vmem:[%s4837_s8 + $0x40] sm:$0xff] %v3381_v54  ;;  %v3292_v63 = vadd.f32 %v4214_v60, %v3147_v0  ;;  %v3286_v37 = vpop.f32.mrf.mxu1 }
 0x3f8   : > { %3400 = vst [vmem:[%s4837_s8 + $0x58] sm:$0xff] %v3384_v47  ;;  %v3383_v27 = vmax.f32 %v3367_v39, 0.0  ;;  %v3370_v55 = vadd.f32 %v3698_v28, %v3338_v30  ;;  %v3337_v36 = vadd.f32 %v6045_v20, %v3314_v33  ;;  %v3287_v42 = vadd.f32 %v3286_v37, %v3142_v12 }
 0x3f9   : > { %v3317_v61 = vmul.f32 %v6034_v53, %v3292_v63 }
 0x3fa   : > { %3399 = vst [vmem:[%s4837_s8 + $0x50] sm:$0xff] %v3383_v27  ;;  %v3386_v31 = vmax.f32 %v3370_v55, 0.0  ;;  %v3369_v46 = vadd.f32 %v3697_v4, %v3337_v36  ;;  %v3316_v48 = vmul.f32 %v6034_v53, %v3287_v42 }
 0x3fb   : > { %v3340_v13 = vadd.f32 %v6045_v20, %v3317_v61 }
 0x3fc   : > { %3402 = vst [vmem:[%s4837_s8 + $0x68] sm:$0xff] %v3386_v31  ;;  %v3385_v1 = vmax.f32 %v3369_v46, 0.0  ;;  %v3339_v7 = vadd.f32 %v6045_v20, %v3316_v48 }
 0x3fd   : > { %v3372_v5 = vadd.f32 %v3700_v41, %v3340_v13 }
 0x3fe   : > { %3401 = vst [vmem:[%s4837_s8 + $0x60] sm:$0xff] %v3385_v1  ;;  %v3371_v9 = vadd.f32 %v3699_v56, %v3339_v7 }
 0x3ff   : > { %v3388_v43 = vmax.f32 %v3372_v5, 0.0 }
 0x400   : > { %v3387_v53 = vmax.f32 %v3371_v9, 0.0 }
 0x401   : > { %3404 = vst [vmem:[%s4837_s8 + $0x78] sm:$0xff] %v3388_v43 }
 0x402   : > { %3403 = vst [vmem:[%s4837_s8 + $0x70] sm:$0xff] %v3387_v53 }
 0x403   : > { %4475 = shalt.err (!%p4472_p5)
}
 0x404   : > { %s4476_s8 = scalar_lea.hbm %s6158_s1, 2048  ;;  %s4480_s26 = scalar_lea.hbm %s6224_s7, 8192 }
 0x405   : > { %p4477_p4 = scmp.ne.s32.totalorder %s6158_s1, %s4476_s8  ;;  %p4481_p7 = scmp.lt.s32.totalorder %s6158_s1, %s6224_s7 }
 0x406   : > { %p4482_p8 = scmp.lt.s32.totalorder %s4480_s26, %s4476_s8 }
 0x407   : > { %p4478_p11 = pnand %p4477_p4, %p4669_p3 }
 0x408   : > { %p4483_p6 = por %p4482_p8, %p4481_p7 }
 0x409   : > { %p4479_p0 = pneg %p4478_p11 }
 0x40b   : > { %p4484_p9 = pnand %p4483_p6, %p4479_p0 }
 0x40d   : > { %4487 = shalt.err (!%p4484_p9)
}
 0x40e   : > { %s4575_s20 = smov 128   ;;  %s4576_s29 = smov 8  }
 0x40f   : > { %4226 = dma.vmem_to_hbm [thread:$0]  (%p4669_p3), %s6160_s28, 2048, %s6158_s1, %s6166_s30, %s4575_s20, %s4575_s20, %s4576_s29  }
 0x410 PF: > { %s6323_s19 = sld [smem:[#allocation26_spill]] }
 0x411   : > { %s6324_s10 = sld [smem:[#allocation22_spill]] }
 0x412   : > { %s6325_s9 = sld [smem:[#allocation29_spill]] }
 0x416   : > { %p4244_p1 = scmp.ge.s32.totalorder %s6323_s19, 2 }
 0x417   : > { %s3436_s23 = sand.u32 1, %s6324_s10  }
 0x418   : > { %p6326_p10 = scmp.ne.s32.totalorder %s6325_s9, 0  ;;  %s3437_s27 = scalar_lea.sflag [#allocation8], %s3436_s23 }
 0x41a   : > { %p4236_p12 = pnand %p4244_p1, %p6326_p10 }
 0x41c   : > { %p4237_p13 = pneg %p4236_p12 }
 0x41e   : > { %4531 = dma.done.wait (%p4237_p13), %s3437_s27, 2048  }
 0x41f   : > { %4533 = vsyncadd (%p4237_p13), %s3437_s27, 4294965248  ;;  %s22_s8 = sadd.s32 1, %s6323_s19   ;;  %s6327_s14 = sld [smem:[#allocation23_spill]] }
 0x420   : > { %p19_p2 = scmp.ge.s32.totalorder %s22_s8, 6   ;;  %s6328_s26 = sld [smem:[#allocation30_spill]] }
 0x421   : > { %s6329_s27 = sld [smem:[#allocation24_spill]]  ;;  %s6333_s24 = smov %s4540_s25 }
 0x422   : > { %s6330_s28 = sld [smem:[#allocation25_spill]]  ;;  %21 = sbr.rel (!%p19_p2) target bundleno = 10 (0xa), region = 123 }
 0x423   : > { %s6331_s29 = sld [smem:[#allocation27_spill]] }
 0x424   : > { %s6332_s30 = sld [smem:[#allocation28_spill]] }
 0x425   : > { %s6334_s25 = smov %s6327_s14 }
 0x427   :  { %3442 = vsyncpa [#allocation7], 1 }
 0x428   :  { %3444 = vsyncpa [#allocation7 + $0x1], 1 }
 0x429   :  { %3445 = vsyncpa [#allocation10], 1 }
 0x42a   :  { %3446 = vsyncpa [#allocation8], 1 }
 0x42b   :  { %3448 = vsyncpa [#allocation8 + $0x1], 1 }
 0x42c   :  { %3449 = vsyncmov [#allocation5] }
 0x42f   :  { %s3450_s15 = vpop.sfrf %3449 }
 0x430   :  { %p3707_p3 = scmp.ne.s32.totalorder %s3450_s15, 0 }
 0x432   :  { %3454 = shalt.err (%p3707_p3)  }
 0x433   :  { %3456 = vsyncmov [#allocation5 + $0x1] }
 0x436   :  { %s3457_s21 = vpop.sfrf %3456 }
 0x437   :  { %p3708_p5 = scmp.ne.s32.totalorder %s3457_s21, 0 }
 0x439   :  { %3461 = shalt.err (%p3708_p5)  }

</bundles_post_ra>
